<compile_context>
chip_gen: v7x
topology: tpu7x:2x2x1
jax: 0.10.0
libtpu: 0.0.40
codegen_flags: <defaults>
</compile_context>

<pallas_src>
import functools

import jax
import jax.numpy as jnp
from jax.experimental import pallas as pl
from jax.experimental.pallas import tpu as pltpu


def _round_up(x, m):
    return ((x + m - 1) // m) * m


def _odernn_kernel(latent_dim, n_units, chunk, unroll,
                   dt_ref,                       # SMEM scalar-prefetch (n_tp_p,) per-step dt
                   data_ref,                     # VMEM (T, bt, n_dims) bf16
                   mask_ref,                     # VMEM (T, bt, 1) f32 precomputed obs-mask
                   w_ode, b_ode,                 # ODE vector field
                   w1x, b1,                      # fused x-part of gate layer-1 (n_dims, 3U), (1, 3U)
                   w1y_ur, w1y_n,                # y-part of layer-1: (L, 2U) and (L, U)
                   w2_ur, b2_ur,                 # block-diag layer-2 for [update;reset]: (2U, 2L), (1, 2L)
                   w2_n, b2_n,                   # new-state layer-2: (U, L), (1, L)
                   ys_ref,                       # VMEM out (T, bt, L) bf16 latent_ys
                   ylast_ref,                    # VMEM out (bt, L) f32 final hidden state
                   y_scr,                        # VMEM scratch (bt, L) f32 carried hidden state
                   hx_scr):                      # VMEM scratch (T, bt, 3U) f32 hoisted x-projection
    c = pl.program_id(1)                          # time-chunk index (sequential)
    L, U, T = latent_dim, n_units, chunk
    bt = y_scr.shape[0]
    n_dims = data_ref.shape[-1]

    # prev_y = zeros at the first time chunk (per batch tile / per core).
    @pl.when(c == 0)
    def _():
        y_scr[...] = jnp.zeros_like(y_scr)

    # ---- chunk prologue: everything that does not depend on y -------------
    # Shared x-contribution to all three gate MLPs' first layers (+ fused
    # biases), computed once per chunk as a single (T*bt, 3U) MXU matmul.
    x_all = data_ref[...].reshape(T * bt, n_dims)                       # bf16
    hx_scr[...] = (jnp.dot(x_all, w1x[...], preferred_element_type=jnp.float32)
                   + b1[...]).reshape(T, bt, 3 * U)

    # Hoist only the small operands; pre-broadcast biases once (JAX does not
    # CSE broadcast_in_dim inside the unrolled loop).  Large weight tiles are
    # re-loaded from VMEM inside the loop to keep vreg pressure low.
    w_ode_v = w_ode[...]
    b_ode_b = jnp.broadcast_to(b_ode[...], (bt, L))
    b2_ur_b = jnp.broadcast_to(b2_ur[...], (bt, 2 * L))
    b2_n_b = jnp.broadcast_to(b2_n[...], (bt, L))

    def step(t, y):                               # y: (bt, L) f32
        dt = dt_ref[c * T + t]                    # scalar (t_i - prev_t), 0 on padded steps
        m = mask_ref[t]                           # (bt, 1) f32
        hx = hx_scr[t]                            # (bt, 3U) f32, precomputed

        # --- ODE evolution between observations: single explicit-Euler step
        #     with a learned tanh-linear vector field (yi_ode = ode_sol[:, :, -1, :]).
        # TODO(synk): the external z0_diffeq_solver (attention init_condition tuple,
        # adaptive sub-stepping, sum_att_score / context_vector) is not defined in
        # this module, so it is approximated by this Euler step.
        dy = jnp.tanh(jnp.dot(y.astype(jnp.bfloat16), w_ode_v,
                              preferred_element_type=jnp.float32) + b_ode_b)
        yi_ode = y + dt * dy                      # (bt, L) f32

        # update / reset gates: fused first layer (L -> 2U) and block-diagonal
        # second layer (2U -> 2L), then split.
        yo = yi_ode.astype(jnp.bfloat16)
        h_ur = jnp.tanh(jnp.dot(yo, w1y_ur[...], preferred_element_type=jnp.float32)
                        + hx[:, :2 * U])                                    # (bt, 2U)
        g_ur = jax.nn.sigmoid(jnp.dot(h_ur.astype(jnp.bfloat16), w2_ur[...],
                                      preferred_element_type=jnp.float32) + b2_ur_b)
        update_gate = g_ur[:, :L]
        reset_gate = g_ur[:, L:]

        # new_state_net([y * reset_gate ; x])
        yr = (yi_ode * reset_gate).astype(jnp.bfloat16)
        h_n = jnp.tanh(jnp.dot(yr, w1y_n[...], preferred_element_type=jnp.float32)
                       + hx[:, 2 * U:])                                     # (bt, U)
        new_state = jnp.dot(h_n.astype(jnp.bfloat16), w2_n[...],
                            preferred_element_type=jnp.float32) + b2_n_b    # (bt, L)

        new_y = (1.0 - update_gate) * new_state + update_gate * yi_ode

        # masked update: last input channel is the observation-mask channel
        # (torch: mask = (x.squeeze()[:, -1] > 0).float().reshape(-1, 1)),
        # precomputed in the wrapper.  Padded steps have m=0, dt=0 -> identity.
        new_y = m * new_y + (1.0 - m) * yi_ode

        ys_ref[t] = new_y.astype(ys_ref.dtype)    # latent_ys[c*T + t], bf16 store
        return new_y

    y_final = jax.lax.fori_loop(0, T, step, y_scr[...], unroll=unroll)
    y_scr[...] = y_final
    ylast_ref[...] = y_final                      # resident across the time axis; f32 z0


def make_params(latent_dim, input_dim, n_units, key):
    """Deterministic synthetic parameters (normal(0, 0.1) weights, zero biases)."""
    keys = jax.random.split(key, 8)

    def w(k, shape):
        return (0.1 * jax.random.normal(k, shape)).astype(jnp.float32)

    in_dim = latent_dim + input_dim
    return {
        'w_ode': w(keys[0], (latent_dim, latent_dim)),
        'b_ode': jnp.zeros((1, latent_dim), jnp.float32),
        'uw1': w(keys[1], (in_dim, n_units)),
        'ub1': jnp.zeros((1, n_units), jnp.float32),
        'uw2': w(keys[2], (n_units, latent_dim)),
        'ub2': jnp.zeros((1, latent_dim), jnp.float32),
        'rw1': w(keys[3], (in_dim, n_units)),
        'rb1': jnp.zeros((1, n_units), jnp.float32),
        'rw2': w(keys[4], (n_units, latent_dim)),
        'rb2': jnp.zeros((1, latent_dim), jnp.float32),
        'nw1': w(keys[5], (in_dim, n_units)),
        'nb1': jnp.zeros((1, n_units), jnp.float32),
        'nw2': w(keys[6], (n_units, latent_dim)),
        'nb2': jnp.zeros((1, latent_dim), jnp.float32),
    }


def _fuse_params(params, latent_dim, n_units):
    """Fuse the 14 gate weights/biases into 10 MXU-friendly operands."""
    L, U = latent_dim, n_units
    bf16, f32 = jnp.bfloat16, jnp.float32

    uw1, rw1, nw1 = params['uw1'], params['rw1'], params['nw1']   # (L+D, U)
    uw1_y, uw1_x = uw1[:L], uw1[L:]
    rw1_y, rw1_x = rw1[:L], rw1[L:]
    nw1_y, nw1_x = nw1[:L], nw1[L:]

    w1x = jnp.concatenate([uw1_x, rw1_x, nw1_x], axis=1)          # (D, 3U)
    b1 = jnp.concatenate([params['ub1'], params['rb1'], params['nb1']], axis=1)  # (1, 3U)
    w1y_ur = jnp.concatenate([uw1_y, rw1_y], axis=1)              # (L, 2U)
    w1y_n = nw1_y                                                 # (L, U)

    # Block-diagonal second layer for [update ; reset]: (2U, 2L)
    w2_ur = jnp.zeros((2 * U, 2 * L), f32)
    w2_ur = w2_ur.at[:U, :L].set(params['uw2']).at[U:, L:].set(params['rw2'])
    b2_ur = jnp.concatenate([params['ub2'], params['rb2']], axis=1)  # (1, 2L)

    return [
        params['w_ode'].astype(bf16), params['b_ode'].astype(f32),
        w1x.astype(bf16), b1.astype(f32),
        w1y_ur.astype(bf16), w1y_n.astype(bf16),
        w2_ur.astype(bf16), b2_ur.astype(f32),
        params['nw2'].astype(bf16), params['nb2'].astype(f32),
    ]


def _est_vmem_bytes(T, bt, n_dims, L, U):
    """Rough working-set estimate: double-buffered pipeline blocks + scratch + weights."""
    dbl = 2
    data_b = T * bt * n_dims * 2 * dbl            # bf16 input block
    mask_b = T * bt * 1 * 4 * dbl                 # f32 mask block
    ys_b = T * bt * L * 2 * dbl                   # bf16 latent_ys block
    ylast_b = bt * L * 4 * dbl                    # f32 final-state block
    w_b = dbl * 2 * (L * L + n_dims * 3 * U + L * 2 * U + L * U
                     + 2 * U * 2 * L + U * L)     # bf16 weights (double-buffered)
    b_b = dbl * 4 * (L + 3 * U + 2 * L + L)       # f32 biases
    scr_b = bt * L * 4 + T * bt * 3 * U * 4       # y_scr + hx_scr
    return data_b + mask_b + ys_b + ylast_b + w_b + b_b + scr_b


def encoder_z0_odernn_forward(data, time_steps, params, latent_dim,
                              max_chunk=64, max_batch_tile=256, max_unroll=8,
                              vmem_limit_bytes=48 * 1024 * 1024):
    """Forward pass. data: (n_traj, n_tp, n_dims), time_steps: (n_tp,)."""
    n_traj, n_tp, n_dims = data.shape
    n_units = params['uw1'].shape[1]
    L, U = latent_dim, n_units

    # --- tile-size selection -------------------------------------------------
    # Batch tile: pad to a multiple of 16 (bf16 (16,128) packing), cap at the
    # MXU-fill target; >=2 tiles appear naturally for large n_traj so the
    # "parallel" batch axis can shard across v7x's two TensorCores.
    bt = min(_round_up(n_traj, 16), max_batch_tile)
    # Time chunk: pad so the chunk never degenerates to T=1 for awkward n_tp.
    T = min(max_chunk, _round_up(n_tp, 8))
    budget = (3 * vmem_limit_bytes) // 4          # leave headroom under the scoped limit
    while _est_vmem_bytes(T, bt, n_dims, L, U) > budget and T > 8:
        T = max(8, T // 2)
    while _est_vmem_bytes(T, bt, n_dims, L, U) > budget and bt > 16:
        bt = max(16, bt // 2)

    n_traj_p = _round_up(n_traj, bt)
    n_bt = n_traj_p // bt
    n_tp_p = _round_up(n_tp, T)
    n_chunks = n_tp_p // T
    unroll = max(1, min(max_unroll, T))

    # --- data prep: time-major layout, precomputed obs-mask, zero padding ----
    data_tm = jnp.transpose(data.astype(jnp.float32), (1, 0, 2))   # (n_tp, n_traj, D)
    mask_tm = (data_tm[..., -1:] > 0.0).astype(jnp.float32)        # (n_tp, n_traj, 1)
    pad_t, pad_b = n_tp_p - n_tp, n_traj_p - n_traj
    data_tm = jnp.pad(data_tm, ((0, pad_t), (0, pad_b), (0, 0)))
    mask_tm = jnp.pad(mask_tm, ((0, pad_t), (0, pad_b), (0, 0)))
    data_bf = data_tm.astype(jnp.bfloat16)

    # dt[0] = 0.01 (torch: prev_t = time_steps[0] - 0.01), dt[i] = t_i - t_{i-1};
    # padded steps get dt=0 (and mask=0) so they are exact identity updates.
    time_steps = time_steps.astype(jnp.float32)
    dt = jnp.concatenate([jnp.full((1,), 0.01, jnp.float32),
                          time_steps[1:] - time_steps[:-1]])
    dt = jnp.pad(dt, (0, pad_t))

    weights = _fuse_params(params, latent_dim, n_units)

    def w_spec(w):
        return pl.BlockSpec(w.shape, lambda b, c, dt_ref: (0,) * w.ndim)

    in_specs = [
        pl.BlockSpec((T, bt, n_dims), lambda b, c, dt_ref: (c, b, 0)),
        pl.BlockSpec((T, bt, 1), lambda b, c, dt_ref: (c, b, 0)),
    ] + [w_spec(w) for w in weights]

    out_specs = (
        pl.BlockSpec((T, bt, latent_dim), lambda b, c, dt_ref: (c, b, 0)),
        pl.BlockSpec((bt, latent_dim), lambda b, c, dt_ref: (b, 0)),
    )

    grid_spec = pltpu.PrefetchScalarGridSpec(
        num_scalar_prefetch=1,
        grid=(n_bt, n_chunks),
        in_specs=in_specs,
        out_specs=out_specs,
        scratch_shapes=[
            pltpu.VMEM((bt, latent_dim), jnp.float32),          # carried hidden state
            pltpu.VMEM((T, bt, 3 * n_units), jnp.float32),      # hoisted x-projection
        ],
    )

    latent_ys_p, y_last_p = pl.pallas_call(
        functools.partial(_odernn_kernel, latent_dim, n_units, T, unroll),
        grid_spec=grid_spec,
        out_shape=(jax.ShapeDtypeStruct((n_tp_p, n_traj_p, latent_dim), jnp.bfloat16),
                   jax.ShapeDtypeStruct((n_traj_p, latent_dim), jnp.float32)),
        compiler_params=pltpu.CompilerParams(
            dimension_semantics=("parallel", "arbitrary"),  # batch parallel, time sequential
            vmem_limit_bytes=vmem_limit_bytes),
    )(dt, data_bf, mask_tm, *weights)

    mean_z0 = y_last_p[:n_traj]                                   # final yi, f32 (n_traj, L)
    # TODO(synk): std_z0 / sum_att_score / context_vector in the reference come
    # from the external attention-augmented z0_diffeq_solver state and a broken
    # unpack (last_yi_std); no in-module definition, so std_z0 is zeros.
    std_z0 = jnp.zeros_like(mean_z0)
    latent_ys_tm = latent_ys_p[:n_tp, :n_traj].astype(jnp.float32)
    # torch: latent_ys = torch.stack([yi (1, n_traj, L)], dim=1) -> (1, n_tp, n_traj, L)
    latent_ys = latent_ys_tm[None]
    return mean_z0, std_z0, latent_ys


if __name__ == "__main__":
    n_traj, n_tp, n_dims = 8, 8, 16
    latent_dim, n_gru_units = 32, 64

    key = jax.random.PRNGKey(0)
    k_vals, k_mask, k_params = jax.random.split(key, 3)

    vals = jax.random.normal(k_vals, (n_traj, n_tp, n_dims - 1), dtype=jnp.float32)
    obs_mask = (jax.random.uniform(k_mask, (n_traj, n_tp, 1)) > 0.3).astype(jnp.float32)
    data = jnp.concatenate([vals, obs_mask], axis=-1)        # last channel = mask
    time_steps = jnp.linspace(0.0, 1.0, n_tp).astype(jnp.float32)

    params = make_params(latent_dim, n_dims, n_gru_units, k_params)

    mean_z0, std_z0, latent_ys = encoder_z0_odernn_forward(
        data, time_steps, params, latent_dim)
    jax.block_until_ready((mean_z0, std_z0, latent_ys))

    assert mean_z0.shape == (n_traj, latent_dim)
    assert std_z0.shape == (n_traj, latent_dim)
    assert latent_ys.shape == (1, n_tp, n_traj, latent_dim)
    assert not bool(jnp.isnan(mean_z0).any())
    assert not bool(jnp.isnan(latent_ys).any())
    print("KERNEL_OK")
</pallas_src>

<mosaic_0001>
module attributes {stable_mosaic.version = 11 : i64} {
  func.func @_odernn_kernel(%arg0: i32, %arg1: i32, %arg2: memref<8xf32, #tpu.memory_space<smem>>, %arg3: memref<8x16x16xbf16, #tpu.memory_space<vmem>>, %arg4: memref<8x16x1xf32, #tpu.memory_space<vmem>>, %arg5: memref<32x32xbf16, #tpu.memory_space<vmem>>, %arg6: memref<1x32xf32, #tpu.memory_space<vmem>>, %arg7: memref<16x192xbf16, #tpu.memory_space<vmem>>, %arg8: memref<1x192xf32, #tpu.memory_space<vmem>>, %arg9: memref<32x128xbf16, #tpu.memory_space<vmem>>, %arg10: memref<32x64xbf16, #tpu.memory_space<vmem>>, %arg11: memref<128x64xbf16, #tpu.memory_space<vmem>>, %arg12: memref<1x64xf32, #tpu.memory_space<vmem>>, %arg13: memref<64x32xbf16, #tpu.memory_space<vmem>>, %arg14: memref<1x32xf32, #tpu.memory_space<vmem>>, %arg15: memref<8x16x32xbf16, #tpu.memory_space<vmem>>, %arg16: memref<16x32xf32, #tpu.memory_space<vmem>>, %arg17: memref<16x32xf32, #tpu.memory_space<vmem>>, %arg18: memref<8x16x192xf32, #tpu.memory_space<vmem>>) attributes {dimension_semantics = [#tpu.dimension_semantics<parallel>, #tpu.dimension_semantics<arbitrary>], iteration_bounds = array<i64: 1, 1>, scalar_prefetch = 1 : i64, scratch_operands = 2 : i64, tpu.core_type = #tpu.core_type<tc>, window_params = [{transform_indices = @transform_0, window_bounds = array<i64: 8, 16, 16>}, {transform_indices = @transform_1, window_bounds = array<i64: 8, 16, 1>}, {pipeline_mode = #tpu.pipeline_mode<synchronous>, transform_indices = @transform_2, window_bounds = array<i64: 32, 32>}, {pipeline_mode = #tpu.pipeline_mode<synchronous>, transform_indices = @transform_3, window_bounds = array<i64: 1, 32>}, {pipeline_mode = #tpu.pipeline_mode<synchronous>, transform_indices = @transform_4, window_bounds = array<i64: 16, 192>}, {pipeline_mode = #tpu.pipeline_mode<synchronous>, transform_indices = @transform_5, window_bounds = array<i64: 1, 192>}, {pipeline_mode = #tpu.pipeline_mode<synchronous>, transform_indices = @transform_6, window_bounds = array<i64: 32, 128>}, {pipeline_mode = #tpu.pipeline_mode<synchronous>, transform_indices = @transform_7, window_bounds = array<i64: 32, 64>}, {pipeline_mode = #tpu.pipeline_mode<synchronous>, transform_indices = @transform_8, window_bounds = array<i64: 128, 64>}, {pipeline_mode = #tpu.pipeline_mode<synchronous>, transform_indices = @transform_9, window_bounds = array<i64: 1, 64>}, {pipeline_mode = #tpu.pipeline_mode<synchronous>, transform_indices = @transform_10, window_bounds = array<i64: 64, 32>}, {pipeline_mode = #tpu.pipeline_mode<synchronous>, transform_indices = @transform_11, window_bounds = array<i64: 1, 32>}, {transform_indices = @transform_12, window_bounds = array<i64: 8, 16, 32>}, {transform_indices = @transform_13, window_bounds = array<i64: 16, 32>}]} {
    %c0_i32 = arith.constant 0 : i32
    %0 = arith.cmpi eq, %arg1, %c0_i32 : i32
    %1 = arith.extui %0 : i1 to i32
    %c0_i32_0 = arith.constant 0 : i32
    %2 = arith.cmpi ne, %1, %c0_i32_0 : i32
    scf.if %2 {
      %cst_209 = arith.constant 0.000000e+00 : f32
      %521 = vector.broadcast %cst_209 : f32 to vector<16x32xf32>
      %c0_210 = arith.constant 0 : index
      %c0_211 = arith.constant 0 : index
      %522 = vector.load %arg17[%c0_210, %c0_211] : memref<16x32xf32, #tpu.memory_space<vmem>>, vector<16x32xf32>
      tpu.vector_store %arg17[%c0_210, %c0_211], %521 {strides = array<i32>} : memref<16x32xf32, #tpu.memory_space<vmem>>, vector<16x32xf32>,
    } else {
    }
    %c0 = arith.constant 0 : index
    %c0_1 = arith.constant 0 : index
    %c0_2 = arith.constant 0 : index
    %3 = vector.load %arg3[%c0, %c0_1, %c0_2] : memref<8x16x16xbf16, #tpu.memory_space<vmem>>, vector<8x16x16xbf16>
    %4 = vector.shape_cast %3 : vector<8x16x16xbf16> to vector<128x16xbf16>
    %c0_3 = arith.constant 0 : index
    %c0_4 = arith.constant 0 : index
    %5 = vector.load %arg7[%c0_3, %c0_4] : memref<16x192xbf16, #tpu.memory_space<vmem>>, vector<16x192xbf16>
    %cst = arith.constant dense<0.000000e+00> : vector<128x192xf32>
    %6 = tpu.matmul %4, %5, %cst {dimension_numbers = #tpu.dot_dimension_numbers<[1], [0], [0], [1], [0, 0, 1, 1], [], []>} : vector<128x16xbf16>, vector<16x192xbf16>, vector<128x192xf32> -> vector<128x192xf32>
    %c0_5 = arith.constant 0 : index
    %c0_6 = arith.constant 0 : index
    %7 = vector.load %arg8[%c0_5, %c0_6] : memref<1x192xf32, #tpu.memory_space<vmem>>, vector<1x192xf32>
    %8 = vector.broadcast %7 : vector<1x192xf32> to vector<128x192xf32>
    %9 = arith.addf %6, %8 : vector<128x192xf32>
    %10 = vector.shape_cast %9 : vector<128x192xf32> to vector<8x16x192xf32>
    %c0_7 = arith.constant 0 : index
    %c0_8 = arith.constant 0 : index
    %c0_9 = arith.constant 0 : index
    %11 = vector.load %arg18[%c0_7, %c0_8, %c0_9] : memref<8x16x192xf32, #tpu.memory_space<vmem>>, vector<8x16x192xf32>
    tpu.vector_store %arg18[%c0_7, %c0_8, %c0_9], %10 {strides = array<i32>} : memref<8x16x192xf32, #tpu.memory_space<vmem>>, vector<8x16x192xf32>,
    %c0_10 = arith.constant 0 : index
    %c0_11 = arith.constant 0 : index
    %12 = vector.load %arg5[%c0_10, %c0_11] : memref<32x32xbf16, #tpu.memory_space<vmem>>, vector<32x32xbf16>
    %c0_12 = arith.constant 0 : index
    %c0_13 = arith.constant 0 : index
    %13 = vector.load %arg6[%c0_12, %c0_13] : memref<1x32xf32, #tpu.memory_space<vmem>>, vector<1x32xf32>
    %14 = vector.shape_cast %13 : vector<1x32xf32> to vector<1x32xf32>
    %15 = vector.broadcast %14 : vector<1x32xf32> to vector<16x32xf32>
    %c0_14 = arith.constant 0 : index
    %c0_15 = arith.constant 0 : index
    %16 = vector.load %arg12[%c0_14, %c0_15] : memref<1x64xf32, #tpu.memory_space<vmem>>, vector<1x64xf32>
    %17 = vector.shape_cast %16 : vector<1x64xf32> to vector<1x64xf32>
    %18 = vector.broadcast %17 : vector<1x64xf32> to vector<16x64xf32>
    %c0_16 = arith.constant 0 : index
    %c0_17 = arith.constant 0 : index
    %19 = vector.load %arg14[%c0_16, %c0_17] : memref<1x32xf32, #tpu.memory_space<vmem>>, vector<1x32xf32>
    %20 = vector.shape_cast %19 : vector<1x32xf32> to vector<1x32xf32>
    %21 = vector.broadcast %20 : vector<1x32xf32> to vector<16x32xf32>
    %c0_18 = arith.constant 0 : index
    %c0_19 = arith.constant 0 : index
    %22 = vector.load %arg17[%c0_18, %c0_19] : memref<16x32xf32, #tpu.memory_space<vmem>>, vector<16x32xf32>
    %c0_i32_20 = arith.constant 0 : i32
    %c8_i32 = arith.constant 8 : i32
    %23 = arith.muli %arg1, %c8_i32 : i32
    %24 = arith.addi %23, %c0_i32_20 : i32
    %25 = arith.index_cast %24 : i32 to index
    %26 = memref.load %arg2[%25] : memref<8xf32, #tpu.memory_space<smem>>
    %27 = arith.index_cast %c0_i32_20 : i32 to index
    %c0_21 = arith.constant 0 : index
    %c0_22 = arith.constant 0 : index
    %28 = vector.load %arg4[%27, %c0_21, %c0_22] : memref<8x16x1xf32, #tpu.memory_space<vmem>>, vector<1x16x1xf32>
    %29 = vector.shape_cast %28 : vector<1x16x1xf32> to vector<16x1xf32>
    %30 = arith.index_cast %c0_i32_20 : i32 to index
    %c0_23 = arith.constant 0 : index
    %c0_24 = arith.constant 0 : index
    %31 = vector.load %arg18[%30, %c0_23, %c0_24] : memref<8x16x192xf32, #tpu.memory_space<vmem>>, vector<1x16x192xf32>
    %32 = vector.shape_cast %31 : vector<1x16x192xf32> to vector<16x192xf32>
    %33 = arith.truncf %22 : vector<16x32xf32> to vector<16x32xbf16>
    %cst_25 = arith.constant dense<0.000000e+00> : vector<16x32xf32>
    %34 = tpu.matmul %33, %12, %cst_25 {dimension_numbers = #tpu.dot_dimension_numbers<[1], [0], [0], [1], [0, 0, 1, 1], [], []>} : vector<16x32xbf16>, vector<32x32xbf16>, vector<16x32xf32> -> vector<16x32xf32>
    %35 = arith.addf %34, %15 : vector<16x32xf32>
    %36 = math.tanh %35 : vector<16x32xf32>
    %37 = vector.broadcast %26 : f32 to vector<16x32xf32>
    %38 = arith.mulf %37, %36 : vector<16x32xf32>
    %39 = arith.addf %22, %38 : vector<16x32xf32>
    %40 = arith.truncf %39 : vector<16x32xf32> to vector<16x32xbf16>
    %c0_26 = arith.constant 0 : index
    %c0_27 = arith.constant 0 : index
    %41 = vector.load %arg9[%c0_26, %c0_27] : memref<32x128xbf16, #tpu.memory_space<vmem>>, vector<32x128xbf16>
    %cst_28 = arith.constant dense<0.000000e+00> : vector<16x128xf32>
    %42 = tpu.matmul %40, %41, %cst_28 {dimension_numbers = #tpu.dot_dimension_numbers<[1], [0], [0], [1], [0, 0, 1, 1], [], []>} : vector<16x32xbf16>, vector<32x128xbf16>, vector<16x128xf32> -> vector<16x128xf32>
    %43 = vector.extract_strided_slice %32 {offsets = [0, 0], sizes = [16, 128], strides = [1, 1]} : vector<16x192xf32> to vector<16x128xf32>
    %44 = arith.addf %42, %43 : vector<16x128xf32>
    %45 = math.tanh %44 : vector<16x128xf32>
    %46 = arith.truncf %45 : vector<16x128xf32> to vector<16x128xbf16>
    %c0_29 = arith.constant 0 : index
    %c0_30 = arith.constant 0 : index
    %47 = vector.load %arg11[%c0_29, %c0_30] : memref<128x64xbf16, #tpu.memory_space<vmem>>, vector<128x64xbf16>
    %cst_31 = arith.constant dense<0.000000e+00> : vector<16x64xf32>
    %48 = tpu.matmul %46, %47, %cst_31 {dimension_numbers = #tpu.dot_dimension_numbers<[1], [0], [0], [1], [0, 0, 1, 1], [], []>} : vector<16x128xbf16>, vector<128x64xbf16>, vector<16x64xf32> -> vector<16x64xf32>
    %49 = arith.addf %48, %18 : vector<16x64xf32>
    %50 = arith.negf %49 : vector<16x64xf32>
    %51 = math.exp %50 : vector<16x64xf32>
    %cst_32 = arith.constant 1.000000e+00 : f32
    %52 = vector.broadcast %cst_32 : f32 to vector<16x64xf32>
    %53 = arith.addf %52, %51 : vector<16x64xf32>
    %54 = arith.divf %52, %53 : vector<16x64xf32>
    %55 = vector.extract_strided_slice %54 {offsets = [0, 0], sizes = [16, 32], strides = [1, 1]} : vector<16x64xf32> to vector<16x32xf32>
    %56 = vector.extract_strided_slice %54 {offsets = [0, 32], sizes = [16, 32], strides = [1, 1]} : vector<16x64xf32> to vector<16x32xf32>
    %57 = arith.mulf %39, %56 : vector<16x32xf32>
    %58 = arith.truncf %57 : vector<16x32xf32> to vector<16x32xbf16>
    %c0_33 = arith.constant 0 : index
    %c0_34 = arith.constant 0 : index
    %59 = vector.load %arg10[%c0_33, %c0_34] : memref<32x64xbf16, #tpu.memory_space<vmem>>, vector<32x64xbf16>
    %cst_35 = arith.constant dense<0.000000e+00> : vector<16x64xf32>
    %60 = tpu.matmul %58, %59, %cst_35 {dimension_numbers = #tpu.dot_dimension_numbers<[1], [0], [0], [1], [0, 0, 1, 1], [], []>} : vector<16x32xbf16>, vector<32x64xbf16>, vector<16x64xf32> -> vector<16x64xf32>
    %61 = vector.extract_strided_slice %32 {offsets = [0, 128], sizes = [16, 64], strides = [1, 1]} : vector<16x192xf32> to vector<16x64xf32>
    %62 = arith.addf %60, %61 : vector<16x64xf32>
    %63 = math.tanh %62 : vector<16x64xf32>
    %64 = arith.truncf %63 : vector<16x64xf32> to vector<16x64xbf16>
    %c0_36 = arith.constant 0 : index
    %c0_37 = arith.constant 0 : index
    %65 = vector.load %arg13[%c0_36, %c0_37] : memref<64x32xbf16, #tpu.memory_space<vmem>>, vector<64x32xbf16>
    %cst_38 = arith.constant dense<0.000000e+00> : vector<16x32xf32>
    %66 = tpu.matmul %64, %65, %cst_38 {dimension_numbers = #tpu.dot_dimension_numbers<[1], [0], [0], [1], [0, 0, 1, 1], [], []>} : vector<16x64xbf16>, vector<64x32xbf16>, vector<16x32xf32> -> vector<16x32xf32>
    %67 = arith.addf %66, %21 : vector<16x32xf32>
    %cst_39 = arith.constant 1.000000e+00 : f32
    %68 = vector.broadcast %cst_39 : f32 to vector<16x32xf32>
    %69 = arith.subf %68, %55 : vector<16x32xf32>
    %70 = arith.mulf %69, %67 : vector<16x32xf32>
    %71 = arith.mulf %55, %39 : vector<16x32xf32>
    %72 = arith.addf %70, %71 : vector<16x32xf32>
    %73 = vector.broadcast %29 : vector<16x1xf32> to vector<16x32xf32>
    %74 = arith.mulf %73, %72 : vector<16x32xf32>
    %cst_40 = arith.constant 1.000000e+00 : f32
    %75 = vector.broadcast %cst_40 : f32 to vector<16x1xf32>
    %76 = arith.subf %75, %29 : vector<16x1xf32>
    %77 = vector.broadcast %76 : vector<16x1xf32> to vector<16x32xf32>
    %78 = arith.mulf %77, %39 : vector<16x32xf32>
    %79 = arith.addf %74, %78 : vector<16x32xf32>
    %80 = arith.truncf %79 : vector<16x32xf32> to vector<16x32xbf16>
    %81 = arith.index_cast %c0_i32_20 : i32 to index
    %c0_41 = arith.constant 0 : index
    %c0_42 = arith.constant 0 : index
    %82 = vector.load %arg15[%81, %c0_41, %c0_42] : memref<8x16x32xbf16, #tpu.memory_space<vmem>>, vector<1x16x32xbf16>
    %83 = vector.shape_cast %82 : vector<1x16x32xbf16> to vector<16x32xbf16>
    %84 = vector.shape_cast %80 : vector<16x32xbf16> to vector<1x16x32xbf16>
    tpu.vector_store %arg15[%81, %c0_41, %c0_42], %84 {strides = array<i32>} : memref<8x16x32xbf16, #tpu.memory_space<vmem>>, vector<1x16x32xbf16>,
    %c1_i32 = arith.constant 1 : i32
    %c8_i32_43 = arith.constant 8 : i32
    %85 = arith.muli %arg1, %c8_i32_43 : i32
    %86 = arith.addi %85, %c1_i32 : i32
    %87 = arith.index_cast %86 : i32 to index
    %88 = memref.load %arg2[%87] : memref<8xf32, #tpu.memory_space<smem>>
    %89 = arith.index_cast %c1_i32 : i32 to index
    %c0_44 = arith.constant 0 : index
    %c0_45 = arith.constant 0 : index
    %90 = vector.load %arg4[%89, %c0_44, %c0_45] : memref<8x16x1xf32, #tpu.memory_space<vmem>>, vector<1x16x1xf32>
    %91 = vector.shape_cast %90 : vector<1x16x1xf32> to vector<16x1xf32>
    %92 = arith.index_cast %c1_i32 : i32 to index
    %c0_46 = arith.constant 0 : index
    %c0_47 = arith.constant 0 : index
    %93 = vector.load %arg18[%92, %c0_46, %c0_47] : memref<8x16x192xf32, #tpu.memory_space<vmem>>, vector<1x16x192xf32>
    %94 = vector.shape_cast %93 : vector<1x16x192xf32> to vector<16x192xf32>
    %95 = arith.truncf %79 : vector<16x32xf32> to vector<16x32xbf16>
    %cst_48 = arith.constant dense<0.000000e+00> : vector<16x32xf32>
    %96 = tpu.matmul %95, %12, %cst_48 {dimension_numbers = #tpu.dot_dimension_numbers<[1], [0], [0], [1], [0, 0, 1, 1], [], []>} : vector<16x32xbf16>, vector<32x32xbf16>, vector<16x32xf32> -> vector<16x32xf32>
    %97 = arith.addf %96, %15 : vector<16x32xf32>
    %98 = math.tanh %97 : vector<16x32xf32>
    %99 = vector.broadcast %88 : f32 to vector<16x32xf32>
    %100 = arith.mulf %99, %98 : vector<16x32xf32>
    %101 = arith.addf %79, %100 : vector<16x32xf32>
    %102 = arith.truncf %101 : vector<16x32xf32> to vector<16x32xbf16>
    %c0_49 = arith.constant 0 : index
    %c0_50 = arith.constant 0 : index
    %103 = vector.load %arg9[%c0_49, %c0_50] : memref<32x128xbf16, #tpu.memory_space<vmem>>, vector<32x128xbf16>
    %cst_51 = arith.constant dense<0.000000e+00> : vector<16x128xf32>
    %104 = tpu.matmul %102, %103, %cst_51 {dimension_numbers = #tpu.dot_dimension_numbers<[1], [0], [0], [1], [0, 0, 1, 1], [], []>} : vector<16x32xbf16>, vector<32x128xbf16>, vector<16x128xf32> -> vector<16x128xf32>
    %105 = vector.extract_strided_slice %94 {offsets = [0, 0], sizes = [16, 128], strides = [1, 1]} : vector<16x192xf32> to vector<16x128xf32>
    %106 = arith.addf %104, %105 : vector<16x128xf32>
    %107 = math.tanh %106 : vector<16x128xf32>
    %108 = arith.truncf %107 : vector<16x128xf32> to vector<16x128xbf16>
    %c0_52 = arith.constant 0 : index
    %c0_53 = arith.constant 0 : index
    %109 = vector.load %arg11[%c0_52, %c0_53] : memref<128x64xbf16, #tpu.memory_space<vmem>>, vector<128x64xbf16>
    %cst_54 = arith.constant dense<0.000000e+00> : vector<16x64xf32>
    %110 = tpu.matmul %108, %109, %cst_54 {dimension_numbers = #tpu.dot_dimension_numbers<[1], [0], [0], [1], [0, 0, 1, 1], [], []>} : vector<16x128xbf16>, vector<128x64xbf16>, vector<16x64xf32> -> vector<16x64xf32>
    %111 = arith.addf %110, %18 : vector<16x64xf32>
    %112 = arith.negf %111 : vector<16x64xf32>
    %113 = math.exp %112 : vector<16x64xf32>
    %cst_55 = arith.constant 1.000000e+00 : f32
    %114 = vector.broadcast %cst_55 : f32 to vector<16x64xf32>
    %115 = arith.addf %114, %113 : vector<16x64xf32>
    %116 = arith.divf %114, %115 : vector<16x64xf32>
    %117 = vector.extract_strided_slice %116 {offsets = [0, 0], sizes = [16, 32], strides = [1, 1]} : vector<16x64xf32> to vector<16x32xf32>
    %118 = vector.extract_strided_slice %116 {offsets = [0, 32], sizes = [16, 32], strides = [1, 1]} : vector<16x64xf32> to vector<16x32xf32>
    %119 = arith.mulf %101, %118 : vector<16x32xf32>
    %120 = arith.truncf %119 : vector<16x32xf32> to vector<16x32xbf16>
    %c0_56 = arith.constant 0 : index
    %c0_57 = arith.constant 0 : index
    %121 = vector.load %arg10[%c0_56, %c0_57] : memref<32x64xbf16, #tpu.memory_space<vmem>>, vector<32x64xbf16>
    %cst_58 = arith.constant dense<0.000000e+00> : vector<16x64xf32>
    %122 = tpu.matmul %120, %121, %cst_58 {dimension_numbers = #tpu.dot_dimension_numbers<[1], [0], [0], [1], [0, 0, 1, 1], [], []>} : vector<16x32xbf16>, vector<32x64xbf16>, vector<16x64xf32> -> vector<16x64xf32>
    %123 = vector.extract_strided_slice %94 {offsets = [0, 128], sizes = [16, 64], strides = [1, 1]} : vector<16x192xf32> to vector<16x64xf32>
    %124 = arith.addf %122, %123 : vector<16x64xf32>
    %125 = math.tanh %124 : vector<16x64xf32>
    %126 = arith.truncf %125 : vector<16x64xf32> to vector<16x64xbf16>
    %c0_59 = arith.constant 0 : index
    %c0_60 = arith.constant 0 : index
    %127 = vector.load %arg13[%c0_59, %c0_60] : memref<64x32xbf16, #tpu.memory_space<vmem>>, vector<64x32xbf16>
    %cst_61 = arith.constant dense<0.000000e+00> : vector<16x32xf32>
    %128 = tpu.matmul %126, %127, %cst_61 {dimension_numbers = #tpu.dot_dimension_numbers<[1], [0], [0], [1], [0, 0, 1, 1], [], []>} : vector<16x64xbf16>, vector<64x32xbf16>, vector<16x32xf32> -> vector<16x32xf32>
    %129 = arith.addf %128, %21 : vector<16x32xf32>
    %cst_62 = arith.constant 1.000000e+00 : f32
    %130 = vector.broadcast %cst_62 : f32 to vector<16x32xf32>
    %131 = arith.subf %130, %117 : vector<16x32xf32>
    %132 = arith.mulf %131, %129 : vector<16x32xf32>
    %133 = arith.mulf %117, %101 : vector<16x32xf32>
    %134 = arith.addf %132, %133 : vector<16x32xf32>
    %135 = vector.broadcast %91 : vector<16x1xf32> to vector<16x32xf32>
    %136 = arith.mulf %135, %134 : vector<16x32xf32>
    %cst_63 = arith.constant 1.000000e+00 : f32
    %137 = vector.broadcast %cst_63 : f32 to vector<16x1xf32>
    %138 = arith.subf %137, %91 : vector<16x1xf32>
    %139 = vector.broadcast %138 : vector<16x1xf32> to vector<16x32xf32>
    %140 = arith.mulf %139, %101 : vector<16x32xf32>
    %141 = arith.addf %136, %140 : vector<16x32xf32>
    %142 = arith.truncf %141 : vector<16x32xf32> to vector<16x32xbf16>
    %143 = arith.index_cast %c1_i32 : i32 to index
    %c0_64 = arith.constant 0 : index
    %c0_65 = arith.constant 0 : index
    %144 = vector.load %arg15[%143, %c0_64, %c0_65] : memref<8x16x32xbf16, #tpu.memory_space<vmem>>, vector<1x16x32xbf16>
    %145 = vector.shape_cast %144 : vector<1x16x32xbf16> to vector<16x32xbf16>
    %146 = vector.shape_cast %142 : vector<16x32xbf16> to vector<1x16x32xbf16>
    tpu.vector_store %arg15[%143, %c0_64, %c0_65], %146 {strides = array<i32>} : memref<8x16x32xbf16, #tpu.memory_space<vmem>>, vector<1x16x32xbf16>,
    %c2_i32 = arith.constant 2 : i32
    %c8_i32_66 = arith.constant 8 : i32
    %147 = arith.muli %arg1, %c8_i32_66 : i32
    %148 = arith.addi %147, %c2_i32 : i32
    %149 = arith.index_cast %148 : i32 to index
    %150 = memref.load %arg2[%149] : memref<8xf32, #tpu.memory_space<smem>>
    %151 = arith.index_cast %c2_i32 : i32 to index
    %c0_67 = arith.constant 0 : index
    %c0_68 = arith.constant 0 : index
    %152 = vector.load %arg4[%151, %c0_67, %c0_68] : memref<8x16x1xf32, #tpu.memory_space<vmem>>, vector<1x16x1xf32>
    %153 = vector.shape_cast %152 : vector<1x16x1xf32> to vector<16x1xf32>
    %154 = arith.index_cast %c2_i32 : i32 to index
    %c0_69 = arith.constant 0 : index
    %c0_70 = arith.constant 0 : index
    %155 = vector.load %arg18[%154, %c0_69, %c0_70] : memref<8x16x192xf32, #tpu.memory_space<vmem>>, vector<1x16x192xf32>
    %156 = vector.shape_cast %155 : vector<1x16x192xf32> to vector<16x192xf32>
    %157 = arith.truncf %141 : vector<16x32xf32> to vector<16x32xbf16>
    %cst_71 = arith.constant dense<0.000000e+00> : vector<16x32xf32>
    %158 = tpu.matmul %157, %12, %cst_71 {dimension_numbers = #tpu.dot_dimension_numbers<[1], [0], [0], [1], [0, 0, 1, 1], [], []>} : vector<16x32xbf16>, vector<32x32xbf16>, vector<16x32xf32> -> vector<16x32xf32>
    %159 = arith.addf %158, %15 : vector<16x32xf32>
    %160 = math.tanh %159 : vector<16x32xf32>
    %161 = vector.broadcast %150 : f32 to vector<16x32xf32>
    %162 = arith.mulf %161, %160 : vector<16x32xf32>
    %163 = arith.addf %141, %162 : vector<16x32xf32>
    %164 = arith.truncf %163 : vector<16x32xf32> to vector<16x32xbf16>
    %c0_72 = arith.constant 0 : index
    %c0_73 = arith.constant 0 : index
    %165 = vector.load %arg9[%c0_72, %c0_73] : memref<32x128xbf16, #tpu.memory_space<vmem>>, vector<32x128xbf16>
    %cst_74 = arith.constant dense<0.000000e+00> : vector<16x128xf32>
    %166 = tpu.matmul %164, %165, %cst_74 {dimension_numbers = #tpu.dot_dimension_numbers<[1], [0], [0], [1], [0, 0, 1, 1], [], []>} : vector<16x32xbf16>, vector<32x128xbf16>, vector<16x128xf32> -> vector<16x128xf32>
    %167 = vector.extract_strided_slice %156 {offsets = [0, 0], sizes = [16, 128], strides = [1, 1]} : vector<16x192xf32> to vector<16x128xf32>
    %168 = arith.addf %166, %167 : vector<16x128xf32>
    %169 = math.tanh %168 : vector<16x128xf32>
    %170 = arith.truncf %169 : vector<16x128xf32> to vector<16x128xbf16>
    %c0_75 = arith.constant 0 : index
    %c0_76 = arith.constant 0 : index
    %171 = vector.load %arg11[%c0_75, %c0_76] : memref<128x64xbf16, #tpu.memory_space<vmem>>, vector<128x64xbf16>
    %cst_77 = arith.constant dense<0.000000e+00> : vector<16x64xf32>
    %172 = tpu.matmul %170, %171, %cst_77 {dimension_numbers = #tpu.dot_dimension_numbers<[1], [0], [0], [1], [0, 0, 1, 1], [], []>} : vector<16x128xbf16>, vector<128x64xbf16>, vector<16x64xf32> -> vector<16x64xf32>
    %173 = arith.addf %172, %18 : vector<16x64xf32>
    %174 = arith.negf %173 : vector<16x64xf32>
    %175 = math.exp %174 : vector<16x64xf32>
    %cst_78 = arith.constant 1.000000e+00 : f32
    %176 = vector.broadcast %cst_78 : f32 to vector<16x64xf32>
    %177 = arith.addf %176, %175 : vector<16x64xf32>
    %178 = arith.divf %176, %177 : vector<16x64xf32>
    %179 = vector.extract_strided_slice %178 {offsets = [0, 0], sizes = [16, 32], strides = [1, 1]} : vector<16x64xf32> to vector<16x32xf32>
    %180 = vector.extract_strided_slice %178 {offsets = [0, 32], sizes = [16, 32], strides = [1, 1]} : vector<16x64xf32> to vector<16x32xf32>
    %181 = arith.mulf %163, %180 : vector<16x32xf32>
    %182 = arith.truncf %181 : vector<16x32xf32> to vector<16x32xbf16>
    %c0_79 = arith.constant 0 : index
    %c0_80 = arith.constant 0 : index
    %183 = vector.load %arg10[%c0_79, %c0_80] : memref<32x64xbf16, #tpu.memory_space<vmem>>, vector<32x64xbf16>
    %cst_81 = arith.constant dense<0.000000e+00> : vector<16x64xf32>
    %184 = tpu.matmul %182, %183, %cst_81 {dimension_numbers = #tpu.dot_dimension_numbers<[1], [0], [0], [1], [0, 0, 1, 1], [], []>} : vector<16x32xbf16>, vector<32x64xbf16>, vector<16x64xf32> -> vector<16x64xf32>
    %185 = vector.extract_strided_slice %156 {offsets = [0, 128], sizes = [16, 64], strides = [1, 1]} : vector<16x192xf32> to vector<16x64xf32>
    %186 = arith.addf %184, %185 : vector<16x64xf32>
    %187 = math.tanh %186 : vector<16x64xf32>
    %188 = arith.truncf %187 : vector<16x64xf32> to vector<16x64xbf16>
    %c0_82 = arith.constant 0 : index
    %c0_83 = arith.constant 0 : index
    %189 = vector.load %arg13[%c0_82, %c0_83] : memref<64x32xbf16, #tpu.memory_space<vmem>>, vector<64x32xbf16>
    %cst_84 = arith.constant dense<0.000000e+00> : vector<16x32xf32>
    %190 = tpu.matmul %188, %189, %cst_84 {dimension_numbers = #tpu.dot_dimension_numbers<[1], [0], [0], [1], [0, 0, 1, 1], [], []>} : vector<16x64xbf16>, vector<64x32xbf16>, vector<16x32xf32> -> vector<16x32xf32>
    %191 = arith.addf %190, %21 : vector<16x32xf32>
    %cst_85 = arith.constant 1.000000e+00 : f32
    %192 = vector.broadcast %cst_85 : f32 to vector<16x32xf32>
    %193 = arith.subf %192, %179 : vector<16x32xf32>
    %194 = arith.mulf %193, %191 : vector<16x32xf32>
    %195 = arith.mulf %179, %163 : vector<16x32xf32>
    %196 = arith.addf %194, %195 : vector<16x32xf32>
    %197 = vector.broadcast %153 : vector<16x1xf32> to vector<16x32xf32>
    %198 = arith.mulf %197, %196 : vector<16x32xf32>
    %cst_86 = arith.constant 1.000000e+00 : f32
    %199 = vector.broadcast %cst_86 : f32 to vector<16x1xf32>
    %200 = arith.subf %199, %153 : vector<16x1xf32>
    %201 = vector.broadcast %200 : vector<16x1xf32> to vector<16x32xf32>
    %202 = arith.mulf %201, %163 : vector<16x32xf32>
    %203 = arith.addf %198, %202 : vector<16x32xf32>
    %204 = arith.truncf %203 : vector<16x32xf32> to vector<16x32xbf16>
    %205 = arith.index_cast %c2_i32 : i32 to index
    %c0_87 = arith.constant 0 : index
    %c0_88 = arith.constant 0 : index
    %206 = vector.load %arg15[%205, %c0_87, %c0_88] : memref<8x16x32xbf16, #tpu.memory_space<vmem>>, vector<1x16x32xbf16>
    %207 = vector.shape_cast %206 : vector<1x16x32xbf16> to vector<16x32xbf16>
    %208 = vector.shape_cast %204 : vector<16x32xbf16> to vector<1x16x32xbf16>
    tpu.vector_store %arg15[%205, %c0_87, %c0_88], %208 {strides = array<i32>} : memref<8x16x32xbf16, #tpu.memory_space<vmem>>, vector<1x16x32xbf16>,
    %c3_i32 = arith.constant 3 : i32
    %c8_i32_89 = arith.constant 8 : i32
    %209 = arith.muli %arg1, %c8_i32_89 : i32
    %210 = arith.addi %209, %c3_i32 : i32
    %211 = arith.index_cast %210 : i32 to index
    %212 = memref.load %arg2[%211] : memref<8xf32, #tpu.memory_space<smem>>
    %213 = arith.index_cast %c3_i32 : i32 to index
    %c0_90 = arith.constant 0 : index
    %c0_91 = arith.constant 0 : index
    %214 = vector.load %arg4[%213, %c0_90, %c0_91] : memref<8x16x1xf32, #tpu.memory_space<vmem>>, vector<1x16x1xf32>
    %215 = vector.shape_cast %214 : vector<1x16x1xf32> to vector<16x1xf32>
    %216 = arith.index_cast %c3_i32 : i32 to index
    %c0_92 = arith.constant 0 : index
    %c0_93 = arith.constant 0 : index
    %217 = vector.load %arg18[%216, %c0_92, %c0_93] : memref<8x16x192xf32, #tpu.memory_space<vmem>>, vector<1x16x192xf32>
    %218 = vector.shape_cast %217 : vector<1x16x192xf32> to vector<16x192xf32>
    %219 = arith.truncf %203 : vector<16x32xf32> to vector<16x32xbf16>
    %cst_94 = arith.constant dense<0.000000e+00> : vector<16x32xf32>
    %220 = tpu.matmul %219, %12, %cst_94 {dimension_numbers = #tpu.dot_dimension_numbers<[1], [0], [0], [1], [0, 0, 1, 1], [], []>} : vector<16x32xbf16>, vector<32x32xbf16>, vector<16x32xf32> -> vector<16x32xf32>
    %221 = arith.addf %220, %15 : vector<16x32xf32>
    %222 = math.tanh %221 : vector<16x32xf32>
    %223 = vector.broadcast %212 : f32 to vector<16x32xf32>
    %224 = arith.mulf %223, %222 : vector<16x32xf32>
    %225 = arith.addf %203, %224 : vector<16x32xf32>
    %226 = arith.truncf %225 : vector<16x32xf32> to vector<16x32xbf16>
    %c0_95 = arith.constant 0 : index
    %c0_96 = arith.constant 0 : index
    %227 = vector.load %arg9[%c0_95, %c0_96] : memref<32x128xbf16, #tpu.memory_space<vmem>>, vector<32x128xbf16>
    %cst_97 = arith.constant dense<0.000000e+00> : vector<16x128xf32>
    %228 = tpu.matmul %226, %227, %cst_97 {dimension_numbers = #tpu.dot_dimension_numbers<[1], [0], [0], [1], [0, 0, 1, 1], [], []>} : vector<16x32xbf16>, vector<32x128xbf16>, vector<16x128xf32> -> vector<16x128xf32>
    %229 = vector.extract_strided_slice %218 {offsets = [0, 0], sizes = [16, 128], strides = [1, 1]} : vector<16x192xf32> to vector<16x128xf32>
    %230 = arith.addf %228, %229 : vector<16x128xf32>
    %231 = math.tanh %230 : vector<16x128xf32>
    %232 = arith.truncf %231 : vector<16x128xf32> to vector<16x128xbf16>
    %c0_98 = arith.constant 0 : index
    %c0_99 = arith.constant 0 : index
    %233 = vector.load %arg11[%c0_98, %c0_99] : memref<128x64xbf16, #tpu.memory_space<vmem>>, vector<128x64xbf16>
    %cst_100 = arith.constant dense<0.000000e+00> : vector<16x64xf32>
    %234 = tpu.matmul %232, %233, %cst_100 {dimension_numbers = #tpu.dot_dimension_numbers<[1], [0], [0], [1], [0, 0, 1, 1], [], []>} : vector<16x128xbf16>, vector<128x64xbf16>, vector<16x64xf32> -> vector<16x64xf32>
    %235 = arith.addf %234, %18 : vector<16x64xf32>
    %236 = arith.negf %235 : vector<16x64xf32>
    %237 = math.exp %236 : vector<16x64xf32>
    %cst_101 = arith.constant 1.000000e+00 : f32
    %238 = vector.broadcast %cst_101 : f32 to vector<16x64xf32>
    %239 = arith.addf %238, %237 : vector<16x64xf32>
    %240 = arith.divf %238, %239 : vector<16x64xf32>
    %241 = vector.extract_strided_slice %240 {offsets = [0, 0], sizes = [16, 32], strides = [1, 1]} : vector<16x64xf32> to vector<16x32xf32>
    %242 = vector.extract_strided_slice %240 {offsets = [0, 32], sizes = [16, 32], strides = [1, 1]} : vector<16x64xf32> to vector<16x32xf32>
    %243 = arith.mulf %225, %242 : vector<16x32xf32>
    %244 = arith.truncf %243 : vector<16x32xf32> to vector<16x32xbf16>
    %c0_102 = arith.constant 0 : index
    %c0_103 = arith.constant 0 : index
    %245 = vector.load %arg10[%c0_102, %c0_103] : memref<32x64xbf16, #tpu.memory_space<vmem>>, vector<32x64xbf16>
    %cst_104 = arith.constant dense<0.000000e+00> : vector<16x64xf32>
    %246 = tpu.matmul %244, %245, %cst_104 {dimension_numbers = #tpu.dot_dimension_numbers<[1], [0], [0], [1], [0, 0, 1, 1], [], []>} : vector<16x32xbf16>, vector<32x64xbf16>, vector<16x64xf32> -> vector<16x64xf32>
    %247 = vector.extract_strided_slice %218 {offsets = [0, 128], sizes = [16, 64], strides = [1, 1]} : vector<16x192xf32> to vector<16x64xf32>
    %248 = arith.addf %246, %247 : vector<16x64xf32>
    %249 = math.tanh %248 : vector<16x64xf32>
    %250 = arith.truncf %249 : vector<16x64xf32> to vector<16x64xbf16>
    %c0_105 = arith.constant 0 : index
    %c0_106 = arith.constant 0 : index
    %251 = vector.load %arg13[%c0_105, %c0_106] : memref<64x32xbf16, #tpu.memory_space<vmem>>, vector<64x32xbf16>
    %cst_107 = arith.constant dense<0.000000e+00> : vector<16x32xf32>
    %252 = tpu.matmul %250, %251, %cst_107 {dimension_numbers = #tpu.dot_dimension_numbers<[1], [0], [0], [1], [0, 0, 1, 1], [], []>} : vector<16x64xbf16>, vector<64x32xbf16>, vector<16x32xf32> -> vector<16x32xf32>
    %253 = arith.addf %252, %21 : vector<16x32xf32>
    %cst_108 = arith.constant 1.000000e+00 : f32
    %254 = vector.broadcast %cst_108 : f32 to vector<16x32xf32>
    %255 = arith.subf %254, %241 : vector<16x32xf32>
    %256 = arith.mulf %255, %253 : vector<16x32xf32>
    %257 = arith.mulf %241, %225 : vector<16x32xf32>
    %258 = arith.addf %256, %257 : vector<16x32xf32>
    %259 = vector.broadcast %215 : vector<16x1xf32> to vector<16x32xf32>
    %260 = arith.mulf %259, %258 : vector<16x32xf32>
    %cst_109 = arith.constant 1.000000e+00 : f32
    %261 = vector.broadcast %cst_109 : f32 to vector<16x1xf32>
    %262 = arith.subf %261, %215 : vector<16x1xf32>
    %263 = vector.broadcast %262 : vector<16x1xf32> to vector<16x32xf32>
    %264 = arith.mulf %263, %225 : vector<16x32xf32>
    %265 = arith.addf %260, %264 : vector<16x32xf32>
    %266 = arith.truncf %265 : vector<16x32xf32> to vector<16x32xbf16>
    %267 = arith.index_cast %c3_i32 : i32 to index
    %c0_110 = arith.constant 0 : index
    %c0_111 = arith.constant 0 : index
    %268 = vector.load %arg15[%267, %c0_110, %c0_111] : memref<8x16x32xbf16, #tpu.memory_space<vmem>>, vector<1x16x32xbf16>
    %269 = vector.shape_cast %268 : vector<1x16x32xbf16> to vector<16x32xbf16>
    %270 = vector.shape_cast %266 : vector<16x32xbf16> to vector<1x16x32xbf16>
    tpu.vector_store %arg15[%267, %c0_110, %c0_111], %270 {strides = array<i32>} : memref<8x16x32xbf16, #tpu.memory_space<vmem>>, vector<1x16x32xbf16>,
    %c4_i32 = arith.constant 4 : i32
    %c8_i32_112 = arith.constant 8 : i32
    %271 = arith.muli %arg1, %c8_i32_112 : i32
    %272 = arith.addi %271, %c4_i32 : i32
    %273 = arith.index_cast %272 : i32 to index
    %274 = memref.load %arg2[%273] : memref<8xf32, #tpu.memory_space<smem>>
    %275 = arith.index_cast %c4_i32 : i32 to index
    %c0_113 = arith.constant 0 : index
    %c0_114 = arith.constant 0 : index
    %276 = vector.load %arg4[%275, %c0_113, %c0_114] : memref<8x16x1xf32, #tpu.memory_space<vmem>>, vector<1x16x1xf32>
    %277 = vector.shape_cast %276 : vector<1x16x1xf32> to vector<16x1xf32>
    %278 = arith.index_cast %c4_i32 : i32 to index
    %c0_115 = arith.constant 0 : index
    %c0_116 = arith.constant 0 : index
    %279 = vector.load %arg18[%278, %c0_115, %c0_116] : memref<8x16x192xf32, #tpu.memory_space<vmem>>, vector<1x16x192xf32>
    %280 = vector.shape_cast %279 : vector<1x16x192xf32> to vector<16x192xf32>
    %281 = arith.truncf %265 : vector<16x32xf32> to vector<16x32xbf16>
    %cst_117 = arith.constant dense<0.000000e+00> : vector<16x32xf32>
    %282 = tpu.matmul %281, %12, %cst_117 {dimension_numbers = #tpu.dot_dimension_numbers<[1], [0], [0], [1], [0, 0, 1, 1], [], []>} : vector<16x32xbf16>, vector<32x32xbf16>, vector<16x32xf32> -> vector<16x32xf32>
    %283 = arith.addf %282, %15 : vector<16x32xf32>
    %284 = math.tanh %283 : vector<16x32xf32>
    %285 = vector.broadcast %274 : f32 to vector<16x32xf32>
    %286 = arith.mulf %285, %284 : vector<16x32xf32>
    %287 = arith.addf %265, %286 : vector<16x32xf32>
    %288 = arith.truncf %287 : vector<16x32xf32> to vector<16x32xbf16>
    %c0_118 = arith.constant 0 : index
    %c0_119 = arith.constant 0 : index
    %289 = vector.load %arg9[%c0_118, %c0_119] : memref<32x128xbf16, #tpu.memory_space<vmem>>, vector<32x128xbf16>
    %cst_120 = arith.constant dense<0.000000e+00> : vector<16x128xf32>
    %290 = tpu.matmul %288, %289, %cst_120 {dimension_numbers = #tpu.dot_dimension_numbers<[1], [0], [0], [1], [0, 0, 1, 1], [], []>} : vector<16x32xbf16>, vector<32x128xbf16>, vector<16x128xf32> -> vector<16x128xf32>
    %291 = vector.extract_strided_slice %280 {offsets = [0, 0], sizes = [16, 128], strides = [1, 1]} : vector<16x192xf32> to vector<16x128xf32>
    %292 = arith.addf %290, %291 : vector<16x128xf32>
    %293 = math.tanh %292 : vector<16x128xf32>
    %294 = arith.truncf %293 : vector<16x128xf32> to vector<16x128xbf16>
    %c0_121 = arith.constant 0 : index
    %c0_122 = arith.constant 0 : index
    %295 = vector.load %arg11[%c0_121, %c0_122] : memref<128x64xbf16, #tpu.memory_space<vmem>>, vector<128x64xbf16>
    %cst_123 = arith.constant dense<0.000000e+00> : vector<16x64xf32>
    %296 = tpu.matmul %294, %295, %cst_123 {dimension_numbers = #tpu.dot_dimension_numbers<[1], [0], [0], [1], [0, 0, 1, 1], [], []>} : vector<16x128xbf16>, vector<128x64xbf16>, vector<16x64xf32> -> vector<16x64xf32>
    %297 = arith.addf %296, %18 : vector<16x64xf32>
    %298 = arith.negf %297 : vector<16x64xf32>
    %299 = math.exp %298 : vector<16x64xf32>
    %cst_124 = arith.constant 1.000000e+00 : f32
    %300 = vector.broadcast %cst_124 : f32 to vector<16x64xf32>
    %301 = arith.addf %300, %299 : vector<16x64xf32>
    %302 = arith.divf %300, %301 : vector<16x64xf32>
    %303 = vector.extract_strided_slice %302 {offsets = [0, 0], sizes = [16, 32], strides = [1, 1]} : vector<16x64xf32> to vector<16x32xf32>
    %304 = vector.extract_strided_slice %302 {offsets = [0, 32], sizes = [16, 32], strides = [1, 1]} : vector<16x64xf32> to vector<16x32xf32>
    %305 = arith.mulf %287, %304 : vector<16x32xf32>
    %306 = arith.truncf %305 : vector<16x32xf32> to vector<16x32xbf16>
    %c0_125 = arith.constant 0 : index
    %c0_126 = arith.constant 0 : index
    %307 = vector.load %arg10[%c0_125, %c0_126] : memref<32x64xbf16, #tpu.memory_space<vmem>>, vector<32x64xbf16>
    %cst_127 = arith.constant dense<0.000000e+00> : vector<16x64xf32>
    %308 = tpu.matmul %306, %307, %cst_127 {dimension_numbers = #tpu.dot_dimension_numbers<[1], [0], [0], [1], [0, 0, 1, 1], [], []>} : vector<16x32xbf16>, vector<32x64xbf16>, vector<16x64xf32> -> vector<16x64xf32>
    %309 = vector.extract_strided_slice %280 {offsets = [0, 128], sizes = [16, 64], strides = [1, 1]} : vector<16x192xf32> to vector<16x64xf32>
    %310 = arith.addf %308, %309 : vector<16x64xf32>
    %311 = math.tanh %310 : vector<16x64xf32>
    %312 = arith.truncf %311 : vector<16x64xf32> to vector<16x64xbf16>
    %c0_128 = arith.constant 0 : index
    %c0_129 = arith.constant 0 : index
    %313 = vector.load %arg13[%c0_128, %c0_129] : memref<64x32xbf16, #tpu.memory_space<vmem>>, vector<64x32xbf16>
    %cst_130 = arith.constant dense<0.000000e+00> : vector<16x32xf32>
    %314 = tpu.matmul %312, %313, %cst_130 {dimension_numbers = #tpu.dot_dimension_numbers<[1], [0], [0], [1], [0, 0, 1, 1], [], []>} : vector<16x64xbf16>, vector<64x32xbf16>, vector<16x32xf32> -> vector<16x32xf32>
    %315 = arith.addf %314, %21 : vector<16x32xf32>
    %cst_131 = arith.constant 1.000000e+00 : f32
    %316 = vector.broadcast %cst_131 : f32 to vector<16x32xf32>
    %317 = arith.subf %316, %303 : vector<16x32xf32>
    %318 = arith.mulf %317, %315 : vector<16x32xf32>
    %319 = arith.mulf %303, %287 : vector<16x32xf32>
    %320 = arith.addf %318, %319 : vector<16x32xf32>
    %321 = vector.broadcast %277 : vector<16x1xf32> to vector<16x32xf32>
    %322 = arith.mulf %321, %320 : vector<16x32xf32>
    %cst_132 = arith.constant 1.000000e+00 : f32
    %323 = vector.broadcast %cst_132 : f32 to vector<16x1xf32>
    %324 = arith.subf %323, %277 : vector<16x1xf32>
    %325 = vector.broadcast %324 : vector<16x1xf32> to vector<16x32xf32>
    %326 = arith.mulf %325, %287 : vector<16x32xf32>
    %327 = arith.addf %322, %326 : vector<16x32xf32>
    %328 = arith.truncf %327 : vector<16x32xf32> to vector<16x32xbf16>
    %329 = arith.index_cast %c4_i32 : i32 to index
    %c0_133 = arith.constant 0 : index
    %c0_134 = arith.constant 0 : index
    %330 = vector.load %arg15[%329, %c0_133, %c0_134] : memref<8x16x32xbf16, #tpu.memory_space<vmem>>, vector<1x16x32xbf16>
    %331 = vector.shape_cast %330 : vector<1x16x32xbf16> to vector<16x32xbf16>
    %332 = vector.shape_cast %328 : vector<16x32xbf16> to vector<1x16x32xbf16>
    tpu.vector_store %arg15[%329, %c0_133, %c0_134], %332 {strides = array<i32>} : memref<8x16x32xbf16, #tpu.memory_space<vmem>>, vector<1x16x32xbf16>,
    %c5_i32 = arith.constant 5 : i32
    %c8_i32_135 = arith.constant 8 : i32
    %333 = arith.muli %arg1, %c8_i32_135 : i32
    %334 = arith.addi %333, %c5_i32 : i32
    %335 = arith.index_cast %334 : i32 to index
    %336 = memref.load %arg2[%335] : memref<8xf32, #tpu.memory_space<smem>>
    %337 = arith.index_cast %c5_i32 : i32 to index
    %c0_136 = arith.constant 0 : index
    %c0_137 = arith.constant 0 : index
    %338 = vector.load %arg4[%337, %c0_136, %c0_137] : memref<8x16x1xf32, #tpu.memory_space<vmem>>, vector<1x16x1xf32>
    %339 = vector.shape_cast %338 : vector<1x16x1xf32> to vector<16x1xf32>
    %340 = arith.index_cast %c5_i32 : i32 to index
    %c0_138 = arith.constant 0 : index
    %c0_139 = arith.constant 0 : index
    %341 = vector.load %arg18[%340, %c0_138, %c0_139] : memref<8x16x192xf32, #tpu.memory_space<vmem>>, vector<1x16x192xf32>
    %342 = vector.shape_cast %341 : vector<1x16x192xf32> to vector<16x192xf32>
    %343 = arith.truncf %327 : vector<16x32xf32> to vector<16x32xbf16>
    %cst_140 = arith.constant dense<0.000000e+00> : vector<16x32xf32>
    %344 = tpu.matmul %343, %12, %cst_140 {dimension_numbers = #tpu.dot_dimension_numbers<[1], [0], [0], [1], [0, 0, 1, 1], [], []>} : vector<16x32xbf16>, vector<32x32xbf16>, vector<16x32xf32> -> vector<16x32xf32>
    %345 = arith.addf %344, %15 : vector<16x32xf32>
    %346 = math.tanh %345 : vector<16x32xf32>
    %347 = vector.broadcast %336 : f32 to vector<16x32xf32>
    %348 = arith.mulf %347, %346 : vector<16x32xf32>
    %349 = arith.addf %327, %348 : vector<16x32xf32>
    %350 = arith.truncf %349 : vector<16x32xf32> to vector<16x32xbf16>
    %c0_141 = arith.constant 0 : index
    %c0_142 = arith.constant 0 : index
    %351 = vector.load %arg9[%c0_141, %c0_142] : memref<32x128xbf16, #tpu.memory_space<vmem>>, vector<32x128xbf16>
    %cst_143 = arith.constant dense<0.000000e+00> : vector<16x128xf32>
    %352 = tpu.matmul %350, %351, %cst_143 {dimension_numbers = #tpu.dot_dimension_numbers<[1], [0], [0], [1], [0, 0, 1, 1], [], []>} : vector<16x32xbf16>, vector<32x128xbf16>, vector<16x128xf32> -> vector<16x128xf32>
    %353 = vector.extract_strided_slice %342 {offsets = [0, 0], sizes = [16, 128], strides = [1, 1]} : vector<16x192xf32> to vector<16x128xf32>
    %354 = arith.addf %352, %353 : vector<16x128xf32>
    %355 = math.tanh %354 : vector<16x128xf32>
    %356 = arith.truncf %355 : vector<16x128xf32> to vector<16x128xbf16>
    %c0_144 = arith.constant 0 : index
    %c0_145 = arith.constant 0 : index
    %357 = vector.load %arg11[%c0_144, %c0_145] : memref<128x64xbf16, #tpu.memory_space<vmem>>, vector<128x64xbf16>
    %cst_146 = arith.constant dense<0.000000e+00> : vector<16x64xf32>
    %358 = tpu.matmul %356, %357, %cst_146 {dimension_numbers = #tpu.dot_dimension_numbers<[1], [0], [0], [1], [0, 0, 1, 1], [], []>} : vector<16x128xbf16>, vector<128x64xbf16>, vector<16x64xf32> -> vector<16x64xf32>
    %359 = arith.addf %358, %18 : vector<16x64xf32>
    %360 = arith.negf %359 : vector<16x64xf32>
    %361 = math.exp %360 : vector<16x64xf32>
    %cst_147 = arith.constant 1.000000e+00 : f32
    %362 = vector.broadcast %cst_147 : f32 to vector<16x64xf32>
    %363 = arith.addf %362, %361 : vector<16x64xf32>
    %364 = arith.divf %362, %363 : vector<16x64xf32>
    %365 = vector.extract_strided_slice %364 {offsets = [0, 0], sizes = [16, 32], strides = [1, 1]} : vector<16x64xf32> to vector<16x32xf32>
    %366 = vector.extract_strided_slice %364 {offsets = [0, 32], sizes = [16, 32], strides = [1, 1]} : vector<16x64xf32> to vector<16x32xf32>
    %367 = arith.mulf %349, %366 : vector<16x32xf32>
    %368 = arith.truncf %367 : vector<16x32xf32> to vector<16x32xbf16>
    %c0_148 = arith.constant 0 : index
    %c0_149 = arith.constant 0 : index
    %369 = vector.load %arg10[%c0_148, %c0_149] : memref<32x64xbf16, #tpu.memory_space<vmem>>, vector<32x64xbf16>
    %cst_150 = arith.constant dense<0.000000e+00> : vector<16x64xf32>
    %370 = tpu.matmul %368, %369, %cst_150 {dimension_numbers = #tpu.dot_dimension_numbers<[1], [0], [0], [1], [0, 0, 1, 1], [], []>} : vector<16x32xbf16>, vector<32x64xbf16>, vector<16x64xf32> -> vector<16x64xf32>
    %371 = vector.extract_strided_slice %342 {offsets = [0, 128], sizes = [16, 64], strides = [1, 1]} : vector<16x192xf32> to vector<16x64xf32>
    %372 = arith.addf %370, %371 : vector<16x64xf32>
    %373 = math.tanh %372 : vector<16x64xf32>
    %374 = arith.truncf %373 : vector<16x64xf32> to vector<16x64xbf16>
    %c0_151 = arith.constant 0 : index
    %c0_152 = arith.constant 0 : index
    %375 = vector.load %arg13[%c0_151, %c0_152] : memref<64x32xbf16, #tpu.memory_space<vmem>>, vector<64x32xbf16>
    %cst_153 = arith.constant dense<0.000000e+00> : vector<16x32xf32>
    %376 = tpu.matmul %374, %375, %cst_153 {dimension_numbers = #tpu.dot_dimension_numbers<[1], [0], [0], [1], [0, 0, 1, 1], [], []>} : vector<16x64xbf16>, vector<64x32xbf16>, vector<16x32xf32> -> vector<16x32xf32>
    %377 = arith.addf %376, %21 : vector<16x32xf32>
    %cst_154 = arith.constant 1.000000e+00 : f32
    %378 = vector.broadcast %cst_154 : f32 to vector<16x32xf32>
    %379 = arith.subf %378, %365 : vector<16x32xf32>
    %380 = arith.mulf %379, %377 : vector<16x32xf32>
    %381 = arith.mulf %365, %349 : vector<16x32xf32>
    %382 = arith.addf %380, %381 : vector<16x32xf32>
    %383 = vector.broadcast %339 : vector<16x1xf32> to vector<16x32xf32>
    %384 = arith.mulf %383, %382 : vector<16x32xf32>
    %cst_155 = arith.constant 1.000000e+00 : f32
    %385 = vector.broadcast %cst_155 : f32 to vector<16x1xf32>
    %386 = arith.subf %385, %339 : vector<16x1xf32>
    %387 = vector.broadcast %386 : vector<16x1xf32> to vector<16x32xf32>
    %388 = arith.mulf %387, %349 : vector<16x32xf32>
    %389 = arith.addf %384, %388 : vector<16x32xf32>
    %390 = arith.truncf %389 : vector<16x32xf32> to vector<16x32xbf16>
    %391 = arith.index_cast %c5_i32 : i32 to index
    %c0_156 = arith.constant 0 : index
    %c0_157 = arith.constant 0 : index
    %392 = vector.load %arg15[%391, %c0_156, %c0_157] : memref<8x16x32xbf16, #tpu.memory_space<vmem>>, vector<1x16x32xbf16>
    %393 = vector.shape_cast %392 : vector<1x16x32xbf16> to vector<16x32xbf16>
    %394 = vector.shape_cast %390 : vector<16x32xbf16> to vector<1x16x32xbf16>
    tpu.vector_store %arg15[%391, %c0_156, %c0_157], %394 {strides = array<i32>} : memref<8x16x32xbf16, #tpu.memory_space<vmem>>, vector<1x16x32xbf16>,
    %c6_i32 = arith.constant 6 : i32
    %c8_i32_158 = arith.constant 8 : i32
    %395 = arith.muli %arg1, %c8_i32_158 : i32
    %396 = arith.addi %395, %c6_i32 : i32
    %397 = arith.index_cast %396 : i32 to index
    %398 = memref.load %arg2[%397] : memref<8xf32, #tpu.memory_space<smem>>
    %399 = arith.index_cast %c6_i32 : i32 to index
    %c0_159 = arith.constant 0 : index
    %c0_160 = arith.constant 0 : index
    %400 = vector.load %arg4[%399, %c0_159, %c0_160] : memref<8x16x1xf32, #tpu.memory_space<vmem>>, vector<1x16x1xf32>
    %401 = vector.shape_cast %400 : vector<1x16x1xf32> to vector<16x1xf32>
    %402 = arith.index_cast %c6_i32 : i32 to index
    %c0_161 = arith.constant 0 : index
    %c0_162 = arith.constant 0 : index
    %403 = vector.load %arg18[%402, %c0_161, %c0_162] : memref<8x16x192xf32, #tpu.memory_space<vmem>>, vector<1x16x192xf32>
    %404 = vector.shape_cast %403 : vector<1x16x192xf32> to vector<16x192xf32>
    %405 = arith.truncf %389 : vector<16x32xf32> to vector<16x32xbf16>
    %cst_163 = arith.constant dense<0.000000e+00> : vector<16x32xf32>
    %406 = tpu.matmul %405, %12, %cst_163 {dimension_numbers = #tpu.dot_dimension_numbers<[1], [0], [0], [1], [0, 0, 1, 1], [], []>} : vector<16x32xbf16>, vector<32x32xbf16>, vector<16x32xf32> -> vector<16x32xf32>
    %407 = arith.addf %406, %15 : vector<16x32xf32>
    %408 = math.tanh %407 : vector<16x32xf32>
    %409 = vector.broadcast %398 : f32 to vector<16x32xf32>
    %410 = arith.mulf %409, %408 : vector<16x32xf32>
    %411 = arith.addf %389, %410 : vector<16x32xf32>
    %412 = arith.truncf %411 : vector<16x32xf32> to vector<16x32xbf16>
    %c0_164 = arith.constant 0 : index
    %c0_165 = arith.constant 0 : index
    %413 = vector.load %arg9[%c0_164, %c0_165] : memref<32x128xbf16, #tpu.memory_space<vmem>>, vector<32x128xbf16>
    %cst_166 = arith.constant dense<0.000000e+00> : vector<16x128xf32>
    %414 = tpu.matmul %412, %413, %cst_166 {dimension_numbers = #tpu.dot_dimension_numbers<[1], [0], [0], [1], [0, 0, 1, 1], [], []>} : vector<16x32xbf16>, vector<32x128xbf16>, vector<16x128xf32> -> vector<16x128xf32>
    %415 = vector.extract_strided_slice %404 {offsets = [0, 0], sizes = [16, 128], strides = [1, 1]} : vector<16x192xf32> to vector<16x128xf32>
    %416 = arith.addf %414, %415 : vector<16x128xf32>
    %417 = math.tanh %416 : vector<16x128xf32>
    %418 = arith.truncf %417 : vector<16x128xf32> to vector<16x128xbf16>
    %c0_167 = arith.constant 0 : index
    %c0_168 = arith.constant 0 : index
    %419 = vector.load %arg11[%c0_167, %c0_168] : memref<128x64xbf16, #tpu.memory_space<vmem>>, vector<128x64xbf16>
    %cst_169 = arith.constant dense<0.000000e+00> : vector<16x64xf32>
    %420 = tpu.matmul %418, %419, %cst_169 {dimension_numbers = #tpu.dot_dimension_numbers<[1], [0], [0], [1], [0, 0, 1, 1], [], []>} : vector<16x128xbf16>, vector<128x64xbf16>, vector<16x64xf32> -> vector<16x64xf32>
    %421 = arith.addf %420, %18 : vector<16x64xf32>
    %422 = arith.negf %421 : vector<16x64xf32>
    %423 = math.exp %422 : vector<16x64xf32>
    %cst_170 = arith.constant 1.000000e+00 : f32
    %424 = vector.broadcast %cst_170 : f32 to vector<16x64xf32>
    %425 = arith.addf %424, %423 : vector<16x64xf32>
    %426 = arith.divf %424, %425 : vector<16x64xf32>
    %427 = vector.extract_strided_slice %426 {offsets = [0, 0], sizes = [16, 32], strides = [1, 1]} : vector<16x64xf32> to vector<16x32xf32>
    %428 = vector.extract_strided_slice %426 {offsets = [0, 32], sizes = [16, 32], strides = [1, 1]} : vector<16x64xf32> to vector<16x32xf32>
    %429 = arith.mulf %411, %428 : vector<16x32xf32>
    %430 = arith.truncf %429 : vector<16x32xf32> to vector<16x32xbf16>
    %c0_171 = arith.constant 0 : index
    %c0_172 = arith.constant 0 : index
    %431 = vector.load %arg10[%c0_171, %c0_172] : memref<32x64xbf16, #tpu.memory_space<vmem>>, vector<32x64xbf16>
    %cst_173 = arith.constant dense<0.000000e+00> : vector<16x64xf32>
    %432 = tpu.matmul %430, %431, %cst_173 {dimension_numbers = #tpu.dot_dimension_numbers<[1], [0], [0], [1], [0, 0, 1, 1], [], []>} : vector<16x32xbf16>, vector<32x64xbf16>, vector<16x64xf32> -> vector<16x64xf32>
    %433 = vector.extract_strided_slice %404 {offsets = [0, 128], sizes = [16, 64], strides = [1, 1]} : vector<16x192xf32> to vector<16x64xf32>
    %434 = arith.addf %432, %433 : vector<16x64xf32>
    %435 = math.tanh %434 : vector<16x64xf32>
    %436 = arith.truncf %435 : vector<16x64xf32> to vector<16x64xbf16>
    %c0_174 = arith.constant 0 : index
    %c0_175 = arith.constant 0 : index
    %437 = vector.load %arg13[%c0_174, %c0_175] : memref<64x32xbf16, #tpu.memory_space<vmem>>, vector<64x32xbf16>
    %cst_176 = arith.constant dense<0.000000e+00> : vector<16x32xf32>
    %438 = tpu.matmul %436, %437, %cst_176 {dimension_numbers = #tpu.dot_dimension_numbers<[1], [0], [0], [1], [0, 0, 1, 1], [], []>} : vector<16x64xbf16>, vector<64x32xbf16>, vector<16x32xf32> -> vector<16x32xf32>
    %439 = arith.addf %438, %21 : vector<16x32xf32>
    %cst_177 = arith.constant 1.000000e+00 : f32
    %440 = vector.broadcast %cst_177 : f32 to vector<16x32xf32>
    %441 = arith.subf %440, %427 : vector<16x32xf32>
    %442 = arith.mulf %441, %439 : vector<16x32xf32>
    %443 = arith.mulf %427, %411 : vector<16x32xf32>
    %444 = arith.addf %442, %443 : vector<16x32xf32>
    %445 = vector.broadcast %401 : vector<16x1xf32> to vector<16x32xf32>
    %446 = arith.mulf %445, %444 : vector<16x32xf32>
    %cst_178 = arith.constant 1.000000e+00 : f32
    %447 = vector.broadcast %cst_178 : f32 to vector<16x1xf32>
    %448 = arith.subf %447, %401 : vector<16x1xf32>
    %449 = vector.broadcast %448 : vector<16x1xf32> to vector<16x32xf32>
    %450 = arith.mulf %449, %411 : vector<16x32xf32>
    %451 = arith.addf %446, %450 : vector<16x32xf32>
    %452 = arith.truncf %451 : vector<16x32xf32> to vector<16x32xbf16>
    %453 = arith.index_cast %c6_i32 : i32 to index
    %c0_179 = arith.constant 0 : index
    %c0_180 = arith.constant 0 : index
    %454 = vector.load %arg15[%453, %c0_179, %c0_180] : memref<8x16x32xbf16, #tpu.memory_space<vmem>>, vector<1x16x32xbf16>
    %455 = vector.shape_cast %454 : vector<1x16x32xbf16> to vector<16x32xbf16>
    %456 = vector.shape_cast %452 : vector<16x32xbf16> to vector<1x16x32xbf16>
    tpu.vector_store %arg15[%453, %c0_179, %c0_180], %456 {strides = array<i32>} : memref<8x16x32xbf16, #tpu.memory_space<vmem>>, vector<1x16x32xbf16>,
    %c7_i32 = arith.constant 7 : i32
    %c8_i32_181 = arith.constant 8 : i32
    %457 = arith.muli %arg1, %c8_i32_181 : i32
    %458 = arith.addi %457, %c7_i32 : i32
    %459 = arith.index_cast %458 : i32 to index
    %460 = memref.load %arg2[%459] : memref<8xf32, #tpu.memory_space<smem>>
    %461 = arith.index_cast %c7_i32 : i32 to index
    %c0_182 = arith.constant 0 : index
    %c0_183 = arith.constant 0 : index
    %462 = vector.load %arg4[%461, %c0_182, %c0_183] : memref<8x16x1xf32, #tpu.memory_space<vmem>>, vector<1x16x1xf32>
    %463 = vector.shape_cast %462 : vector<1x16x1xf32> to vector<16x1xf32>
    %464 = arith.index_cast %c7_i32 : i32 to index
    %c0_184 = arith.constant 0 : index
    %c0_185 = arith.constant 0 : index
    %465 = vector.load %arg18[%464, %c0_184, %c0_185] : memref<8x16x192xf32, #tpu.memory_space<vmem>>, vector<1x16x192xf32>
    %466 = vector.shape_cast %465 : vector<1x16x192xf32> to vector<16x192xf32>
    %467 = arith.truncf %451 : vector<16x32xf32> to vector<16x32xbf16>
    %cst_186 = arith.constant dense<0.000000e+00> : vector<16x32xf32>
    %468 = tpu.matmul %467, %12, %cst_186 {dimension_numbers = #tpu.dot_dimension_numbers<[1], [0], [0], [1], [0, 0, 1, 1], [], []>} : vector<16x32xbf16>, vector<32x32xbf16>, vector<16x32xf32> -> vector<16x32xf32>
    %469 = arith.addf %468, %15 : vector<16x32xf32>
    %470 = math.tanh %469 : vector<16x32xf32>
    %471 = vector.broadcast %460 : f32 to vector<16x32xf32>
    %472 = arith.mulf %471, %470 : vector<16x32xf32>
    %473 = arith.addf %451, %472 : vector<16x32xf32>
    %474 = arith.truncf %473 : vector<16x32xf32> to vector<16x32xbf16>
    %c0_187 = arith.constant 0 : index
    %c0_188 = arith.constant 0 : index
    %475 = vector.load %arg9[%c0_187, %c0_188] : memref<32x128xbf16, #tpu.memory_space<vmem>>, vector<32x128xbf16>
    %cst_189 = arith.constant dense<0.000000e+00> : vector<16x128xf32>
    %476 = tpu.matmul %474, %475, %cst_189 {dimension_numbers = #tpu.dot_dimension_numbers<[1], [0], [0], [1], [0, 0, 1, 1], [], []>} : vector<16x32xbf16>, vector<32x128xbf16>, vector<16x128xf32> -> vector<16x128xf32>
    %477 = vector.extract_strided_slice %466 {offsets = [0, 0], sizes = [16, 128], strides = [1, 1]} : vector<16x192xf32> to vector<16x128xf32>
    %478 = arith.addf %476, %477 : vector<16x128xf32>
    %479 = math.tanh %478 : vector<16x128xf32>
    %480 = arith.truncf %479 : vector<16x128xf32> to vector<16x128xbf16>
    %c0_190 = arith.constant 0 : index
    %c0_191 = arith.constant 0 : index
    %481 = vector.load %arg11[%c0_190, %c0_191] : memref<128x64xbf16, #tpu.memory_space<vmem>>, vector<128x64xbf16>
    %cst_192 = arith.constant dense<0.000000e+00> : vector<16x64xf32>
    %482 = tpu.matmul %480, %481, %cst_192 {dimension_numbers = #tpu.dot_dimension_numbers<[1], [0], [0], [1], [0, 0, 1, 1], [], []>} : vector<16x128xbf16>, vector<128x64xbf16>, vector<16x64xf32> -> vector<16x64xf32>
    %483 = arith.addf %482, %18 : vector<16x64xf32>
    %484 = arith.negf %483 : vector<16x64xf32>
    %485 = math.exp %484 : vector<16x64xf32>
    %cst_193 = arith.constant 1.000000e+00 : f32
    %486 = vector.broadcast %cst_193 : f32 to vector<16x64xf32>
    %487 = arith.addf %486, %485 : vector<16x64xf32>
    %488 = arith.divf %486, %487 : vector<16x64xf32>
    %489 = vector.extract_strided_slice %488 {offsets = [0, 0], sizes = [16, 32], strides = [1, 1]} : vector<16x64xf32> to vector<16x32xf32>
    %490 = vector.extract_strided_slice %488 {offsets = [0, 32], sizes = [16, 32], strides = [1, 1]} : vector<16x64xf32> to vector<16x32xf32>
    %491 = arith.mulf %473, %490 : vector<16x32xf32>
    %492 = arith.truncf %491 : vector<16x32xf32> to vector<16x32xbf16>
    %c0_194 = arith.constant 0 : index
    %c0_195 = arith.constant 0 : index
    %493 = vector.load %arg10[%c0_194, %c0_195] : memref<32x64xbf16, #tpu.memory_space<vmem>>, vector<32x64xbf16>
    %cst_196 = arith.constant dense<0.000000e+00> : vector<16x64xf32>
    %494 = tpu.matmul %492, %493, %cst_196 {dimension_numbers = #tpu.dot_dimension_numbers<[1], [0], [0], [1], [0, 0, 1, 1], [], []>} : vector<16x32xbf16>, vector<32x64xbf16>, vector<16x64xf32> -> vector<16x64xf32>
    %495 = vector.extract_strided_slice %466 {offsets = [0, 128], sizes = [16, 64], strides = [1, 1]} : vector<16x192xf32> to vector<16x64xf32>
    %496 = arith.addf %494, %495 : vector<16x64xf32>
    %497 = math.tanh %496 : vector<16x64xf32>
    %498 = arith.truncf %497 : vector<16x64xf32> to vector<16x64xbf16>
    %c0_197 = arith.constant 0 : index
    %c0_198 = arith.constant 0 : index
    %499 = vector.load %arg13[%c0_197, %c0_198] : memref<64x32xbf16, #tpu.memory_space<vmem>>, vector<64x32xbf16>
    %cst_199 = arith.constant dense<0.000000e+00> : vector<16x32xf32>
    %500 = tpu.matmul %498, %499, %cst_199 {dimension_numbers = #tpu.dot_dimension_numbers<[1], [0], [0], [1], [0, 0, 1, 1], [], []>} : vector<16x64xbf16>, vector<64x32xbf16>, vector<16x32xf32> -> vector<16x32xf32>
    %501 = arith.addf %500, %21 : vector<16x32xf32>
    %cst_200 = arith.constant 1.000000e+00 : f32
    %502 = vector.broadcast %cst_200 : f32 to vector<16x32xf32>
    %503 = arith.subf %502, %489 : vector<16x32xf32>
    %504 = arith.mulf %503, %501 : vector<16x32xf32>
    %505 = arith.mulf %489, %473 : vector<16x32xf32>
    %506 = arith.addf %504, %505 : vector<16x32xf32>
    %507 = vector.broadcast %463 : vector<16x1xf32> to vector<16x32xf32>
    %508 = arith.mulf %507, %506 : vector<16x32xf32>
    %cst_201 = arith.constant 1.000000e+00 : f32
    %509 = vector.broadcast %cst_201 : f32 to vector<16x1xf32>
    %510 = arith.subf %509, %463 : vector<16x1xf32>
    %511 = vector.broadcast %510 : vector<16x1xf32> to vector<16x32xf32>
    %512 = arith.mulf %511, %473 : vector<16x32xf32>
    %513 = arith.addf %508, %512 : vector<16x32xf32>
    %514 = arith.truncf %513 : vector<16x32xf32> to vector<16x32xbf16>
    %515 = arith.index_cast %c7_i32 : i32 to index
    %c0_202 = arith.constant 0 : index
    %c0_203 = arith.constant 0 : index
    %516 = vector.load %arg15[%515, %c0_202, %c0_203] : memref<8x16x32xbf16, #tpu.memory_space<vmem>>, vector<1x16x32xbf16>
    %517 = vector.shape_cast %516 : vector<1x16x32xbf16> to vector<16x32xbf16>
    %518 = vector.shape_cast %514 : vector<16x32xbf16> to vector<1x16x32xbf16>
    tpu.vector_store %arg15[%515, %c0_202, %c0_203], %518 {strides = array<i32>} : memref<8x16x32xbf16, #tpu.memory_space<vmem>>, vector<1x16x32xbf16>,
    %c8_i32_204 = arith.constant 8 : i32
    %c0_205 = arith.constant 0 : index
    %c0_206 = arith.constant 0 : index
    %519 = vector.load %arg17[%c0_205, %c0_206] : memref<16x32xf32, #tpu.memory_space<vmem>>, vector<16x32xf32>
    tpu.vector_store %arg17[%c0_205, %c0_206], %513 {strides = array<i32>} : memref<16x32xf32, #tpu.memory_space<vmem>>, vector<16x32xf32>,
    %c0_207 = arith.constant 0 : index
    %c0_208 = arith.constant 0 : index
    %520 = vector.load %arg16[%c0_207, %c0_208] : memref<16x32xf32, #tpu.memory_space<vmem>>, vector<16x32xf32>
    tpu.vector_store %arg16[%c0_207, %c0_208], %513 {strides = array<i32>} : memref<16x32xf32, #tpu.memory_space<vmem>>, vector<16x32xf32>,
    return
  }
  func.func @transform_0(%arg0: i32, %arg1: i32, %arg2: memref<8xf32, #tpu.memory_space<smem>>) -> (i32, i32, i32) {
    %c0_i32 = arith.constant 0 : i32
    %c0_i32_0 = arith.constant 0 : i32
    return %arg1, %arg0, %c0_i32 : i32, i32, i32
  }
  func.func @transform_1(%arg0: i32, %arg1: i32, %arg2: memref<8xf32, #tpu.memory_space<smem>>) -> (i32, i32, i32) {
    %c0_i32 = arith.constant 0 : i32
    %c0_i32_0 = arith.constant 0 : i32
    return %arg1, %arg0, %c0_i32 : i32, i32, i32
  }
  func.func @transform_2(%arg0: i32, %arg1: i32, %arg2: memref<8xf32, #tpu.memory_space<smem>>) -> (i32, i32) {
    %c0_i32 = arith.constant 0 : i32
    %c0_i32_0 = arith.constant 0 : i32
    %c0_i32_1 = arith.constant 0 : i32
    return %c0_i32, %c0_i32_0 : i32, i32
  }
  func.func @transform_3(%arg0: i32, %arg1: i32, %arg2: memref<8xf32, #tpu.memory_space<smem>>) -> (i32, i32) {
    %c0_i32 = arith.constant 0 : i32
    %c0_i32_0 = arith.constant 0 : i32
    %c0_i32_1 = arith.constant 0 : i32
    return %c0_i32, %c0_i32_0 : i32, i32
  }
  func.func @transform_4(%arg0: i32, %arg1: i32, %arg2: memref<8xf32, #tpu.memory_space<smem>>) -> (i32, i32) {
    %c0_i32 = arith.constant 0 : i32
    %c0_i32_0 = arith.constant 0 : i32
    %c0_i32_1 = arith.constant 0 : i32
    return %c0_i32, %c0_i32_0 : i32, i32
  }
  func.func @transform_5(%arg0: i32, %arg1: i32, %arg2: memref<8xf32, #tpu.memory_space<smem>>) -> (i32, i32) {
    %c0_i32 = arith.constant 0 : i32
    %c0_i32_0 = arith.constant 0 : i32
    %c0_i32_1 = arith.constant 0 : i32
    return %c0_i32, %c0_i32_0 : i32, i32
  }
  func.func @transform_6(%arg0: i32, %arg1: i32, %arg2: memref<8xf32, #tpu.memory_space<smem>>) -> (i32, i32) {
    %c0_i32 = arith.constant 0 : i32
    %c0_i32_0 = arith.constant 0 : i32
    %c0_i32_1 = arith.constant 0 : i32
    return %c0_i32, %c0_i32_0 : i32, i32
  }
  func.func @transform_7(%arg0: i32, %arg1: i32, %arg2: memref<8xf32, #tpu.memory_space<smem>>) -> (i32, i32) {
    %c0_i32 = arith.constant 0 : i32
    %c0_i32_0 = arith.constant 0 : i32
    %c0_i32_1 = arith.constant 0 : i32
    return %c0_i32, %c0_i32_0 : i32, i32
  }
  func.func @transform_8(%arg0: i32, %arg1: i32, %arg2: memref<8xf32, #tpu.memory_space<smem>>) -> (i32, i32) {
    %c0_i32 = arith.constant 0 : i32
    %c0_i32_0 = arith.constant 0 : i32
    %c0_i32_1 = arith.constant 0 : i32
    return %c0_i32, %c0_i32_0 : i32, i32
  }
  func.func @transform_9(%arg0: i32, %arg1: i32, %arg2: memref<8xf32, #tpu.memory_space<smem>>) -> (i32, i32) {
    %c0_i32 = arith.constant 0 : i32
    %c0_i32_0 = arith.constant 0 : i32
    %c0_i32_1 = arith.constant 0 : i32
    return %c0_i32, %c0_i32_0 : i32, i32
  }
  func.func @transform_10(%arg0: i32, %arg1: i32, %arg2: memref<8xf32, #tpu.memory_space<smem>>) -> (i32, i32) {
    %c0_i32 = arith.constant 0 : i32
    %c0_i32_0 = arith.constant 0 : i32
    %c0_i32_1 = arith.constant 0 : i32
    return %c0_i32, %c0_i32_0 : i32, i32
  }
  func.func @transform_11(%arg0: i32, %arg1: i32, %arg2: memref<8xf32, #tpu.memory_space<smem>>) -> (i32, i32) {
    %c0_i32 = arith.constant 0 : i32
    %c0_i32_0 = arith.constant 0 : i32
    %c0_i32_1 = arith.constant 0 : i32
    return %c0_i32, %c0_i32_0 : i32, i32
  }
  func.func @transform_12(%arg0: i32, %arg1: i32, %arg2: memref<8xf32, #tpu.memory_space<smem>>) -> (i32, i32, i32) {
    %c0_i32 = arith.constant 0 : i32
    %c0_i32_0 = arith.constant 0 : i32
    return %arg1, %arg0, %c0_i32 : i32, i32, i32
  }
  func.func @transform_13(%arg0: i32, %arg1: i32, %arg2: memref<8xf32, #tpu.memory_space<smem>>) -> (i32, i32) {
    %c0_i32 = arith.constant 0 : i32
    %c0_i32_0 = arith.constant 0 : i32
    return %arg0, %c0_i32 : i32, i32
  }
}

</mosaic_0001>

<bundles_post_ra>
// kernel: tpu_custom_call.1
= control target key start
LH: loop header
LB: loop body
LE: loop exit
PB: predicated region body
PF: predicated region fallthrough
CT: control target
= control target key end

     0   :  { %s6396_s0 = inlined_call_operand.vmem [shape: f32[8], index: 0, kind: input, shape index: {}]   ;;  %s6397_s1 = inlined_call_operand.vmem [shape: bf16[8,16,16], index: 1, kind: input, shape index: {}]   ;;  %s6398_s2 = inlined_call_operand.vmem [shape: f32[8,16,1], index: 2, kind: input, shape index: {}]   ;;  %s6399_s3 = inlined_call_operand.vmem [shape: bf16[32,32], index: 3, kind: input, shape index: {}]   ;;  %s6400_s4 = inlined_call_operand.vmem [shape: f32[1,32], index: 4, kind: input, shape index: {}]   ;;  %s6401_s5 = inlined_call_operand.vmem [shape: bf16[16,192], index: 5, kind: input, shape index: {}]   ;;  %s6402_s6 = inlined_call_operand.vmem [shape: f32[1,192], index: 6, kind: input, shape index: {}]   ;;  %s6403_s7 = inlined_call_operand.vmem [shape: bf16[32,128], index: 7, kind: input, shape index: {}]   ;;  %s6404_s8 = inlined_call_operand.vmem [shape: bf16[32,64], index: 8, kind: input, shape index: {}]   ;;  %s6405_s9 = inlined_call_operand.vmem [shape: bf16[128,64], index: 9, kind: input, shape index: {}]   ;;  %s6406_s10 = inlined_call_operand.vmem [shape: f32[1,64], index: 10, kind: input, shape index: {}]   ;;  %s6407_s11 = inlined_call_operand.vmem [shape: bf16[64,32], index: 11, kind: input, shape index: {}]   ;;  %s6408_s12 = inlined_call_operand.vmem [shape: f32[1,32], index: 12, kind: input, shape index: {}]   ;;  %s6409_s13 = inlined_call_operand.hbm [shape: bf16[8,16,32], index: 13, kind: output, shape index: {0}]   ;;  %s6410_s14 = inlined_call_operand.hbm [shape: f32[16,32], index: 14, kind: output, shape index: {1}]  }
   0x1   :  { %s20_s15 = sshll.u32 %s6396_s0, 4  ;;  %s21_s15 = int_to_ptr.vmem [resolvable:$true] %s20_s15 }
   0x2   :  { %s5105_s16 = scalar_lea.vmem %s21_s15, 16  ;;  %p5110_p1 = scmp.lt.s32.totalorder %s21_s15, %s21_s15 }
   0x3   :  { %p5106_p0 = scmp.ne.s32.totalorder %s21_s15, %s5105_s16  ;;  %p5111_p2 = scmp.lt.s32.totalorder %s5105_s16, %s5105_s16 }
   0x5   :  { %p5112_p3 = por %p5111_p2, %p5110_p1 }
   0x7   :  { %p5113_p4 = pnand %p5112_p3, %p5106_p0 }
   0x9   :  { %5116 = shalt.err (!%p5113_p4)  }
   0xa   :  { %s5167_s17 = smov [#allocation5]  }
   0xb   :  { %23 = dma.vmem_to_smem %s21_s15, 16, %s5167_s17, [#allocation4] }
   0xc   :  { %5161 = dma.done.wait [#allocation4], 16 }
   0xd   :  { %5162 = vsyncadd [#allocation4], 4294967280 }
   0xe   :  { %25 = sfence }
   0xf   :  { %26 = vsyncpa [#allocation7], 0  ;;  %v5259_v0 = vld [vmem:[%s6399_s3] sm:$0xff]   ;;  %v5168_v1 = vmov 0.0   ;;  %v5266_v2 = vld [vmem:[%s6399_s3 + $0x8] sm:$0xff]   ;;  %vm5169_vm0 = vmmov 0  }
  0x10   :  { %4334 = vmatprep.subr.bf16.mxu1 %v5168_v1  ;;  %4338 = vmatprep.mubr.msk.bf16.mxu1 %vm5169_vm0, %v5168_v1  ;;  %vm57_vm1 = vcmask 261120   ;;  %v5273_v3 = vld [vmem:[%s6398_s2] sm:$0xff]  ;;  %v341_v4 = vld [vmem:[%s6398_s2 + $0x8] sm:$0xff]  ;;  %v5170_v5 = vmov 0  }
  0x11   :  { %4335 = vmatpush3.bf16.msra.mxu1 %v5259_v0  ;;  %58 = vst.msk [vmem:[#allocation2] sm:$0xff] %vm57_vm1, %v5168_v1  ;;  %59 = vst.msk [vmem:[#allocation2 + $0x8] sm:$0xff] %vm57_vm1, %v5168_v1  ;;  %4793 = vset.pattern.permute.xlu1 %v5170_v5  ;;  %v763_v6 = vsub.f32 1.0, %v341_v4 }
  0x12   :  { %4336 = vmatprep.subr.bf16.mxu1 %v5168_v1  ;;  %752 = vperm.xlu1 %4793, %v5273_v3  }
  0x13   :  { %197 = vmatprep.mubr.bf16.mxu0 %v5170_v5  ;;  %4794 = vset.pattern.permute.xlu0 %v5170_v5 }
  0x15   :  { %4337 = vmatpush3.bf16.msra.mxu1 %v5266_v2 }
  0x16   :  { %4342 = vmatprep.subr.bf16.mxu1 %v5168_v1  ;;  %757 = vperm.xlu1 %4793, %v341_v4  }
  0x18   :  { %v336_v7 = vld [vmem:[#allocation2] sm:$0xff]  ;;  %v337_v8 = vld [vmem:[#allocation2 + $0x8] sm:$0xff] }
  0x19   :  { %v346_v9 = vpack.c.bf16 %v337_v8, %v336_v7 }
  0x1a   :  { %771 = vperm.xlu1 %4793, %v763_v6  }
  0x1b   :  { %4339 = vmatmul.mubr.msk.bf16.vlgmr.msra.gmra.mrb[0].mxu1 %vm57_vm1, %v346_v9 }
  0x1c   :  { %4346 = vmatprep.mubr.msk.bf16.mxu1 %vm5169_vm0, %v5168_v1 }
  0x1d   :  { %27 = vsyncpa [#allocation9], 0  ;;  %v4797_v10 = vld [vmem:[%s6401_s5 + $0x4] ss:$8 sps:$4 sm:$0xff]   ;;  %v4799_v11 = vld [vmem:[%s6401_s5] ss:$8 sps:$4 sm:$0xff]   ;;  %v80_v34 = vlaneseq }
  0x1e   :  { %v4801_v12 = vld [vmem:[%s6403_s7] sm:$0xff]   ;;  %165 = vmatprep.subr.bf16.mxu0 %v4797_v10  ;;  %vm140_vm2 = vcmask 130048   ;;  %v4802_v14 = vld [vmem:[%s6403_s7 + $0x8] sm:$0xff]   ;;  %s339_s0 = sld [smem:[#allocation5]]  ;;  %v4805_v32 = vld [vmem:[%s6405_s9 + $0x10] sm:$0xff]   ;;  %vm279_vm3 = vcmask 523264  }
  0x1f   :  { %v4800_v13 = vld [vmem:[%s6397_s1] sm:$0xff]   ;;  %166 = vmatpush1.bf16.msra.mxu0 %v4799_v11  ;;  %4343 = vmatpush3.bf16.msra.mxu1 %v4801_v12  ;;  %v4804_v31 = vld [vmem:[%s6405_s9 + $0x8] sm:$0xff]   ;;  %v4806_v33 = vld [vmem:[%s6405_s9 + $0x18] sm:$0xff]   ;;  %v81_v35 = vshrl.u32 %v80_v34, 7  ;;  %s5171_s25 = smov 96   ;;  %vm786_vm4 = vcmask 257024  }
  0x20   :  { %4344 = vmatprep.subr.bf16.mxu1 %v5168_v1  ;;  %4378 = vmatprep.subr.bf16.mxu0 %v5168_v1  ;;  %v5315_v15 = vld [vmem:[%s6400_s4] ss:$0 sm:$0xff]  ;;  %v4808_v50 = vld [vmem:[%s6405_s9 + $0x28] sm:$0xff]   ;;  %v4809_v51 = vld [vmem:[%s6405_s9 + $0x30] sm:$0xff]   ;;  %s3945_s24 = sld [smem:[#allocation5 + $0x1]]  ;;  %s3972_s28 = sld [smem:[#allocation5 + $0x2]] }
  0x21   :  { %v4803_v29 = vld [vmem:[%s6405_s9] sm:$0xff]   ;;  %v82_v36 = vsub.s32 0, %v81_v35  ;;  %v86_v38 = vsub.s32 1, %v81_v35  ;;  %v4810_v52 = vld [vmem:[%s6405_s9 + $0x38] sm:$0xff]   ;;  %s3999_s29 = sld [smem:[#allocation5 + $0x3]]  ;;  %s4107_s26 = sld [smem:[#allocation5 + $0x7]] }
  0x22   :  { %3908 = vmatmul.mubr.msk.bf16.vlgmr.msra.gmra.mrb[0].mxu0 %vm140_vm2, %v4800_v13  ;;  %v78_v37 = vld [vmem:[%s6402_s6] sm:$0x3] }
  0x23   :  { %4345 = vmatpush3.bf16.msra.mxu1 %v4802_v14  ;;  %207 = vmatprep.mubr.bf16.mxu0 %v5170_v5  ;;  %v5347_v39 = vrot.slane %v78_v37, %v82_v36  ;;  %v5349_v40 = vrot.slane %v78_v37, %v86_v38  ;;  %v4807_v49 = vld [vmem:[%s6405_s9 + $0x20] sm:$0xff]  }
  0x24   :  { %4350 = vmatprep.subr.bf16.mxu1 %v5168_v1  ;;  %v406_v22 = vstv %s339_s0  ;;  %v5378_v62 = vld [vmem:[%s6406_s10] ss:$0 sm:$0xff] }
  0x25   :  { %v4811_v13 = vld [vmem:[%s6404_s8] sm:$0xff]  }
  0xee   :  { %v397_v16 = vpop.f32.mrb[0].mxu1 }
  0xef   :  { %v398_v17 = vadd.f32 %v5315_v15, %v397_v16  ;;  %v4340_v18 = vpop.f32.mrb[1].mxu1 }
  0xf0   :  { %v400_v19 = vpop.f32.mrb[2].mxu1  ;;  %v4812_v18 = vld [vmem:[%s6404_s8 + $0x8] sm:$0xff]  }
  0xf1   :  { %4936 = vtanh.f32 %v398_v17  ;;  %v401_v20 = vadd.f32 %v5315_v15, %v400_v19  ;;  %v4341_v21 = vpop.f32.mrb[3].mxu1 }
  0xf2   :  { %v762_v21 = vsub.f32 1.0, %v5273_v3  ;;  %v4819_v3 = vld [vmem:[%s6407_s11 + $0x10] sm:$0xff]  }
  0xf3   :  { %4938 = vtanh.f32 %v401_v20 }
  0xf5   :  { %v199_v41 = vpop.f32.mrb[0].mxu0 }
  0xf6   :  { %v200_v42 = vadd.f32 %v199_v41, %v5347_v39  ;;  %v201_v43 = vpop.f32.mrb[1].mxu0 }
  0xf7   :  { %v202_v44 = vadd.f32 %v201_v43, %v5349_v40  ;;  %v203_v45 = vpop.f32.mrb[2].mxu0 }
  0xf8   :  { %v204_v46 = vadd.f32 %v203_v45, %v5347_v39  ;;  %v205_v47 = vpop.f32.mrb[3].mxu0 }
  0xf9   :  { %280 = vst.msk [vmem:[#allocation3 + $0x8] sm:$0xff] %vm279_vm3, %v202_v44  ;;  %v206_v48 = vadd.f32 %v205_v47, %v5349_v40 }
  0xfb   :  { %v4937_v23 = vpop.eup %4936  ;;  %282 = vst.msk [vmem:[#allocation3 + $0x18] sm:$0xff] %vm279_vm3, %v206_v48 }
  0xfc   :  { %v407_v24 = vmul.f32 %v4937_v23, %v406_v22  ;;  %v4814_v23 = vld [vmem:[%s6397_s1 + $0x8] sm:$0xff]  }
  0xfd   :  { %v4939_v25 = vpop.eup %4938  ;;  %3909 = vmatmul.mubr.msk.bf16.gmra.mrb[4].mxu0 %vm140_vm2, %v4814_v23 }
  0xfe   :  { %v408_v26 = vmul.f32 %v4939_v25, %v406_v22  ;;  %v5319_v27 = vadd.f32 %v407_v24, %v336_v7  ;;  %v4813_v22 = vld [vmem:[%s6407_s11] sm:$0xff]   ;;  %v4816_v24 = vld [vmem:[%s6407_s11 + $0x8] sm:$0xff]   ;;  %217 = vmatprep.mubr.bf16.mxu0 %v5170_v5  ;;  %v4815_v25 = vld [vmem:[%s6397_s1 + $0x10] sm:$0xff]  }
  0xff   :  { %4379 = vmatpush3.bf16.msra.mxu0 %v4813_v22 }
 0x100   :  { %v5321_v28 = vadd.f32 %v408_v26, %v337_v8  ;;  %4380 = vmatprep.subr.bf16.mxu0 %v5168_v1  ;;  %v4817_v26 = vld [vmem:[%s6397_s1 + $0x18] sm:$0xff]  }
 0x102   :  { %v411_v30 = vpack.c.bf16 %v5321_v28, %v5319_v27 }
 0x103   :  { %4381 = vmatpush3.bf16.msra.mxu0 %v4816_v24 }
 0x104   :  { %4347 = vmatmul.mubr.msk.bf16.vlgmr.msra.gmra.mrb[4].mxu1 %vm57_vm1, %v411_v30  ;;  %4382 = vmatprep.subr.bf16.mxu0 %v5168_v1  ;;  %v4820_v30 = vld [vmem:[%s6397_s1 + $0x28] sm:$0xff]  }
 0x105   :  { %4351 = vmatpush3.bf16.msra.mxu1 %v4803_v29  ;;  %4366 = vmatprep.mubr.msk.bf16.mxu1 %vm5169_vm0, %v5168_v1  ;;  %v4818_v29 = vld [vmem:[%s6397_s1 + $0x20] sm:$0xff]  }
 0x106   :  { %4352 = vmatprep.subr.bf16.mxu1 %v5168_v1  ;;  %3910 = vmatmul.mubr.msk.bf16.gmra.mrb[8].mxu0 %vm140_vm2, %v4815_v25 }
 0x107   :  { %4383 = vmatpush3.bf16.msra.mxu0 %v4819_v3  ;;  %227 = vmatprep.mubr.bf16.mxu0 %v5170_v5 }
 0x108   :  { %4384 = vmatprep.subr.bf16.mxu0 %v5168_v1 }
 0x109   :  { %4353 = vmatpush3.bf16.msra.mxu1 %v4804_v31  ;;  %v4821_v31 = vld [vmem:[%s6397_s1 + $0x30] sm:$0xff]  }
 0x10a   :  { %4354 = vmatprep.subr.bf16.mxu1 %v5168_v1 }
 0x10d   :  { %4355 = vmatpush3.bf16.msra.mxu1 %v4805_v32 }
 0x10e   :  { %4356 = vmatprep.subr.bf16.mxu1 %v5168_v1  ;;  %3911 = vmatmul.mubr.msk.bf16.gmra.mrb[12].mxu0 %vm140_vm2, %v4817_v26 }
 0x10f   :  { %237 = vmatprep.mubr.bf16.mxu0 %v5170_v5 }
 0x111   :  { %4357 = vmatpush3.bf16.msra.mxu1 %v4806_v33 }
 0x112   :  { %4358 = vmatprep.subr.bf16.mxu1 %v5168_v1 }
 0x115   :  { %4359 = vmatpush3.bf16.msra.mxu1 %v4807_v49 }
 0x116   :  { %4360 = vmatprep.subr.bf16.mxu1 %v5168_v1  ;;  %3912 = vmatmul.mubr.msk.bf16.gmra.mrb[16].mxu0 %vm140_vm2, %v4818_v29 }
 0x117   :  { %247 = vmatprep.mubr.bf16.mxu0 %v5170_v5 }
 0x119   :  { %4361 = vmatpush3.bf16.msra.mxu1 %v4808_v50 }
 0x11a   :  { %4362 = vmatprep.subr.bf16.mxu1 %v5168_v1 }
 0x11d   :  { %4363 = vmatpush3.bf16.msra.mxu1 %v4809_v51 }
 0x11e   :  { %4364 = vmatprep.subr.bf16.mxu1 %v5168_v1  ;;  %3913 = vmatmul.mubr.msk.bf16.gmra.mrb[20].mxu0 %vm140_vm2, %v4820_v30 }
 0x11f   :  { %257 = vmatprep.mubr.bf16.mxu0 %v5170_v5 }
 0x121   :  { %4365 = vmatpush3.bf16.msra.mxu1 %v4810_v52 }
 0x122   :  { %4370 = vmatprep.subr.bf16.mxu1 %v5168_v1 }
 0x126   :  { %3914 = vmatmul.mubr.msk.bf16.gmra.mrb[24].mxu0 %vm140_vm2, %v4821_v31 }
 0x127   :  { %267 = vmatprep.mubr.bf16.mxu0 %v5170_v5  ;;  %v4823_v5 = vld [vmem:[%s6397_s1 + $0x38] sm:$0xff]   ;;  %s4026_s1 = sld [smem:[#allocation5 + $0x4]] }
 0x12e   :  { %3915 = vmatmul.mubr.msk.bf16.gmra.mrb[28].mxu0 %vm140_vm2, %v4823_v5 }
 0x12f   :  { %4386 = vmatprep.mubr.msk.bf16.mxu0 %vm5169_vm0, %v5168_v1 }
 0x1d0   :  { %v209_v37 = vpop.f32.mrb[4].mxu0 }
 0x1d1   :  { %v211_v38 = vpop.f32.mrb[5].mxu0 }
 0x1d2   :  { %v212_v41 = vadd.f32 %v211_v38, %v5349_v40 }
 0x1d4   :  { %284 = vst.msk [vmem:[#allocation3 + $0x28] sm:$0xff] %vm279_vm3, %v212_v41 }
 0x1d7   :  { %v465_v53 = vpop.f32.mrb[4].mxu1 }
 0x1d8   :  { %v466_v54 = vadd.f32 %v465_v53, %v200_v42  ;;  %v4348_v55 = vpop.f32.mrb[5].mxu1  ;;  %v213_v42 = vpop.f32.mrb[6].mxu0 }
 0x1d9   :  { %v468_v56 = vpop.f32.mrb[6].mxu1  ;;  %v5465_v43 = vadd.f32 %v213_v42, %v5347_v39  ;;  %v215_v44 = vpop.f32.mrb[7].mxu0 }
 0x1da   :  { %v469_v57 = vadd.f32 %v468_v56, %v204_v46  ;;  %v4349_v58 = vpop.f32.mrb[7].mxu1  ;;  %4940 = vtanh.f32 %v466_v54  ;;  %v216_v45 = vadd.f32 %v215_v44, %v5349_v40  ;;  %v219_v46 = vpop.f32.mrb[8].mxu0 }
 0x1db   :  { %v5471_v47 = vadd.f32 %v219_v46, %v5347_v39  ;;  %v221_v48 = vpop.f32.mrb[9].mxu0 }
 0x1dc   :  { %4942 = vtanh.f32 %v469_v57  ;;  %286 = vst.msk [vmem:[#allocation3 + $0x38] sm:$0xff] %vm279_vm3, %v216_v45  ;;  %v222_v49 = vadd.f32 %v221_v48, %v5349_v40  ;;  %v223_v50 = vpop.f32.mrb[10].mxu0 }
 0x1dd   :  { %v5475_v51 = vadd.f32 %v223_v50, %v5347_v39  ;;  %v225_v52 = vpop.f32.mrb[11].mxu0 }
 0x1de   :  { %288 = vst.msk [vmem:[#allocation3 + $0x48] sm:$0xff] %vm279_vm3, %v222_v49  ;;  %v226_v53 = vadd.f32 %v225_v52, %v5349_v40 }
 0x1e0   :  { %290 = vst.msk [vmem:[#allocation3 + $0x58] sm:$0xff] %vm279_vm3, %v226_v53 }
 0x1e1   :  { %v229_v54 = vpop.f32.mrb[12].mxu0 }
 0x1e2   :  { %v230_v55 = vadd.f32 %v229_v54, %v5347_v39  ;;  %v231_v56 = vpop.f32.mrb[13].mxu0  ;;  %v753_v54 = vpop.permute.xlu1 %752 }
 0x1e3   :  { %v232_v57 = vadd.f32 %v231_v56, %v5349_v40  ;;  %v233_v58 = vpop.f32.mrb[14].mxu0 }
 0x1e4   :  { %v4941_v59 = vpop.eup %4940  ;;  %291 = vst [vmem:[#allocation3 + $0x60] sm:$0xff] %v230_v55  ;;  %v5516_v55 = vld [vmem:[%s6408_s12] ss:$0 sm:$0xff] }
 0x1e5   :  { %292 = vst.msk [vmem:[#allocation3 + $0x68] sm:$0xff] %vm279_vm3, %v232_v57 }
 0x1e6   :  { %v4943_v60 = vpop.eup %4942  ;;  %v758_v56 = vpop.permute.xlu1 %757 }
 0x1e7   :  { %v474_v61 = vpack.c.bf16 %v4943_v60, %v4941_v59  ;;  %v234_v59 = vadd.f32 %v233_v58, %v5347_v39  ;;  %v235_v60 = vpop.f32.mrb[15].mxu0 }
 0x1e9   :  { %4367 = vmatmul.mubr.bf16.vlgmr.msra.gmra.mrb[8].mxu1 %v474_v61  ;;  %v236_v61 = vadd.f32 %v235_v60, %v5349_v40  ;;  %293 = vst [vmem:[#allocation3 + $0x70] sm:$0xff] %v234_v59 }
 0x1ea   :  { %4374 = vmatprep.mubr.msk.bf16.mxu1 %vm5169_vm0, %v5168_v1  ;;  %4371 = vmatpush3.bf16.msra.mxu1 %v4811_v13 }
 0x1eb   :  { %4372 = vmatprep.subr.bf16.mxu1 %v5168_v1  ;;  %294 = vst.msk [vmem:[#allocation3 + $0x78] sm:$0xff] %vm279_vm3, %v236_v61 }
 0x1ee   :  { %4373 = vmatpush3.bf16.msra.mxu1 %v4812_v18 }
 0x1ef   :  { %4390 = vmatprep.subr.bf16.mxu1 %v5168_v1 }
 0x2bc   :  { %v573_v63 = vpop.f32.mrb[8].mxu1 }
 0x2bd   :  { %v574_v4 = vadd.f32 %v5378_v62, %v573_v63  ;;  %v4368_v6 = vpop.f32.mrb[9].mxu1  ;;  %v239_v63 = vpop.f32.mrb[16].mxu0 }
 0x2be   :  { %v576_v7 = vpop.f32.mrb[10].mxu1  ;;  %v241_v6 = vpop.f32.mrb[17].mxu0 }
 0x2bf   :  { %v3933_v8 = vmul.f32 -1.442695, %v574_v4  ;;  %v577_v9 = vadd.f32 %v5378_v62, %v576_v7  ;;  %v4369_v10 = vpop.f32.mrb[11].mxu1  ;;  %v240_v4 = vadd.f32 %v239_v63, %v5347_v39  ;;  %v242_v7 = vadd.f32 %v241_v6, %v5349_v40 }
 0x2c1   :  { %4944 = vpow2.f32 %v3933_v8  ;;  %v3934_v11 = vmul.f32 -1.442695, %v577_v9  ;;  %v243_v8 = vpop.f32.mrb[18].mxu0  ;;  %295 = vst [vmem:[#allocation3 + $0x80] sm:$0xff] %v240_v4  ;;  %296 = vst.msk [vmem:[#allocation3 + $0x88] sm:$0xff] %vm279_vm3, %v242_v7 }
 0x2c2   :  { %v244_v9 = vadd.f32 %v243_v8, %v5347_v39  ;;  %v245_v10 = vpop.f32.mrb[19].mxu0 }
 0x2c3   :  { %4946 = vpow2.f32 %v3934_v11  ;;  %v246_v11 = vadd.f32 %v245_v10, %v5349_v40 }
 0x2c4   :  { %297 = vst [vmem:[#allocation3 + $0x90] sm:$0xff] %v244_v9 }
 0x2c5   :  { %298 = vst.msk [vmem:[#allocation3 + $0x98] sm:$0xff] %vm279_vm3, %v246_v11  ;;  %v772_v11 = vpop.permute.xlu1 %771 }
 0x2cb   :  { %v4945_v12 = vpop.eup %4944 }
 0x2cc   :  { %v586_v14 = vadd.f32 1.0, %v4945_v12  ;;  %v249_v12 = vpop.f32.mrb[20].mxu0 }
 0x2cd   :  { %v4947_v16 = vpop.eup %4946  ;;  %v250_v13 = vadd.f32 %v249_v12, %v5347_v39 }
 0x2ce   :  { %4948 = vrcp.f32 %v586_v14  ;;  %v587_v17 = vadd.f32 1.0, %v4947_v16  ;;  %v251_v14 = vpop.f32.mrb[21].mxu0 }
 0x2cf   :  { %v252_v16 = vadd.f32 %v251_v14, %v5349_v40  ;;  %299 = vst [vmem:[#allocation3 + $0xa0] sm:$0xff] %v250_v13 }
 0x2d0   :  { %4950 = vrcp.f32 %v587_v17  ;;  %v253_v17 = vpop.f32.mrb[22].mxu0 }
 0x2d1   :  { %v254_v18 = vadd.f32 %v253_v17, %v5347_v39  ;;  %300 = vst.msk [vmem:[#allocation3 + $0xa8] sm:$0xff] %vm279_vm3, %v252_v16  ;;  %v775_v16 = vmul.f32 %v772_v11, %v5321_v28 }
 0x2d3   :  { %301 = vst [vmem:[#allocation3 + $0xb0] sm:$0xff] %v254_v18 }
 0x2d8   :  { %v5390_v19 = vpop.eup %4948 }
 0x2d9   :  { %594 = vrot.lane.b32.xlu0 %v5390_v19, %s5171_s25 }
 0x2da   :  { %v5394_v20 = vpop.eup %4950 }
 0x2db   :  { %v743_v4 = vsub.f32 1.0, %v5394_v20  ;;  %v747_v10 = vmul.f32 %v5394_v20, %v5321_v28 }
 0x2dd   :  { %596 = vrot.lane.b32.xlu0 %v5394_v20, %s5171_s25  ;;  %v4826_v20 = vld [vmem:[%s6405_s9] sm:$0xff]  }
 0x2e1   :  { %766 = vperm.xlu0 %4794, %v762_v21   ;;  %v255_v21 = vpop.f32.mrb[23].mxu0 }
 0x2e2   :  { %v256_v22 = vadd.f32 %v255_v21, %v5349_v40  ;;  %v259_v23 = vpop.f32.mrb[24].mxu0 }
 0x2e3   :  { %v260_v24 = vadd.f32 %v259_v23, %v5347_v39  ;;  %v261_v3 = vpop.f32.mrb[25].mxu0 }
 0x2e4   :  { %302 = vst.msk [vmem:[#allocation3 + $0xb8] sm:$0xff] %vm279_vm3, %v256_v22  ;;  %v262_v25 = vadd.f32 %v261_v3, %v5349_v40  ;;  %v263_v26 = vpop.f32.mrb[26].mxu0  ;;  %v4828_v3 = vld [vmem:[%s6405_s9 + $0x10] sm:$0xff]  }
 0x2e5   :  { %303 = vst [vmem:[#allocation3 + $0xc0] sm:$0xff] %v260_v24  ;;  %v264_v29 = vadd.f32 %v263_v26, %v5347_v39  ;;  %v265_v30 = vpop.f32.mrb[27].mxu0  ;;  %v4827_v24 = vld [vmem:[%s6405_s9 + $0x8] sm:$0xff]  }
 0x2e6   :  { %304 = vst.msk [vmem:[#allocation3 + $0xc8] sm:$0xff] %vm279_vm3, %v262_v25  ;;  %v266_v31 = vadd.f32 %v265_v30, %v5349_v40  ;;  %v269_v44 = vpop.f32.mrb[28].mxu0  ;;  %v4829_v25 = vld [vmem:[%s6405_s9 + $0x18] sm:$0xff]  }
 0x2e7   :  { %305 = vst [vmem:[#allocation3 + $0xd0] sm:$0xff] %v264_v29  ;;  %v270_v45 = vadd.f32 %v269_v44, %v5347_v39  ;;  %v271_v46 = vpop.f32.mrb[29].mxu0  ;;  %v4831_v44 = vld [vmem:[%s6405_s9 + $0x28] sm:$0xff]  }
 0x2e8   :  { %306 = vst.msk [vmem:[#allocation3 + $0xd8] sm:$0xff] %vm279_vm3, %v266_v31  ;;  %v272_v48 = vadd.f32 %v271_v46, %v5349_v40  ;;  %v273_v49 = vpop.f32.mrb[30].mxu0  ;;  %v4833_v46 = vld [vmem:[%s6405_s9 + $0x38] sm:$0xff]  }
 0x2e9   :  { %307 = vst [vmem:[#allocation3 + $0xe0] sm:$0xff] %v270_v45  ;;  %v274_v50 = vadd.f32 %v273_v49, %v5347_v39  ;;  %v275_v52 = vpop.f32.mrb[31].mxu0  ;;  %v4832_v45 = vld [vmem:[%s6405_s9 + $0x30] sm:$0xff]  }
 0x2ea   :  { %308 = vst.msk [vmem:[#allocation3 + $0xe8] sm:$0xff] %vm279_vm3, %v272_v48  ;;  %v276_v53 = vadd.f32 %v275_v52, %v5349_v40  ;;  %v746_v40 = vmul.f32 %v5390_v19, %v5319_v27 }
 0x2eb   :  { %309 = vst [vmem:[#allocation3 + $0xf0] sm:$0xff] %v274_v50 }
 0x2ec   :  { %310 = vst.msk [vmem:[#allocation3 + $0xf8] sm:$0xff] %vm279_vm3, %v276_v53 }
 0x34b   :  { %v595_v32 = vpop.permute.xlu0 %594 }
 0x34c   :  { %v600_v34 = vmul.f32 %v595_v32, %v5319_v27  ;;  %v343_v32 = vld [vmem:[#allocation3 + $0x8] sm:$0xff] }
 0x34f   :  { %v597_v33 = vpop.permute.xlu0 %596 }
 0x350   :  { %v601_v35 = vmul.f32 %v597_v33, %v5321_v28  ;;  %v4825_v28 = vld [vmem:[%s6403_s7 + $0x8] sm:$0xff]  }
 0x352   :  { %v602_v36 = vpack.c.bf16 %v601_v35, %v600_v34 }
 0x354   :  { %4375 = vmatmul.mubr.msk.bf16.vlgmr.msra.gmra.mrb[12].mxu1 %vm57_vm1, %v602_v36  ;;  %v345_v36 = vld [vmem:[#allocation3 + $0x18] sm:$0xff] }
 0x355   :  { %4391 = vmatpush3.bf16.msra.mxu1 %v5259_v0  ;;  %4394 = vmatprep.mubr.msk.bf16.mxu1 %vm5169_vm0, %v5168_v1  ;;  %v4822_v0 = vld [vmem:[%s6407_s11 + $0x18] sm:$0xff]  }
 0x356   :  { %4392 = vmatprep.subr.bf16.mxu1 %v5168_v1  ;;  %4385 = vmatpush3.bf16.msra.mxu0 %v4822_v0 }
 0x357   :  { %4406 = vmatprep.subr.bf16.mxu0 %v5168_v1 }
 0x359   :  { %4393 = vmatpush3.bf16.msra.mxu1 %v5266_v2  ;;  %v5461_v2 = vadd.f32 %v209_v37, %v5347_v39  ;;  %v742_v39 = vsub.f32 1.0, %v5390_v19 }
 0x35a   :  { %4398 = vmatprep.subr.bf16.mxu1 %v5168_v1 }
 0x360   :  { %v767_v7 = vpop.permute.xlu0 %766 }
 0x361   :  { %v774_v12 = vmul.f32 %v767_v7, %v5319_v27  ;;  %v4824_v27 = vld [vmem:[%s6403_s7] sm:$0xff]  }
 0x427   :  { %v656_v33 = vpop.f32.mrb[12].mxu1 }
 0x428   :  { %v657_v34 = vadd.f32 %v656_v33, %v343_v32  ;;  %v4376_v35 = vpop.f32.mrb[13].mxu1 }
 0x429   :  { %v659_v5 = vpop.f32.mrb[14].mxu1 }
 0x42a   :  { %v660_v0 = vadd.f32 %v659_v5, %v345_v36  ;;  %v4377_v37 = vpop.f32.mrb[15].mxu1  ;;  %4952 = vtanh.f32 %v657_v34  ;;  %v845_v34 = vstv %s3945_s24 }
 0x42c   :  { %4954 = vtanh.f32 %v660_v0 }
 0x434   :  { %v4953_v38 = vpop.eup %4952 }
 0x436   :  { %v4955_v41 = vpop.eup %4954 }
 0x437   :  { %v665_v42 = vpack.c.bf16 %v4955_v41, %v4953_v38 }
 0x439   :  { %4387 = vmatmul.mubr.msk.bf16.vlgmr.msra.gmra.mrb[32].mxu0 %vm279_vm3, %v665_v42  ;;  %v4830_v42 = vld [vmem:[%s6405_s9 + $0x20] sm:$0xff]  }
 0x43a   :  { %4422 = vmatprep.mubr.msk.bf16.mxu0 %vm5169_vm0, %v5168_v1  ;;  %4407 = vmatpush3.bf16.msra.mxu0 %v4826_v20  ;;  %v4838_v20 = vld [vmem:[%s6407_s11 + $0x10] sm:$0xff]  }
 0x43b   :  { %4408 = vmatprep.subr.bf16.mxu0 %v5168_v1 }
 0x43e   :  { %4409 = vmatpush3.bf16.msra.mxu0 %v4827_v24  ;;  %v4839_v24 = vld [vmem:[%s6407_s11 + $0x18] sm:$0xff]  }
 0x43f   :  { %4410 = vmatprep.subr.bf16.mxu0 %v5168_v1 }
 0x442   :  { %4411 = vmatpush3.bf16.msra.mxu0 %v4828_v3  ;;  %v796_v3 = vld [vmem:[#allocation3 + $0x28] sm:$0xff] }
 0x443   :  { %4412 = vmatprep.subr.bf16.mxu0 %v5168_v1 }
 0x446   :  { %4413 = vmatpush3.bf16.msra.mxu0 %v4829_v25 }
 0x447   :  { %4414 = vmatprep.subr.bf16.mxu0 %v5168_v1 }
 0x44a   :  { %4415 = vmatpush3.bf16.msra.mxu0 %v4830_v42 }
 0x44b   :  { %4416 = vmatprep.subr.bf16.mxu0 %v5168_v1 }
 0x44e   :  { %4417 = vmatpush3.bf16.msra.mxu0 %v4831_v44 }
 0x44f   :  { %4418 = vmatprep.subr.bf16.mxu0 %v5168_v1 }
 0x452   :  { %4419 = vmatpush3.bf16.msra.mxu0 %v4832_v45 }
 0x453   :  { %4420 = vmatprep.subr.bf16.mxu0 %v5168_v1 }
 0x456   :  { %4421 = vmatpush3.bf16.msra.mxu0 %v4833_v46 }
 0x457   :  { %4454 = vmatprep.subr.bf16.mxu0 %v5168_v1 }
 0x50c   :  { %v735_v57 = vpop.f32.mrb[32].mxu0 }
 0x50d   :  { %v736_v58 = vadd.f32 %v5516_v55, %v735_v57  ;;  %v4388_v59 = vpop.f32.mrb[33].mxu0 }
 0x50e   :  { %v738_v60 = vpop.f32.mrb[34].mxu0 }
 0x50f   :  { %v744_v61 = vmul.f32 %v742_v39, %v736_v58  ;;  %v739_v63 = vadd.f32 %v5516_v55, %v738_v60  ;;  %v4389_v6 = vpop.f32.mrb[35].mxu0  ;;  %v4834_v39 = vld [vmem:[%s6404_s8] sm:$0xff]  }
 0x511   :  { %v748_v8 = vadd.f32 %v746_v40, %v744_v61  ;;  %v745_v9 = vmul.f32 %v743_v4, %v739_v63 }
 0x513   :  { %v760_v13 = vmul.f32 %v753_v54, %v748_v8  ;;  %v749_v14 = vadd.f32 %v747_v10, %v745_v9  ;;  %v4835_v9 = vld [vmem:[%s6404_s8 + $0x8] sm:$0xff]  }
 0x515   :  { %v776_v17 = vadd.f32 %v774_v12, %v760_v13  ;;  %v761_v19 = vmul.f32 %v758_v56, %v749_v14  ;;  %v3946_v13 = vld [vmem:[%s6398_s2 + $0x10] sm:$0xff]  ;;  %v3947_v14 = vld [vmem:[%s6398_s2 + $0x18] sm:$0xff] }
 0x517   :  { %v4134_v18 = vpack.c.bf16 %v776_v17, %v776_v17  ;;  %v777_v21 = vadd.f32 %v775_v16, %v761_v19  ;;  %v1201_v16 = vsub.f32 1.0, %v3946_v13 }
 0x519   :  { %787 = vst.msk [vmem:[#allocation6] sm:$0xf] %vm786_vm4, %v4134_v18  ;;  %v4135_v22 = vpack.c.bf16 %v777_v21, %v777_v21  ;;  %v778_v23 = vpack.c.bf16 %v777_v21, %v776_v17 }
 0x51b   :  { %788 = vst.msk [vmem:[#allocation6 + $0x4] sm:$0xf] %vm786_vm4, %v4135_v22  ;;  %4395 = vmatmul.mubr.msk.bf16.vlgmr.msra.gmra.mrb[16].mxu1 %vm57_vm1, %v778_v23 }
 0x51c   :  { %4402 = vmatprep.mubr.msk.bf16.mxu1 %vm5169_vm0, %v5168_v1  ;;  %4399 = vmatpush3.bf16.msra.mxu1 %v4824_v27  ;;  %v4836_v27 = vld [vmem:[%s6407_s11] sm:$0xff]  }
 0x51d   :  { %4400 = vmatprep.subr.bf16.mxu1 %v5168_v1 }
 0x520   :  { %4401 = vmatpush3.bf16.msra.mxu1 %v4825_v28  ;;  %v4837_v28 = vld [vmem:[%s6407_s11 + $0x8] sm:$0xff]  }
 0x521   :  { %4426 = vmatprep.subr.bf16.mxu1 %v5168_v1 }
 0x5ee   :  { %v836_v26 = vpop.f32.mrb[16].mxu1 }
 0x5ef   :  { %v837_v29 = vadd.f32 %v5315_v15, %v836_v26  ;;  %v4396_v30 = vpop.f32.mrb[17].mxu1 }
 0x5f0   :  { %v839_v31 = vpop.f32.mrb[18].mxu1  ;;  %v798_v30 = vld [vmem:[#allocation3 + $0x38] sm:$0xff] }
 0x5f1   :  { %4956 = vtanh.f32 %v837_v29  ;;  %v840_v32 = vadd.f32 %v5315_v15, %v839_v31  ;;  %v4397_v33 = vpop.f32.mrb[19].mxu1 }
 0x5f3   :  { %4958 = vtanh.f32 %v840_v32 }
 0x5fb   :  { %v4957_v35 = vpop.eup %4956 }
 0x5fc   :  { %v846_v36 = vmul.f32 %v4957_v35, %v845_v34 }
 0x5fd   :  { %v4959_v5 = vpop.eup %4958 }
 0x5fe   :  { %v847_v0 = vmul.f32 %v4959_v5, %v845_v34  ;;  %v5559_v37 = vadd.f32 %v846_v36, %v776_v17  ;;  %v1202_v17 = vsub.f32 1.0, %v3947_v14  ;;  %v5634_v5 = vld [vmem:[%s6399_s3] sm:$0xff]  }
 0x600   :  { %v5561_v38 = vadd.f32 %v847_v0, %v777_v21  ;;  %v5643_v0 = vld [vmem:[%s6399_s3 + $0x8] sm:$0xff]  }
 0x602   :  { %v850_v41 = vpack.c.bf16 %v5561_v38, %v5559_v37 }
 0x604   :  { %4403 = vmatmul.mubr.msk.bf16.vlgmr.msra.gmra.mrb[20].mxu1 %vm57_vm1, %v850_v41 }
 0x605   :  { %4430 = vmatprep.mubr.msk.bf16.mxu1 %vm5169_vm0, %v5168_v1  ;;  %4427 = vmatpush3.bf16.msra.mxu1 %v4834_v39 }
 0x606   :  { %4428 = vmatprep.subr.bf16.mxu1 %v5168_v1 }
 0x609   :  { %4429 = vmatpush3.bf16.msra.mxu1 %v4835_v9 }
 0x60a   :  { %4434 = vmatprep.subr.bf16.mxu1 %v5168_v1 }
 0x6d7   :  { %v904_v48 = vpop.f32.mrb[20].mxu1 }
 0x6d8   :  { %v905_v49 = vadd.f32 %v904_v48, %v5461_v2  ;;  %v4404_v50 = vpop.f32.mrb[21].mxu1 }
 0x6d9   :  { %v907_v52 = vpop.f32.mrb[22].mxu1 }
 0x6da   :  { %v908_v53 = vadd.f32 %v907_v52, %v5465_v43  ;;  %v4405_v54 = vpop.f32.mrb[23].mxu1  ;;  %4960 = vtanh.f32 %v905_v49 }
 0x6dc   :  { %4962 = vtanh.f32 %v908_v53 }
 0x6e4   :  { %v4961_v56 = vpop.eup %4960 }
 0x6e6   :  { %v4963_v57 = vpop.eup %4962 }
 0x6e7   :  { %v913_v58 = vpack.c.bf16 %v4963_v57, %v4961_v56 }
 0x6e9   :  { %4423 = vmatmul.mubr.bf16.vlgmr.msra.gmra.mrb[36].mxu0 %v913_v58 }
 0x6ea   :  { %4458 = vmatprep.mubr.msk.bf16.mxu0 %vm5169_vm0, %v5168_v1 }
 0x7bc   :  { %v1012_v2 = vpop.f32.mrb[36].mxu0 }
 0x7bd   :  { %v1013_v43 = vadd.f32 %v5378_v62, %v1012_v2  ;;  %v4424_v59 = vpop.f32.mrb[37].mxu0 }
 0x7be   :  { %v1015_v60 = vpop.f32.mrb[38].mxu0 }
 0x7bf   :  { %v3960_v61 = vmul.f32 -1.442695, %v1013_v43  ;;  %v1016_v40 = vadd.f32 %v5378_v62, %v1015_v60  ;;  %v4425_v63 = vpop.f32.mrb[39].mxu0 }
 0x7c1   :  { %4964 = vpow2.f32 %v3960_v61  ;;  %v3961_v4 = vmul.f32 -1.442695, %v1016_v40 }
 0x7c3   :  { %4966 = vpow2.f32 %v3961_v4 }
 0x7cb   :  { %v4965_v6 = vpop.eup %4964 }
 0x7cc   :  { %v1025_v7 = vadd.f32 1.0, %v4965_v6 }
 0x7cd   :  { %v4967_v8 = vpop.eup %4966 }
 0x7ce   :  { %4968 = vrcp.f32 %v1025_v7  ;;  %v1026_v10 = vadd.f32 1.0, %v4967_v8 }
 0x7d0   :  { %4970 = vrcp.f32 %v1026_v10  ;;  %v4842_v10 = vld [vmem:[%s6405_s9] sm:$0xff]  }
 0x7d8   :  { %v4969_v11 = vpop.eup %4968 }
 0x7d9   :  { %1033 = vrot.lane.b32.xlu1 %v4969_v11, %s5171_s25  ;;  %v1181_v46 = vsub.f32 1.0, %v4969_v11  ;;  %v1185_v52 = vmul.f32 %v4969_v11, %v5559_v37  ;;  %v4843_v11 = vld [vmem:[%s6405_s9 + $0x8] sm:$0xff]  }
 0x7da   :  { %v5599_v12 = vpop.eup %4970 }
 0x7db   :  { %1035 = vrot.lane.b32.xlu0 %v5599_v12, %s5171_s25  ;;  %v1182_v54 = vsub.f32 1.0, %v5599_v12  ;;  %v1186_v2 = vmul.f32 %v5599_v12, %v5561_v38  ;;  %v4844_v12 = vld [vmem:[%s6405_s9 + $0x10] sm:$0xff]  }
 0x7dd   :  { %1191 = vperm.xlu1 %4793, %v3946_v13   ;;  %v4845_v13 = vld [vmem:[%s6405_s9 + $0x18] sm:$0xff]  }
 0x7df   :  { %1196 = vperm.xlu0 %4794, %v3947_v14  }
 0x7e1   :  { %1205 = vperm.xlu1 %4793, %v1201_v16  }
 0x7e3   :  { %1210 = vperm.xlu0 %4794, %v1202_v17  }
 0x84b   :  { %v1034_v19 = vpop.permute.xlu1 %1033 }
 0x84c   :  { %v1039_v21 = vmul.f32 %v1034_v19, %v5559_v37 }
 0x84d   :  { %v1036_v18 = vpop.permute.xlu0 %1035 }
 0x84e   :  { %v1040_v22 = vmul.f32 %v1036_v18, %v5561_v38 }
 0x850   :  { %v1041_v23 = vpack.c.bf16 %v1040_v22, %v1039_v21  ;;  %v1284_v22 = vstv %s3972_s28 }
 0x852   :  { %4431 = vmatmul.mubr.msk.bf16.vlgmr.msra.gmra.mrb[24].mxu1 %vm57_vm1, %v1041_v23 }
 0x853   :  { %4442 = vmatprep.mubr.msk.bf16.mxu1 %vm5169_vm0, %v5168_v1  ;;  %4435 = vmatpush3.bf16.msra.mxu1 %v4836_v27 }
 0x854   :  { %4436 = vmatprep.subr.bf16.mxu1 %v5168_v1 }
 0x857   :  { %4437 = vmatpush3.bf16.msra.mxu1 %v4837_v28 }
 0x858   :  { %4438 = vmatprep.subr.bf16.mxu1 %v5168_v1 }
 0x85b   :  { %4439 = vmatpush3.bf16.msra.mxu1 %v4838_v20 }
 0x85c   :  { %4440 = vmatprep.subr.bf16.mxu1 %v5168_v1  ;;  %v1192_v41 = vpop.permute.xlu1 %1191 }
 0x85e   :  { %v1197_v42 = vpop.permute.xlu0 %1196 }
 0x85f   :  { %4441 = vmatpush3.bf16.msra.mxu1 %v4839_v24 }
 0x860   :  { %4446 = vmatprep.subr.bf16.mxu1 %v5168_v1  ;;  %v1206_v57 = vpop.permute.xlu1 %1205 }
 0x861   :  { %v1213_v59 = vmul.f32 %v1206_v57, %v5559_v37  ;;  %v4840_v37 = vld [vmem:[%s6403_s7] sm:$0xff]  }
 0x862   :  { %v1211_v43 = vpop.permute.xlu0 %1210  ;;  %4455 = vmatpush3.bf16.msra.mxu0 %v4840_v37  ;;  %v4854_v37 = vld [vmem:[%s6407_s11 + $0x10] sm:$0xff]  }
 0x863   :  { %v1214_v40 = vmul.f32 %v1211_v43, %v5561_v38  ;;  %4456 = vmatprep.subr.bf16.mxu0 %v5168_v1  ;;  %v4841_v38 = vld [vmem:[%s6403_s7 + $0x8] sm:$0xff]   ;;  %v3973_v43 = vld [vmem:[%s6398_s2 + $0x20] sm:$0xff] }
 0x866   :  { %4457 = vmatpush3.bf16.msra.mxu0 %v4841_v38  ;;  %v4855_v38 = vld [vmem:[%s6407_s11 + $0x18] sm:$0xff]  }
 0x867   :  { %4482 = vmatprep.subr.bf16.mxu0 %v5168_v1 }
 0x925   :  { %v1095_v25 = vpop.f32.mrb[24].mxu1 }
 0x926   :  { %v1096_v26 = vadd.f32 %v1095_v25, %v796_v3  ;;  %v4432_v29 = vpop.f32.mrb[25].mxu1 }
 0x927   :  { %v1098_v31 = vpop.f32.mrb[26].mxu1  ;;  %v4848_v29 = vld [vmem:[%s6405_s9 + $0x30] sm:$0xff]  }
 0x928   :  { %v1099_v32 = vadd.f32 %v1098_v31, %v798_v30  ;;  %v4433_v33 = vpop.f32.mrb[27].mxu1  ;;  %4972 = vtanh.f32 %v1096_v26  ;;  %v4847_v26 = vld [vmem:[%s6405_s9 + $0x28] sm:$0xff]   ;;  %v4849_v30 = vld [vmem:[%s6405_s9 + $0x38] sm:$0xff]  }
 0x92a   :  { %4974 = vtanh.f32 %v1099_v32 }
 0x932   :  { %v4973_v34 = vpop.eup %4972 }
 0x934   :  { %v4975_v35 = vpop.eup %4974 }
 0x935   :  { %v1104_v36 = vpack.c.bf16 %v4975_v35, %v4973_v34 }
 0x937   :  { %4443 = vmatmul.mubr.msk.bf16.vlgmr.msra.gmra.mrb[28].mxu1 %vm279_vm3, %v1104_v36 }
 0x938   :  { %4447 = vmatpush3.bf16.msra.mxu1 %v5634_v5  ;;  %4450 = vmatprep.mubr.msk.bf16.mxu1 %vm5169_vm0, %v5168_v1 }
 0x939   :  { %4448 = vmatprep.subr.bf16.mxu1 %v5168_v1 }
 0x93c   :  { %4449 = vmatpush3.bf16.msra.mxu1 %v5643_v0 }
 0x93d   :  { %4462 = vmatprep.subr.bf16.mxu1 %v5168_v1 }
 0xa0a   :  { %v1174_v44 = vpop.f32.mrb[28].mxu1 }
 0xa0b   :  { %v1175_v45 = vadd.f32 %v5516_v55, %v1174_v44  ;;  %v4444_v48 = vpop.f32.mrb[29].mxu1 }
 0xa0c   :  { %v1177_v49 = vpop.f32.mrb[30].mxu1 }
 0xa0d   :  { %v1183_v50 = vmul.f32 %v1181_v46, %v1175_v45  ;;  %v1178_v53 = vadd.f32 %v5516_v55, %v1177_v49  ;;  %v4445_v56 = vpop.f32.mrb[31].mxu1  ;;  %v4850_v45 = vld [vmem:[%s6404_s8] sm:$0xff]  }
 0xa0f   :  { %v1187_v58 = vadd.f32 %v1185_v52, %v1183_v50  ;;  %v1184_v39 = vmul.f32 %v1182_v54, %v1178_v53 }
 0xa11   :  { %v1199_v60 = vmul.f32 %v1192_v41, %v1187_v58  ;;  %v1188_v61 = vadd.f32 %v1186_v2, %v1184_v39  ;;  %v4851_v58 = vld [vmem:[%s6404_s8 + $0x8] sm:$0xff]  }
 0xa13   :  { %v1215_v63 = vadd.f32 %v1213_v59, %v1199_v60  ;;  %v1200_v4 = vmul.f32 %v1197_v42, %v1188_v61  ;;  %v3974_v59 = vld [vmem:[%s6398_s2 + $0x28] sm:$0xff]  ;;  %v1640_v60 = vsub.f32 1.0, %v3973_v43 }
 0xa14   :  { %v1641_v61 = vsub.f32 1.0, %v3974_v59 }
 0xa15   :  { %v4136_v6 = vpack.c.bf16 %v1215_v63, %v1215_v63  ;;  %v1216_v7 = vadd.f32 %v1214_v40, %v1200_v4 }
 0xa17   :  { %1226 = vst.msk [vmem:[#allocation6 + $0x8] sm:$0xf] %vm786_vm4, %v4136_v6  ;;  %v4137_v8 = vpack.c.bf16 %v1216_v7, %v1216_v7  ;;  %v1217_v9 = vpack.c.bf16 %v1216_v7, %v1215_v63 }
 0xa19   :  { %1227 = vst.msk [vmem:[#allocation6 + $0xc] sm:$0xf] %vm786_vm4, %v4137_v8  ;;  %4451 = vmatmul.mubr.msk.bf16.vlgmr.msra.gmra.mrb[32].mxu1 %vm57_vm1, %v1217_v9  ;;  %v4852_v8 = vld [vmem:[%s6407_s11] sm:$0xff]   ;;  %v4853_v9 = vld [vmem:[%s6407_s11 + $0x8] sm:$0xff]  }
 0xa1a   :  { %4478 = vmatprep.mubr.msk.bf16.mxu1 %vm5169_vm0, %v5168_v1  ;;  %4463 = vmatpush3.bf16.msra.mxu1 %v4842_v10  ;;  %v1235_v10 = vld [vmem:[#allocation3 + $0x48] sm:$0xff] }
 0xa1b   :  { %4464 = vmatprep.subr.bf16.mxu1 %v5168_v1 }
 0xa1e   :  { %4465 = vmatpush3.bf16.msra.mxu1 %v4843_v11 }
 0xa1f   :  { %4466 = vmatprep.subr.bf16.mxu1 %v5168_v1 }
 0xa22   :  { %4467 = vmatpush3.bf16.msra.mxu1 %v4844_v12 }
 0xa23   :  { %4468 = vmatprep.subr.bf16.mxu1 %v5168_v1 }
 0xa26   :  { %4469 = vmatpush3.bf16.msra.mxu1 %v4845_v13 }
 0xa27   :  { %4470 = vmatprep.subr.bf16.mxu1 %v5168_v1 }
 0xaec   :  { %v1275_v14 = vpop.f32.mrb[32].mxu1 }
 0xaed   :  { %v1276_v16 = vadd.f32 %v5315_v15, %v1275_v14  ;;  %v4452_v17 = vpop.f32.mrb[33].mxu1  ;;  %v1237_v14 = vld [vmem:[#allocation3 + $0x58] sm:$0xff] }
 0xaee   :  { %v1278_v19 = vpop.f32.mrb[34].mxu1 }
 0xaef   :  { %4976 = vtanh.f32 %v1276_v16  ;;  %v1279_v18 = vadd.f32 %v5315_v15, %v1278_v19  ;;  %v4453_v21 = vpop.f32.mrb[35].mxu1  ;;  %v4846_v15 = vld [vmem:[%s6405_s9 + $0x20] sm:$0xff]  }
 0xaf0   :  { %4471 = vmatpush3.bf16.msra.mxu1 %v4846_v15 }
 0xaf1   :  { %4978 = vtanh.f32 %v1279_v18  ;;  %4472 = vmatprep.subr.bf16.mxu1 %v5168_v1 }
 0xaf4   :  { %4473 = vmatpush3.bf16.msra.mxu1 %v4847_v26 }
 0xaf5   :  { %4474 = vmatprep.subr.bf16.mxu1 %v5168_v1 }
 0xaf8   :  { %4475 = vmatpush3.bf16.msra.mxu1 %v4848_v29 }
 0xaf9   :  { %v4977_v23 = vpop.eup %4976  ;;  %4476 = vmatprep.subr.bf16.mxu1 %v5168_v1 }
 0xafa   :  { %v1285_v27 = vmul.f32 %v4977_v23, %v1284_v22 }
 0xafb   :  { %v4979_v28 = vpop.eup %4978 }
 0xafc   :  { %v1286_v20 = vmul.f32 %v4979_v28, %v1284_v22  ;;  %v5686_v24 = vadd.f32 %v1285_v27, %v1215_v63  ;;  %4477 = vmatpush3.bf16.msra.mxu1 %v4849_v30 }
 0xafd   :  { %4510 = vmatprep.subr.bf16.mxu1 %v5168_v1 }
 0xafe   :  { %v5688_v3 = vadd.f32 %v1286_v20, %v1216_v7 }
 0xb00   :  { %v1289_v25 = vpack.c.bf16 %v5688_v3, %v5686_v24 }
 0xb02   :  { %4459 = vmatmul.mubr.msk.bf16.vlgmr.msra.gmra.mrb[40].mxu0 %vm57_vm1, %v1289_v25 }
 0xb03   :  { %4486 = vmatprep.mubr.msk.bf16.mxu0 %vm5169_vm0, %v5168_v1  ;;  %4483 = vmatpush3.bf16.msra.mxu0 %v4850_v45 }
 0xb04   :  { %4484 = vmatprep.subr.bf16.mxu0 %v5168_v1 }
 0xb07   :  { %4485 = vmatpush3.bf16.msra.mxu0 %v4851_v58  ;;  %v4861_v58 = vld [vmem:[%s6405_s9 + $0x18] sm:$0xff]  }
 0xb08   :  { %4490 = vmatprep.subr.bf16.mxu0 %v5168_v1 }
 0xbd5   :  { %v1343_v31 = vpop.f32.mrb[40].mxu0 }
 0xbd6   :  { %v1344_v32 = vadd.f32 %v1343_v31, %v5471_v47  ;;  %v4460_v33 = vpop.f32.mrb[41].mxu0 }
 0xbd7   :  { %v1346_v34 = vpop.f32.mrb[42].mxu0 }
 0xbd8   :  { %v1347_v35 = vadd.f32 %v1346_v34, %v5475_v51  ;;  %v4461_v36 = vpop.f32.mrb[43].mxu0  ;;  %4980 = vtanh.f32 %v1344_v32 }
 0xbda   :  { %4982 = vtanh.f32 %v1347_v35 }
 0xbe2   :  { %v4981_v41 = vpop.eup %4980 }
 0xbe4   :  { %v4983_v42 = vpop.eup %4982 }
 0xbe5   :  { %v1352_v44 = vpack.c.bf16 %v4983_v42, %v4981_v41 }
 0xbe7   :  { %4479 = vmatmul.mubr.bf16.vlgmr.msra.gmra.mrb[36].mxu1 %v1352_v44 }
 0xbe8   :  { %4514 = vmatprep.mubr.msk.bf16.mxu1 %vm5169_vm0, %v5168_v1 }
 0xcba   :  { %v1451_v47 = vpop.f32.mrb[36].mxu1 }
 0xcbb   :  { %v1452_v51 = vadd.f32 %v5378_v62, %v1451_v47  ;;  %v4480_v46 = vpop.f32.mrb[37].mxu1 }
 0xcbc   :  { %v1454_v48 = vpop.f32.mrb[38].mxu1 }
 0xcbd   :  { %v3987_v49 = vmul.f32 -1.442695, %v1452_v51  ;;  %v1455_v50 = vadd.f32 %v5378_v62, %v1454_v48  ;;  %v4481_v52 = vpop.f32.mrb[39].mxu1 }
 0xcbf   :  { %4984 = vpow2.f32 %v3987_v49  ;;  %v3988_v53 = vmul.f32 -1.442695, %v1455_v50 }
 0xcc1   :  { %4986 = vpow2.f32 %v3988_v53 }
 0xcc9   :  { %v4985_v54 = vpop.eup %4984 }
 0xcca   :  { %v1464_v56 = vadd.f32 1.0, %v4985_v54  ;;  %v4858_v54 = vld [vmem:[%s6405_s9] sm:$0xff]  }
 0xccb   :  { %v4987_v57 = vpop.eup %4986 }
 0xccc   :  { %4988 = vrcp.f32 %v1464_v56  ;;  %v1465_v39 = vadd.f32 1.0, %v4987_v57  ;;  %v4859_v56 = vld [vmem:[%s6405_s9 + $0x8] sm:$0xff]   ;;  %v4860_v57 = vld [vmem:[%s6405_s9 + $0x10] sm:$0xff]  }
 0xcce   :  { %4990 = vrcp.f32 %v1465_v39 }
 0xcd6   :  { %v4989_v2 = vpop.eup %4988 }
 0xcd7   :  { %1472 = vrot.lane.b32.xlu1 %v4989_v2, %s5171_s25  ;;  %v1620_v25 = vsub.f32 1.0, %v4989_v2  ;;  %v1624_v30 = vmul.f32 %v4989_v2, %v5686_v24  ;;  %v5804_v2 = vld [vmem:[%s6400_s4] ss:$0 sm:$0xff] }
 0xcd8   :  { %v5726_v62 = vpop.eup %4990 }
 0xcd9   :  { %1474 = vrot.lane.b32.xlu0 %v5726_v62, %s5171_s25  ;;  %v1621_v32 = vsub.f32 1.0, %v5726_v62  ;;  %v1625_v41 = vmul.f32 %v5726_v62, %v5688_v3 }
 0xcdb   :  { %1630 = vperm.xlu1 %4793, %v3973_v43  }
 0xcdd   :  { %1635 = vperm.xlu0 %4794, %v3974_v59  }
 0xcdf   :  { %1644 = vperm.xlu1 %4793, %v1640_v60  }
 0xce1   :  { %1649 = vperm.xlu0 %4794, %v1641_v61  }
 0xd49   :  { %v1473_v40 = vpop.permute.xlu1 %1472 }
 0xd4a   :  { %v1478_v4 = vmul.f32 %v1473_v40, %v5686_v24  ;;  %v1723_v40 = vstv %s3999_s29 }
 0xd4b   :  { %v1475_v63 = vpop.permute.xlu0 %1474 }
 0xd4c   :  { %v1479_v6 = vmul.f32 %v1475_v63, %v5688_v3 }
 0xd4e   :  { %v1480_v7 = vpack.c.bf16 %v1479_v6, %v1478_v4 }
 0xd50   :  { %4487 = vmatmul.mubr.msk.bf16.vlgmr.msra.gmra.mrb[44].mxu0 %vm57_vm1, %v1480_v7 }
 0xd51   :  { %4498 = vmatprep.mubr.msk.bf16.mxu0 %vm5169_vm0, %v5168_v1  ;;  %4491 = vmatpush3.bf16.msra.mxu0 %v4852_v8 }
 0xd52   :  { %4492 = vmatprep.subr.bf16.mxu0 %v5168_v1 }
 0xd55   :  { %4493 = vmatpush3.bf16.msra.mxu0 %v4853_v9 }
 0xd56   :  { %4494 = vmatprep.subr.bf16.mxu0 %v5168_v1 }
 0xd59   :  { %4495 = vmatpush3.bf16.msra.mxu0 %v4854_v37 }
 0xd5a   :  { %4496 = vmatprep.subr.bf16.mxu0 %v5168_v1  ;;  %v1631_v23 = vpop.permute.xlu1 %1630 }
 0xd5c   :  { %v1636_v27 = vpop.permute.xlu0 %1635 }
 0xd5d   :  { %4497 = vmatpush3.bf16.msra.mxu0 %v4855_v38  ;;  %v4862_v38 = vld [vmem:[%s6405_s9 + $0x20] sm:$0xff]  }
 0xd5e   :  { %4502 = vmatprep.subr.bf16.mxu0 %v5168_v1  ;;  %v1645_v34 = vpop.permute.xlu1 %1644 }
 0xd5f   :  { %v1652_v44 = vmul.f32 %v1645_v34, %v5686_v24  ;;  %v4856_v24 = vld [vmem:[%s6403_s7] sm:$0xff]  }
 0xd60   :  { %v1650_v42 = vpop.permute.xlu0 %1649  ;;  %4511 = vmatpush3.bf16.msra.mxu1 %v4856_v24 }
 0xd61   :  { %v1653_v51 = vmul.f32 %v1650_v42, %v5688_v3  ;;  %4512 = vmatprep.subr.bf16.mxu1 %v5168_v1  ;;  %v4857_v3 = vld [vmem:[%s6403_s7 + $0x8] sm:$0xff]  }
 0xd62   :  { %v4867_v42 = vld [vmem:[%s6404_s8 + $0x8] sm:$0xff]  }
 0xd64   :  { %4513 = vmatpush3.bf16.msra.mxu1 %v4857_v3 }
 0xd65   :  { %4538 = vmatprep.subr.bf16.mxu1 %v5168_v1 }
 0xe23   :  { %v1534_v11 = vpop.f32.mrb[44].mxu0 }
 0xe24   :  { %v1535_v12 = vadd.f32 %v1534_v11, %v1235_v10  ;;  %v4488_v13 = vpop.f32.mrb[45].mxu0  ;;  %v4863_v10 = vld [vmem:[%s6405_s9 + $0x28] sm:$0xff]   ;;  %v4864_v11 = vld [vmem:[%s6405_s9 + $0x30] sm:$0xff]  }
 0xe25   :  { %v1537_v16 = vpop.f32.mrb[46].mxu0  ;;  %v1673_v13 = vld [vmem:[#allocation3 + $0x60] sm:$0xff] }
 0xe26   :  { %v1538_v17 = vadd.f32 %v1537_v16, %v1237_v14  ;;  %v4489_v19 = vpop.f32.mrb[47].mxu0  ;;  %4992 = vtanh.f32 %v1535_v12  ;;  %v4865_v12 = vld [vmem:[%s6405_s9 + $0x38] sm:$0xff]  }
 0xe27   :  { %v1675_v19 = vld [vmem:[#allocation3 + $0x70] sm:$0xff] }
 0xe28   :  { %4994 = vtanh.f32 %v1538_v17 }
 0xe30   :  { %v4993_v18 = vpop.eup %4992 }
 0xe32   :  { %v4995_v21 = vpop.eup %4994 }
 0xe33   :  { %v1543_v22 = vpack.c.bf16 %v4995_v21, %v4993_v18 }
 0xe35   :  { %4499 = vmatmul.mubr.msk.bf16.vlgmr.msra.gmra.mrb[48].mxu0 %vm279_vm3, %v1543_v22 }
 0xe36   :  { %4503 = vmatpush3.bf16.msra.mxu0 %v5634_v5  ;;  %4506 = vmatprep.mubr.msk.bf16.mxu0 %vm5169_vm0, %v5168_v1 }
 0xe37   :  { %4504 = vmatprep.subr.bf16.mxu0 %v5168_v1 }
 0xe3a   :  { %4505 = vmatpush3.bf16.msra.mxu0 %v5643_v0 }
 0xe3b   :  { %4518 = vmatprep.subr.bf16.mxu0 %v5168_v1 }
 0xf08   :  { %v1613_v28 = vpop.f32.mrb[48].mxu0 }
 0xf09   :  { %v1614_v20 = vadd.f32 %v5516_v55, %v1613_v28  ;;  %v4500_v15 = vpop.f32.mrb[49].mxu0 }
 0xf0a   :  { %v1616_v26 = vpop.f32.mrb[50].mxu0  ;;  %v5842_v15 = vld [vmem:[%s6406_s10] ss:$0 sm:$0xff] }
 0xf0b   :  { %v1622_v29 = vmul.f32 %v1620_v25, %v1614_v20  ;;  %v1617_v31 = vadd.f32 %v5516_v55, %v1616_v26  ;;  %v4501_v33 = vpop.f32.mrb[51].mxu0  ;;  %v4866_v20 = vld [vmem:[%s6404_s8] sm:$0xff]  }
 0xf0d   :  { %v1626_v35 = vadd.f32 %v1624_v30, %v1622_v29  ;;  %v1623_v36 = vmul.f32 %v1621_v32, %v1617_v31 }
 0xf0f   :  { %v1638_v45 = vmul.f32 %v1631_v23, %v1626_v35  ;;  %v1627_v47 = vadd.f32 %v1625_v41, %v1623_v36 }
 0xf11   :  { %v1654_v46 = vadd.f32 %v1652_v44, %v1638_v45  ;;  %v1639_v48 = vmul.f32 %v1636_v27, %v1627_v47 }
 0xf13   :  { %v4138_v49 = vpack.c.bf16 %v1654_v46, %v1654_v46  ;;  %v1655_v50 = vadd.f32 %v1653_v51, %v1639_v48  ;;  %v4000_v51 = vld [vmem:[%s6398_s2 + $0x30] sm:$0xff] }
 0xf14   :  { %v2079_v48 = vsub.f32 1.0, %v4000_v51 }
 0xf15   :  { %1665 = vst.msk [vmem:[#allocation6 + $0x10] sm:$0xf] %vm786_vm4, %v4138_v49  ;;  %v4139_v52 = vpack.c.bf16 %v1655_v50, %v1655_v50  ;;  %v1656_v53 = vpack.c.bf16 %v1655_v50, %v1654_v46 }
 0xf17   :  { %1666 = vst.msk [vmem:[#allocation6 + $0x14] sm:$0xf] %vm786_vm4, %v4139_v52  ;;  %4507 = vmatmul.mubr.msk.bf16.vlgmr.msra.gmra.mrb[52].mxu0 %vm57_vm1, %v1656_v53 }
 0xf18   :  { %4534 = vmatprep.mubr.msk.bf16.mxu0 %vm5169_vm0, %v5168_v1  ;;  %4519 = vmatpush3.bf16.msra.mxu0 %v4858_v54  ;;  %v4868_v54 = vld [vmem:[%s6407_s11] sm:$0xff]  }
 0xf19   :  { %4520 = vmatprep.subr.bf16.mxu0 %v5168_v1 }
 0xf1c   :  { %4521 = vmatpush3.bf16.msra.mxu0 %v4859_v56  ;;  %v4869_v56 = vld [vmem:[%s6407_s11 + $0x8] sm:$0xff]  }
 0xf1d   :  { %4522 = vmatprep.subr.bf16.mxu0 %v5168_v1 }
 0xf20   :  { %4523 = vmatpush3.bf16.msra.mxu0 %v4860_v57  ;;  %v4870_v57 = vld [vmem:[%s6407_s11 + $0x10] sm:$0xff]  }
 0xf21   :  { %4524 = vmatprep.subr.bf16.mxu0 %v5168_v1 }
 0xf24   :  { %4525 = vmatpush3.bf16.msra.mxu0 %v4861_v58  ;;  %v4871_v58 = vld [vmem:[%s6407_s11 + $0x18] sm:$0xff]  }
 0xf25   :  { %4526 = vmatprep.subr.bf16.mxu0 %v5168_v1 }
 0xf28   :  { %4527 = vmatpush3.bf16.msra.mxu0 %v4862_v38 }
 0xf29   :  { %4528 = vmatprep.subr.bf16.mxu0 %v5168_v1 }
 0xf2c   :  { %4529 = vmatpush3.bf16.msra.mxu0 %v4863_v10 }
 0xf2d   :  { %4530 = vmatprep.subr.bf16.mxu0 %v5168_v1 }
 0xf30   :  { %4531 = vmatpush3.bf16.msra.mxu0 %v4864_v11 }
 0xf31   :  { %4532 = vmatprep.subr.bf16.mxu0 %v5168_v1 }
 0xf34   :  { %4533 = vmatpush3.bf16.msra.mxu0 %v4865_v12 }
 0xf35   :  { %4566 = vmatprep.subr.bf16.mxu0 %v5168_v1 }
 0xfea   :  { %v1714_v39 = vpop.f32.mrb[52].mxu0 }
 0xfeb   :  { %v1715_v62 = vadd.f32 %v5804_v2, %v1714_v39  ;;  %v4508_v43 = vpop.f32.mrb[53].mxu0  ;;  %v1674_v39 = vld [vmem:[#allocation3 + $0x68] sm:$0xff] }
 0xfec   :  { %v1717_v59 = vpop.f32.mrb[54].mxu0 }
 0xfed   :  { %4996 = vtanh.f32 %v1715_v62  ;;  %v1718_v60 = vadd.f32 %v5804_v2, %v1717_v59  ;;  %v4509_v61 = vpop.f32.mrb[55].mxu0 }
 0xfef   :  { %4998 = vtanh.f32 %v1718_v60  ;;  %v1676_v60 = vld [vmem:[#allocation3 + $0x78] sm:$0xff] }
 0xff7   :  { %v4997_v63 = vpop.eup %4996 }
 0xff8   :  { %v1724_v4 = vmul.f32 %v4997_v63, %v1723_v40 }
 0xff9   :  { %v4999_v6 = vpop.eup %4998 }
 0xffa   :  { %v1725_v7 = vmul.f32 %v4999_v6, %v1723_v40  ;;  %v5808_v8 = vadd.f32 %v1724_v4, %v1654_v46  ;;  %v4001_v46 = vld [vmem:[%s6398_s2 + $0x38] sm:$0xff] }
 0xffb   :  { %v2080_v49 = vsub.f32 1.0, %v4001_v46 }
 0xffc   :  { %v5810_v9 = vadd.f32 %v1725_v7, %v1655_v50 }
 0xffe   :  { %v1728_v37 = vpack.c.bf16 %v5810_v9, %v5808_v8 }
0x1000   :  { %4515 = vmatmul.mubr.msk.bf16.vlgmr.msra.gmra.mrb[40].mxu1 %vm57_vm1, %v1728_v37 }
0x1001   :  { %4542 = vmatprep.mubr.msk.bf16.mxu1 %vm5169_vm0, %v5168_v1  ;;  %4539 = vmatpush3.bf16.msra.mxu1 %v4866_v20 }
0x1002   :  { %4540 = vmatprep.subr.bf16.mxu1 %v5168_v1 }
0x1005   :  { %4541 = vmatpush3.bf16.msra.mxu1 %v4867_v42  ;;  %v4876_v42 = vld [vmem:[%s6405_s9 + $0x10] sm:$0xff]  }
0x1006   :  { %4546 = vmatprep.subr.bf16.mxu1 %v5168_v1 }
0x10d3   :  { %v1782_v14 = vpop.f32.mrb[40].mxu1 }
0x10d4   :  { %v1783_v16 = vadd.f32 %v1782_v14, %v1673_v13  ;;  %v4516_v17 = vpop.f32.mrb[41].mxu1 }
0x10d5   :  { %v1785_v18 = vpop.f32.mrb[42].mxu1 }
0x10d6   :  { %v1786_v21 = vadd.f32 %v1785_v18, %v1675_v19  ;;  %v4517_v22 = vpop.f32.mrb[43].mxu1  ;;  %5000 = vtanh.f32 %v1783_v16 }
0x10d8   :  { %5002 = vtanh.f32 %v1786_v21 }
0x10e0   :  { %v5001_v23 = vpop.eup %5000 }
0x10e2   :  { %v5003_v27 = vpop.eup %5002 }
0x10e3   :  { %v1791_v28 = vpack.c.bf16 %v5003_v27, %v5001_v23 }
0x10e5   :  { %4535 = vmatmul.mubr.bf16.vlgmr.msra.gmra.mrb[56].mxu0 %v1791_v28 }
0x10e6   :  { %4570 = vmatprep.mubr.msk.bf16.mxu0 %vm5169_vm0, %v5168_v1 }
0x11b8   :  { %v1890_v25 = vpop.f32.mrb[56].mxu0 }
0x11b9   :  { %v1891_v26 = vadd.f32 %v5842_v15, %v1890_v25  ;;  %v4536_v29 = vpop.f32.mrb[57].mxu0 }
0x11ba   :  { %v1893_v30 = vpop.f32.mrb[58].mxu0 }
0x11bb   :  { %v4014_v31 = vmul.f32 -1.442695, %v1891_v26  ;;  %v1894_v32 = vadd.f32 %v5842_v15, %v1893_v30  ;;  %v4537_v33 = vpop.f32.mrb[59].mxu0 }
0x11bd   :  { %5004 = vpow2.f32 %v4014_v31  ;;  %v4015_v34 = vmul.f32 -1.442695, %v1894_v32 }
0x11bf   :  { %5006 = vpow2.f32 %v4015_v34 }
0x11c7   :  { %v5005_v35 = vpop.eup %5004 }
0x11c8   :  { %v1903_v36 = vadd.f32 1.0, %v5005_v35 }
0x11c9   :  { %v5007_v41 = vpop.eup %5006 }
0x11ca   :  { %5008 = vrcp.f32 %v1903_v36  ;;  %v1904_v44 = vadd.f32 1.0, %v5007_v41  ;;  %v4874_v36 = vld [vmem:[%s6405_s9] sm:$0xff]   ;;  %v4875_v41 = vld [vmem:[%s6405_s9 + $0x8] sm:$0xff]  }
0x11cc   :  { %5010 = vrcp.f32 %v1904_v44  ;;  %v4877_v44 = vld [vmem:[%s6405_s9 + $0x18] sm:$0xff]  }
0x11d4   :  { %v5009_v45 = vpop.eup %5008 }
0x11d5   :  { %1911 = vrot.lane.b32.xlu1 %v5009_v45, %s5171_s25  ;;  %v2059_v12 = vsub.f32 1.0, %v5009_v45  ;;  %v2063_v17 = vmul.f32 %v5009_v45, %v5808_v8 }
0x11d6   :  { %v5851_v47 = vpop.eup %5010 }
0x11d7   :  { %1913 = vrot.lane.b32.xlu0 %v5851_v47, %s5171_s25  ;;  %v2060_v18 = vsub.f32 1.0, %v5851_v47  ;;  %v2064_v28 = vmul.f32 %v5851_v47, %v5810_v9 }
0x11d9   :  { %2069 = vperm.xlu1 %4793, %v4000_v51  }
0x11db   :  { %2074 = vperm.xlu0 %4794, %v4001_v46  }
0x11dd   :  { %2083 = vperm.xlu1 %4793, %v2079_v48  }
0x11df   :  { %2088 = vperm.xlu0 %4794, %v2080_v49  }
0x1247   :  { %v1912_v50 = vpop.permute.xlu1 %1911 }
0x1248   :  { %v1917_v53 = vmul.f32 %v1912_v50, %v5808_v8  ;;  %v2162_v50 = vstv %s4026_s1  ;;  %s4053_s1 = sld [smem:[#allocation5 + $0x5]] }
0x1249   :  { %v1914_v52 = vpop.permute.xlu0 %1913 }
0x124a   :  { %v1918_v24 = vmul.f32 %v1914_v52, %v5810_v9 }
0x124c   :  { %v1919_v3 = vpack.c.bf16 %v1918_v24, %v1917_v53 }
0x124e   :  { %4543 = vmatmul.mubr.msk.bf16.vlgmr.msra.gmra.mrb[44].mxu1 %vm57_vm1, %v1919_v3 }
0x124f   :  { %4554 = vmatprep.mubr.msk.bf16.mxu1 %vm5169_vm0, %v5168_v1  ;;  %4547 = vmatpush3.bf16.msra.mxu1 %v4868_v54 }
0x1250   :  { %4548 = vmatprep.subr.bf16.mxu1 %v5168_v1 }
0x1253   :  { %4549 = vmatpush3.bf16.msra.mxu1 %v4869_v56 }
0x1254   :  { %4550 = vmatprep.subr.bf16.mxu1 %v5168_v1 }
0x1257   :  { %4551 = vmatpush3.bf16.msra.mxu1 %v4870_v57 }
0x1258   :  { %4552 = vmatprep.subr.bf16.mxu1 %v5168_v1  ;;  %v2070_v37 = vpop.permute.xlu1 %2069 }
0x125a   :  { %v2075_v38 = vpop.permute.xlu0 %2074 }
0x125b   :  { %4553 = vmatpush3.bf16.msra.mxu1 %v4871_v58  ;;  %v4878_v58 = vld [vmem:[%s6405_s9 + $0x20] sm:$0xff]  }
0x125c   :  { %4558 = vmatprep.subr.bf16.mxu1 %v5168_v1  ;;  %v2084_v22 = vpop.permute.xlu1 %2083 }
0x125d   :  { %v2091_v25 = vmul.f32 %v2084_v22, %v5808_v8  ;;  %v4872_v8 = vld [vmem:[%s6403_s7] sm:$0xff]  }
0x125e   :  { %v2089_v20 = vpop.permute.xlu0 %2088  ;;  %4567 = vmatpush3.bf16.msra.mxu0 %v4872_v8 }
0x125f   :  { %v2092_v30 = vmul.f32 %v2089_v20, %v5810_v9  ;;  %4568 = vmatprep.subr.bf16.mxu0 %v5168_v1  ;;  %v4873_v9 = vld [vmem:[%s6403_s7 + $0x8] sm:$0xff]  }
0x1262   :  { %4569 = vmatpush3.bf16.msra.mxu0 %v4873_v9  ;;  %v4884_v9 = vld [vmem:[%s6407_s11] sm:$0xff]  }
0x1263   :  { %4594 = vmatprep.subr.bf16.mxu0 %v5168_v1 }
0x1321   :  { %v1973_v62 = vpop.f32.mrb[44].mxu1 }
0x1322   :  { %v1974_v43 = vadd.f32 %v1973_v62, %v1674_v39  ;;  %v4544_v59 = vpop.f32.mrb[45].mxu1  ;;  %v4879_v39 = vld [vmem:[%s6405_s9 + $0x28] sm:$0xff]   ;;  %v4880_v62 = vld [vmem:[%s6405_s9 + $0x30] sm:$0xff]  }
0x1323   :  { %v1976_v61 = vpop.f32.mrb[46].mxu1  ;;  %v2112_v59 = vld [vmem:[#allocation3 + $0x80] sm:$0xff] }
0x1324   :  { %v1977_v40 = vadd.f32 %v1976_v61, %v1676_v60  ;;  %v4545_v63 = vpop.f32.mrb[47].mxu1  ;;  %5012 = vtanh.f32 %v1974_v43  ;;  %v4881_v43 = vld [vmem:[%s6405_s9 + $0x38] sm:$0xff]  }
0x1325   :  { %v2114_v63 = vld [vmem:[#allocation3 + $0x90] sm:$0xff] }
0x1326   :  { %5014 = vtanh.f32 %v1977_v40 }
0x132e   :  { %v5013_v4 = vpop.eup %5012 }
0x1330   :  { %v5015_v6 = vpop.eup %5014 }
0x1331   :  { %v1982_v7 = vpack.c.bf16 %v5015_v6, %v5013_v4 }
0x1333   :  { %4555 = vmatmul.mubr.msk.bf16.vlgmr.msra.gmra.mrb[48].mxu1 %vm279_vm3, %v1982_v7 }
0x1334   :  { %4559 = vmatpush3.bf16.msra.mxu1 %v5634_v5  ;;  %4562 = vmatprep.mubr.msk.bf16.mxu1 %vm5169_vm0, %v5168_v1 }
0x1335   :  { %4560 = vmatprep.subr.bf16.mxu1 %v5168_v1 }
0x1338   :  { %4561 = vmatpush3.bf16.msra.mxu1 %v5643_v0 }
0x1339   :  { %4574 = vmatprep.subr.bf16.mxu1 %v5168_v1 }
0x1406   :  { %v2052_v10 = vpop.f32.mrb[48].mxu1 }
0x1407   :  { %v2053_v11 = vadd.f32 %v5516_v55, %v2052_v10  ;;  %v4556_v13 = vpop.f32.mrb[49].mxu1 }
0x1408   :  { %v2055_v14 = vpop.f32.mrb[50].mxu1 }
0x1409   :  { %v2061_v16 = vmul.f32 %v2059_v12, %v2053_v11  ;;  %v2056_v19 = vadd.f32 %v5516_v55, %v2055_v14  ;;  %v4557_v21 = vpop.f32.mrb[51].mxu1  ;;  %v4882_v11 = vld [vmem:[%s6404_s8] sm:$0xff]  }
0x140b   :  { %v2065_v23 = vadd.f32 %v2063_v17, %v2061_v16  ;;  %v2062_v27 = vmul.f32 %v2060_v18, %v2056_v19 }
0x140d   :  { %v2077_v26 = vmul.f32 %v2070_v37, %v2065_v23  ;;  %v2066_v29 = vadd.f32 %v2064_v28, %v2062_v27  ;;  %v4883_v28 = vld [vmem:[%s6404_s8 + $0x8] sm:$0xff]  }
0x140f   :  { %v2093_v31 = vadd.f32 %v2091_v25, %v2077_v26  ;;  %v2078_v32 = vmul.f32 %v2075_v38, %v2066_v29  ;;  %v4027_v29 = vld [vmem:[%s6398_s2 + $0x40] sm:$0xff] }
0x1411   :  { %v4140_v33 = vpack.c.bf16 %v2093_v31, %v2093_v31  ;;  %v2094_v55 = vadd.f32 %v2092_v30, %v2078_v32  ;;  %v4028_v30 = vld [vmem:[%s6398_s2 + $0x48] sm:$0xff] }
0x1412   :  { %v2519_v32 = vsub.f32 1.0, %v4028_v30 }
0x1413   :  { %2104 = vst.msk [vmem:[#allocation6 + $0x18] sm:$0xf] %vm786_vm4, %v4140_v33  ;;  %v4141_v34 = vpack.c.bf16 %v2094_v55, %v2094_v55  ;;  %v2095_v35 = vpack.c.bf16 %v2094_v55, %v2093_v31 }
0x1415   :  { %2105 = vst.msk [vmem:[#allocation6 + $0x1c] sm:$0xf] %vm786_vm4, %v4141_v34  ;;  %4563 = vmatmul.mubr.msk.bf16.vlgmr.msra.gmra.mrb[52].mxu1 %vm57_vm1, %v2095_v35 }
0x1416   :  { %4590 = vmatprep.mubr.msk.bf16.mxu1 %vm5169_vm0, %v5168_v1  ;;  %4575 = vmatpush3.bf16.msra.mxu1 %v4874_v36  ;;  %v4885_v36 = vld [vmem:[%s6407_s11 + $0x8] sm:$0xff]  }
0x1417   :  { %4576 = vmatprep.subr.bf16.mxu1 %v5168_v1 }
0x141a   :  { %4577 = vmatpush3.bf16.msra.mxu1 %v4875_v41  ;;  %v4886_v41 = vld [vmem:[%s6407_s11 + $0x10] sm:$0xff]  }
0x141b   :  { %4578 = vmatprep.subr.bf16.mxu1 %v5168_v1 }
0x141e   :  { %4579 = vmatpush3.bf16.msra.mxu1 %v4876_v42  ;;  %v4887_v42 = vld [vmem:[%s6407_s11 + $0x18] sm:$0xff]  }
0x141f   :  { %4580 = vmatprep.subr.bf16.mxu1 %v5168_v1 }
0x1422   :  { %4581 = vmatpush3.bf16.msra.mxu1 %v4877_v44  ;;  %v2113_v44 = vld [vmem:[#allocation3 + $0x88] sm:$0xff] }
0x1423   :  { %4582 = vmatprep.subr.bf16.mxu1 %v5168_v1 }
0x1426   :  { %4583 = vmatpush3.bf16.msra.mxu1 %v4878_v58 }
0x1427   :  { %4584 = vmatprep.subr.bf16.mxu1 %v5168_v1 }
0x142a   :  { %4585 = vmatpush3.bf16.msra.mxu1 %v4879_v39  ;;  %v6007_v39 = vld [vmem:[%s6408_s12] ss:$0 sm:$0xff] }
0x142b   :  { %4586 = vmatprep.subr.bf16.mxu1 %v5168_v1 }
0x142e   :  { %4587 = vmatpush3.bf16.msra.mxu1 %v4880_v62 }
0x142f   :  { %4588 = vmatprep.subr.bf16.mxu1 %v5168_v1 }
0x1432   :  { %4589 = vmatpush3.bf16.msra.mxu1 %v4881_v43 }
0x1433   :  { %4622 = vmatprep.subr.bf16.mxu1 %v5168_v1 }
0x14e8   :  { %v2153_v45 = vpop.f32.mrb[52].mxu1 }
0x14e9   :  { %v2154_v47 = vadd.f32 %v5804_v2, %v2153_v45  ;;  %v4564_v51 = vpop.f32.mrb[53].mxu1 }
0x14ea   :  { %v2156_v46 = vpop.f32.mrb[54].mxu1 }
0x14eb   :  { %5016 = vtanh.f32 %v2154_v47  ;;  %v2157_v48 = vadd.f32 %v5804_v2, %v2156_v46  ;;  %v4565_v49 = vpop.f32.mrb[55].mxu1  ;;  %v2115_v46 = vld [vmem:[#allocation3 + $0x98] sm:$0xff] }
0x14ed   :  { %5018 = vtanh.f32 %v2157_v48 }
0x14f5   :  { %v5017_v52 = vpop.eup %5016 }
0x14f6   :  { %v2163_v53 = vmul.f32 %v5017_v52, %v2162_v50 }
0x14f7   :  { %v5019_v24 = vpop.eup %5018 }
0x14f8   :  { %v2164_v3 = vmul.f32 %v5019_v24, %v2162_v50  ;;  %v5928_v54 = vadd.f32 %v2163_v53, %v2093_v31  ;;  %v2518_v31 = vsub.f32 1.0, %v4027_v29 }
0x14fa   :  { %v5930_v56 = vadd.f32 %v2164_v3, %v2094_v55 }
0x14fc   :  { %v2167_v57 = vpack.c.bf16 %v5930_v56, %v5928_v54 }
0x14fe   :  { %4571 = vmatmul.mubr.msk.bf16.vlgmr.msra.gmra.mrb[60].mxu0 %vm57_vm1, %v2167_v57 }
0x14ff   :  { %4598 = vmatprep.mubr.msk.bf16.mxu0 %vm5169_vm0, %v5168_v1  ;;  %4595 = vmatpush3.bf16.msra.mxu0 %v4882_v11 }
0x1500   :  { %4596 = vmatprep.subr.bf16.mxu0 %v5168_v1 }
0x1503   :  { %4597 = vmatpush3.bf16.msra.mxu0 %v4883_v28  ;;  %v4893_v28 = vld [vmem:[%s6405_s9 + $0x18] sm:$0xff]  }
0x1504   :  { %4602 = vmatprep.subr.bf16.mxu0 %v5168_v1 }
0x15d1   :  { %v2221_v60 = vpop.f32.mrb[60].mxu0 }
0x15d2   :  { %v2222_v61 = vadd.f32 %v2221_v60, %v2112_v59  ;;  %v4572_v40 = vpop.f32.mrb[61].mxu0 }
0x15d3   :  { %v2224_v4 = vpop.f32.mrb[62].mxu0 }
0x15d4   :  { %v2225_v6 = vadd.f32 %v2224_v4, %v2114_v63  ;;  %v4573_v7 = vpop.f32.mrb[63].mxu0  ;;  %5020 = vtanh.f32 %v2222_v61 }
0x15d6   :  { %5022 = vtanh.f32 %v2225_v6 }
0x15de   :  { %v5021_v37 = vpop.eup %5020 }
0x15e0   :  { %v5023_v38 = vpop.eup %5022 }
0x15e1   :  { %v2230_v10 = vpack.c.bf16 %v5023_v38, %v5021_v37 }
0x15e3   :  { %4591 = vmatmul.mubr.bf16.vlgmr.msra.gmra.mrb[56].mxu1 %v2230_v10 }
0x15e4   :  { %4626 = vmatprep.mubr.msk.bf16.mxu1 %vm5169_vm0, %v5168_v1 }
0x16b6   :  { %v2329_v12 = vpop.f32.mrb[56].mxu1 }
0x16b7   :  { %v2330_v13 = vadd.f32 %v5842_v15, %v2329_v12  ;;  %v4592_v14 = vpop.f32.mrb[57].mxu1 }
0x16b8   :  { %v2332_v16 = vpop.f32.mrb[58].mxu1 }
0x16b9   :  { %v4041_v17 = vmul.f32 -1.442695, %v2330_v13  ;;  %v2333_v19 = vadd.f32 %v5842_v15, %v2332_v16  ;;  %v4593_v18 = vpop.f32.mrb[59].mxu1 }
0x16bb   :  { %5024 = vpow2.f32 %v4041_v17  ;;  %v4042_v21 = vmul.f32 -1.442695, %v2333_v19 }
0x16bd   :  { %5026 = vpow2.f32 %v4042_v21 }
0x16c5   :  { %v5025_v22 = vpop.eup %5024 }
0x16c6   :  { %v2342_v23 = vadd.f32 1.0, %v5025_v22  ;;  %v4890_v22 = vld [vmem:[%s6405_s9] sm:$0xff]  }
0x16c7   :  { %v5027_v27 = vpop.eup %5026 }
0x16c8   :  { %5028 = vrcp.f32 %v2342_v23  ;;  %v2343_v20 = vadd.f32 1.0, %v5027_v27  ;;  %v4891_v23 = vld [vmem:[%s6405_s9 + $0x8] sm:$0xff]   ;;  %v4892_v27 = vld [vmem:[%s6405_s9 + $0x10] sm:$0xff]  }
0x16ca   :  { %5030 = vrcp.f32 %v2343_v20 }
0x16d2   :  { %v5029_v25 = vpop.eup %5028 }
0x16d3   :  { %2350 = vrot.lane.b32.xlu1 %v5029_v25, %s5171_s25  ;;  %v2502_v61 = vmul.f32 %v5029_v25, %v5928_v54 }
0x16d4   :  { %v5966_v26 = vpop.eup %5030 }
0x16d5   :  { %2352 = vrot.lane.b32.xlu0 %v5966_v26, %s5171_s25  ;;  %v2499_v40 = vsub.f32 1.0, %v5966_v26  ;;  %v2503_v37 = vmul.f32 %v5966_v26, %v5930_v56 }
0x16d7   :  { %2508 = vperm.xlu1 %4793, %v4027_v29  }
0x16d9   :  { %2513 = vperm.xlu0 %4794, %v4028_v30  }
0x16db   :  { %2522 = vperm.xlu1 %4793, %v2518_v31  }
0x16dd   :  { %2527 = vperm.xlu0 %4794, %v2519_v32   ;;  %v2601_v32 = vstv %s4053_s1  ;;  %s4080_s1 = sld [smem:[#allocation5 + $0x6]] }
0x1745   :  { %v2351_v33 = vpop.permute.xlu1 %2350 }
0x1746   :  { %v2356_v34 = vmul.f32 %v2351_v33, %v5928_v54 }
0x1747   :  { %v2353_v55 = vpop.permute.xlu0 %2352 }
0x1748   :  { %v2357_v35 = vmul.f32 %v2353_v55, %v5930_v56 }
0x174a   :  { %v2358_v8 = vpack.c.bf16 %v2357_v35, %v2356_v34 }
0x174c   :  { %4599 = vmatmul.mubr.msk.bf16.vlgmr.msra.gmra.mrb[64].mxu0 %vm57_vm1, %v2358_v8 }
0x174d   :  { %4610 = vmatprep.mubr.msk.bf16.mxu0 %vm5169_vm0, %v5168_v1  ;;  %4603 = vmatpush3.bf16.msra.mxu0 %v4884_v9 }
0x174e   :  { %4604 = vmatprep.subr.bf16.mxu0 %v5168_v1 }
0x1751   :  { %4605 = vmatpush3.bf16.msra.mxu0 %v4885_v36 }
0x1752   :  { %4606 = vmatprep.subr.bf16.mxu0 %v5168_v1 }
0x1755   :  { %4607 = vmatpush3.bf16.msra.mxu0 %v4886_v41  ;;  %v4894_v41 = vld [vmem:[%s6405_s9 + $0x20] sm:$0xff]  }
0x1756   :  { %4608 = vmatprep.subr.bf16.mxu0 %v5168_v1  ;;  %v2509_v3 = vpop.permute.xlu1 %2508 }
0x1758   :  { %v2514_v57 = vpop.permute.xlu0 %2513 }
0x1759   :  { %4609 = vmatpush3.bf16.msra.mxu0 %v4887_v42  ;;  %v4895_v42 = vld [vmem:[%s6405_s9 + $0x28] sm:$0xff]  }
0x175a   :  { %4614 = vmatprep.subr.bf16.mxu0 %v5168_v1  ;;  %v2523_v4 = vpop.permute.xlu1 %2522 }
0x175b   :  { %v2530_v10 = vmul.f32 %v2523_v4, %v5928_v54  ;;  %v4888_v54 = vld [vmem:[%s6403_s7] sm:$0xff]  }
0x175c   :  { %v2528_v38 = vpop.permute.xlu0 %2527  ;;  %4623 = vmatpush3.bf16.msra.mxu1 %v4888_v54  ;;  %v4900_v54 = vld [vmem:[%s6407_s11] sm:$0xff]  }
0x175d   :  { %v2531_v13 = vmul.f32 %v2528_v38, %v5930_v56  ;;  %4624 = vmatprep.subr.bf16.mxu1 %v5168_v1  ;;  %v4889_v56 = vld [vmem:[%s6403_s7 + $0x8] sm:$0xff]  }
0x1760   :  { %4625 = vmatpush3.bf16.msra.mxu1 %v4889_v56  ;;  %v4901_v56 = vld [vmem:[%s6407_s11 + $0x8] sm:$0xff]  }
0x1761   :  { %4650 = vmatprep.subr.bf16.mxu1 %v5168_v1 }
0x181f   :  { %v2412_v45 = vpop.f32.mrb[64].mxu0 }
0x1820   :  { %v2413_v47 = vadd.f32 %v2412_v45, %v2113_v44  ;;  %v4600_v51 = vpop.f32.mrb[65].mxu0  ;;  %v4896_v44 = vld [vmem:[%s6405_s9 + $0x30] sm:$0xff]   ;;  %v4897_v45 = vld [vmem:[%s6405_s9 + $0x38] sm:$0xff]  }
0x1821   :  { %v2415_v48 = vpop.f32.mrb[66].mxu0 }
0x1822   :  { %v2416_v49 = vadd.f32 %v2415_v48, %v2115_v46  ;;  %v4601_v50 = vpop.f32.mrb[67].mxu0  ;;  %5032 = vtanh.f32 %v2413_v47  ;;  %v2551_v47 = vld [vmem:[#allocation3 + $0xa0] sm:$0xff] }
0x1824   :  { %5034 = vtanh.f32 %v2416_v49  ;;  %v2553_v49 = vld [vmem:[#allocation3 + $0xb0] sm:$0xff] }
0x182c   :  { %v5033_v52 = vpop.eup %5032 }
0x182e   :  { %v5035_v53 = vpop.eup %5034 }
0x182f   :  { %v2421_v24 = vpack.c.bf16 %v5035_v53, %v5033_v52 }
0x1831   :  { %4611 = vmatmul.mubr.msk.bf16.vlgmr.msra.gmra.mrb[68].mxu0 %vm279_vm3, %v2421_v24 }
0x1832   :  { %4615 = vmatpush3.bf16.msra.mxu0 %v5634_v5  ;;  %4618 = vmatprep.mubr.msk.bf16.mxu0 %vm5169_vm0, %v5168_v1  ;;  %v2498_v5 = vsub.f32 1.0, %v5029_v25 }
0x1833   :  { %4616 = vmatprep.subr.bf16.mxu0 %v5168_v1 }
0x1836   :  { %4617 = vmatpush3.bf16.msra.mxu0 %v5643_v0 }
0x1837   :  { %4630 = vmatprep.subr.bf16.mxu0 %v5168_v1 }
0x1904   :  { %v2491_v58 = vpop.f32.mrb[68].mxu0 }
0x1905   :  { %v2492_v62 = vadd.f32 %v6007_v39, %v2491_v58  ;;  %v4612_v43 = vpop.f32.mrb[69].mxu0  ;;  %v4898_v58 = vld [vmem:[%s6404_s8] sm:$0xff]  }
0x1906   :  { %v2494_v59 = vpop.f32.mrb[70].mxu0 }
0x1907   :  { %v2500_v60 = vmul.f32 %v2498_v5, %v2492_v62  ;;  %v2495_v0 = vadd.f32 %v6007_v39, %v2494_v59  ;;  %v4613_v63 = vpop.f32.mrb[71].mxu0 }
0x1909   :  { %v2504_v6 = vadd.f32 %v2502_v61, %v2500_v60  ;;  %v2501_v7 = vmul.f32 %v2499_v40, %v2495_v0 }
0x190b   :  { %v2516_v11 = vmul.f32 %v2509_v3, %v2504_v6  ;;  %v2505_v12 = vadd.f32 %v2503_v37, %v2501_v7  ;;  %v4899_v7 = vld [vmem:[%s6404_s8 + $0x8] sm:$0xff]  }
0x190d   :  { %v2532_v14 = vadd.f32 %v2530_v10, %v2516_v11  ;;  %v2517_v16 = vmul.f32 %v2514_v57, %v2505_v12  ;;  %v4054_v11 = vld [vmem:[%s6398_s2 + $0x50] sm:$0xff]  ;;  %v4055_v12 = vld [vmem:[%s6398_s2 + $0x58] sm:$0xff] }
0x190f   :  { %v4142_v17 = vpack.c.bf16 %v2532_v14, %v2532_v14  ;;  %v2533_v19 = vadd.f32 %v2531_v13, %v2517_v16  ;;  %v2957_v13 = vsub.f32 1.0, %v4054_v11 }
0x1911   :  { %2543 = vst.msk [vmem:[#allocation6 + $0x20] sm:$0xf] %vm786_vm4, %v4142_v17  ;;  %v4143_v18 = vpack.c.bf16 %v2533_v19, %v2533_v19  ;;  %v2534_v21 = vpack.c.bf16 %v2533_v19, %v2532_v14 }
0x1913   :  { %2544 = vst.msk [vmem:[#allocation6 + $0x24] sm:$0xf] %vm786_vm4, %v4143_v18  ;;  %4619 = vmatmul.mubr.msk.bf16.vlgmr.msra.gmra.mrb[72].mxu0 %vm57_vm1, %v2534_v21 }
0x1914   :  { %4646 = vmatprep.mubr.msk.bf16.mxu0 %vm5169_vm0, %v5168_v1  ;;  %4631 = vmatpush3.bf16.msra.mxu0 %v4890_v22  ;;  %v4902_v22 = vld [vmem:[%s6407_s11 + $0x10] sm:$0xff]  }
0x1915   :  { %4632 = vmatprep.subr.bf16.mxu0 %v5168_v1 }
0x1918   :  { %4633 = vmatpush3.bf16.msra.mxu0 %v4891_v23  ;;  %v4903_v23 = vld [vmem:[%s6407_s11 + $0x18] sm:$0xff]  }
0x1919   :  { %4634 = vmatprep.subr.bf16.mxu0 %v5168_v1 }
0x191c   :  { %4635 = vmatpush3.bf16.msra.mxu0 %v4892_v27  ;;  %v2552_v27 = vld [vmem:[#allocation3 + $0xa8] sm:$0xff] }
0x191d   :  { %4636 = vmatprep.subr.bf16.mxu0 %v5168_v1 }
0x1920   :  { %4637 = vmatpush3.bf16.msra.mxu0 %v4893_v28 }
0x1921   :  { %4638 = vmatprep.subr.bf16.mxu0 %v5168_v1 }
0x1924   :  { %4639 = vmatpush3.bf16.msra.mxu0 %v4894_v41 }
0x1925   :  { %4640 = vmatprep.subr.bf16.mxu0 %v5168_v1 }
0x1928   :  { %4641 = vmatpush3.bf16.msra.mxu0 %v4895_v42 }
0x1929   :  { %4642 = vmatprep.subr.bf16.mxu0 %v5168_v1 }
0x192c   :  { %4643 = vmatpush3.bf16.msra.mxu0 %v4896_v44 }
0x192d   :  { %4644 = vmatprep.subr.bf16.mxu0 %v5168_v1 }
0x1930   :  { %4645 = vmatpush3.bf16.msra.mxu0 %v4897_v45 }
0x1931   :  { %4678 = vmatprep.subr.bf16.mxu0 %v5168_v1 }
0x19e6   :  { %v2592_v20 = vpop.f32.mrb[72].mxu0 }
0x19e7   :  { %v2593_v25 = vadd.f32 %v5804_v2, %v2592_v20  ;;  %v4620_v26 = vpop.f32.mrb[73].mxu0 }
0x19e8   :  { %v2595_v29 = vpop.f32.mrb[74].mxu0  ;;  %v2554_v26 = vld [vmem:[#allocation3 + $0xb8] sm:$0xff] }
0x19e9   :  { %5036 = vtanh.f32 %v2593_v25  ;;  %v2596_v30 = vadd.f32 %v5804_v2, %v2595_v29  ;;  %v4621_v31 = vpop.f32.mrb[75].mxu0 }
0x19eb   :  { %5038 = vtanh.f32 %v2596_v30 }
0x19f3   :  { %v5037_v33 = vpop.eup %5036 }
0x19f4   :  { %v2602_v55 = vmul.f32 %v5037_v33, %v2601_v32 }
0x19f5   :  { %v5039_v34 = vpop.eup %5038 }
0x19f6   :  { %v2603_v35 = vmul.f32 %v5039_v34, %v2601_v32  ;;  %v6048_v8 = vadd.f32 %v2602_v55, %v2532_v14  ;;  %v2958_v14 = vsub.f32 1.0, %v4055_v12  ;;  %v6121_v34 = vld [vmem:[%s6399_s3] sm:$0xff]  }
0x19f8   :  { %v6050_v9 = vadd.f32 %v2603_v35, %v2533_v19  ;;  %v6130_v35 = vld [vmem:[%s6399_s3 + $0x8] sm:$0xff]  }
0x19fa   :  { %v2606_v36 = vpack.c.bf16 %v6050_v9, %v6048_v8 }
0x19fc   :  { %4627 = vmatmul.mubr.msk.bf16.vlgmr.msra.gmra.mrb[60].mxu1 %vm57_vm1, %v2606_v36 }
0x19fd   :  { %4654 = vmatprep.mubr.msk.bf16.mxu1 %vm5169_vm0, %v5168_v1  ;;  %4651 = vmatpush3.bf16.msra.mxu1 %v4898_v58 }
0x19fe   :  { %4652 = vmatprep.subr.bf16.mxu1 %v5168_v1 }
0x1a01   :  { %4653 = vmatpush3.bf16.msra.mxu1 %v4899_v7  ;;  %v4907_v7 = vld [vmem:[%s6405_s9 + $0x8] sm:$0xff]  }
0x1a02   :  { %4658 = vmatprep.subr.bf16.mxu1 %v5168_v1 }
0x1acf   :  { %v2660_v51 = vpop.f32.mrb[60].mxu1 }
0x1ad0   :  { %v2661_v46 = vadd.f32 %v2660_v51, %v2551_v47  ;;  %v4628_v48 = vpop.f32.mrb[61].mxu1 }
0x1ad1   :  { %v2663_v50 = vpop.f32.mrb[62].mxu1 }
0x1ad2   :  { %v2664_v52 = vadd.f32 %v2663_v50, %v2553_v49  ;;  %v4629_v53 = vpop.f32.mrb[63].mxu1  ;;  %5040 = vtanh.f32 %v2661_v46 }
0x1ad4   :  { %5042 = vtanh.f32 %v2664_v52 }
0x1adc   :  { %v5041_v24 = vpop.eup %5040 }
0x1ade   :  { %v5043_v3 = vpop.eup %5042 }
0x1adf   :  { %v2669_v57 = vpack.c.bf16 %v5043_v3, %v5041_v24 }
0x1ae1   :  { %4647 = vmatmul.mubr.bf16.vlgmr.msra.gmra.mrb[76].mxu0 %v2669_v57 }
0x1ae2   :  { %4682 = vmatprep.mubr.msk.bf16.mxu0 %vm5169_vm0, %v5168_v1 }
0x1bb4   :  { %v2768_v62 = vpop.f32.mrb[76].mxu0 }
0x1bb5   :  { %v2769_v5 = vadd.f32 %v5842_v15, %v2768_v62  ;;  %v4648_v43 = vpop.f32.mrb[77].mxu0 }
0x1bb6   :  { %v2771_v59 = vpop.f32.mrb[78].mxu0 }
0x1bb7   :  { %v4068_v60 = vmul.f32 -1.442695, %v2769_v5  ;;  %v2772_v61 = vadd.f32 %v5842_v15, %v2771_v59  ;;  %v4649_v0 = vpop.f32.mrb[79].mxu0 }
0x1bb9   :  { %5044 = vpow2.f32 %v4068_v60  ;;  %v4069_v40 = vmul.f32 -1.442695, %v2772_v61 }
0x1bbb   :  { %5046 = vpow2.f32 %v4069_v40 }
0x1bc3   :  { %v5045_v63 = vpop.eup %5044 }
0x1bc4   :  { %v2781_v4 = vadd.f32 1.0, %v5045_v63 }
0x1bc5   :  { %v5047_v6 = vpop.eup %5046 }
0x1bc6   :  { %5048 = vrcp.f32 %v2781_v4  ;;  %v2782_v37 = vadd.f32 1.0, %v5047_v6  ;;  %v4906_v6 = vld [vmem:[%s6405_s9] sm:$0xff]  }
0x1bc8   :  { %5050 = vrcp.f32 %v2782_v37  ;;  %v4908_v37 = vld [vmem:[%s6405_s9 + $0x10] sm:$0xff]  }
0x1bd0   :  { %v5049_v38 = vpop.eup %5048 }
0x1bd1   :  { %2789 = vrot.lane.b32.xlu1 %v5049_v38, %s5171_s25  ;;  %v2937_v45 = vsub.f32 1.0, %v5049_v38  ;;  %v2941_v48 = vmul.f32 %v5049_v38, %v6048_v8  ;;  %v4909_v38 = vld [vmem:[%s6405_s9 + $0x18] sm:$0xff]  }
0x1bd2   :  { %v6086_v10 = vpop.eup %5050 }
0x1bd3   :  { %2791 = vrot.lane.b32.xlu0 %v6086_v10, %s5171_s25  ;;  %v2938_v50 = vsub.f32 1.0, %v6086_v10  ;;  %v2942_v57 = vmul.f32 %v6086_v10, %v6050_v9 }
0x1bd5   :  { %2947 = vperm.xlu1 %4793, %v4054_v11  }
0x1bd7   :  { %2952 = vperm.xlu0 %4794, %v4055_v12  }
0x1bd9   :  { %2961 = vperm.xlu1 %4793, %v2957_v13  }
0x1bdb   :  { %2966 = vperm.xlu0 %4794, %v2958_v14  }
0x1c43   :  { %v2790_v16 = vpop.permute.xlu1 %2789 }
0x1c44   :  { %v2795_v19 = vmul.f32 %v2790_v16, %v6048_v8 }
0x1c45   :  { %v2792_v17 = vpop.permute.xlu0 %2791 }
0x1c46   :  { %v2796_v18 = vmul.f32 %v2792_v17, %v6050_v9  ;;  %v3040_v17 = vstv %s4080_s1 }
0x1c48   :  { %v2797_v21 = vpack.c.bf16 %v2796_v18, %v2795_v19 }
0x1c4a   :  { %4655 = vmatmul.mubr.msk.bf16.vlgmr.msra.gmra.mrb[64].mxu1 %vm57_vm1, %v2797_v21 }
0x1c4b   :  { %4666 = vmatprep.mubr.msk.bf16.mxu1 %vm5169_vm0, %v5168_v1  ;;  %4659 = vmatpush3.bf16.msra.mxu1 %v4900_v54 }
0x1c4c   :  { %4660 = vmatprep.subr.bf16.mxu1 %v5168_v1 }
0x1c4f   :  { %4661 = vmatpush3.bf16.msra.mxu1 %v4901_v56 }
0x1c50   :  { %4662 = vmatprep.subr.bf16.mxu1 %v5168_v1 }
0x1c53   :  { %4663 = vmatpush3.bf16.msra.mxu1 %v4902_v22 }
0x1c54   :  { %4664 = vmatprep.subr.bf16.mxu1 %v5168_v1  ;;  %v2948_v36 = vpop.permute.xlu1 %2947 }
0x1c56   :  { %v2953_v41 = vpop.permute.xlu0 %2952 }
0x1c57   :  { %4665 = vmatpush3.bf16.msra.mxu1 %v4903_v23 }
0x1c58   :  { %4670 = vmatprep.subr.bf16.mxu1 %v5168_v1  ;;  %v2962_v53 = vpop.permute.xlu1 %2961 }
0x1c59   :  { %v2969_v62 = vmul.f32 %v2962_v53, %v6048_v8  ;;  %v4904_v8 = vld [vmem:[%s6403_s7] sm:$0xff]  }
0x1c5a   :  { %v2967_v58 = vpop.permute.xlu0 %2966  ;;  %4679 = vmatpush3.bf16.msra.mxu0 %v4904_v8  ;;  %v4916_v8 = vld [vmem:[%s6407_s11] sm:$0xff]  }
0x1c5b   :  { %v2970_v59 = vmul.f32 %v2967_v58, %v6050_v9  ;;  %4680 = vmatprep.subr.bf16.mxu0 %v5168_v1  ;;  %v4905_v9 = vld [vmem:[%s6403_s7 + $0x8] sm:$0xff]  }
0x1c5e   :  { %4681 = vmatpush3.bf16.msra.mxu0 %v4905_v9  ;;  %v4917_v9 = vld [vmem:[%s6407_s11 + $0x8] sm:$0xff]  }
0x1c5f   :  { %4706 = vmatprep.subr.bf16.mxu0 %v5168_v1 }
0x1d1d   :  { %v2851_v28 = vpop.f32.mrb[64].mxu1 }
0x1d1e   :  { %v2852_v20 = vadd.f32 %v2851_v28, %v2552_v27  ;;  %v4656_v25 = vpop.f32.mrb[65].mxu1  ;;  %v4911_v27 = vld [vmem:[%s6405_s9 + $0x28] sm:$0xff]   ;;  %v4912_v28 = vld [vmem:[%s6405_s9 + $0x30] sm:$0xff]  }
0x1d1f   :  { %v2854_v29 = vpop.f32.mrb[66].mxu1  ;;  %v2990_v25 = vld [vmem:[#allocation3 + $0xc0] sm:$0xff] }
0x1d20   :  { %v2855_v30 = vadd.f32 %v2854_v29, %v2554_v26  ;;  %v4657_v31 = vpop.f32.mrb[67].mxu1  ;;  %5052 = vtanh.f32 %v2852_v20  ;;  %v4913_v20 = vld [vmem:[%s6405_s9 + $0x38] sm:$0xff]  }
0x1d21   :  { %v2992_v31 = vld [vmem:[#allocation3 + $0xd0] sm:$0xff] }
0x1d22   :  { %5054 = vtanh.f32 %v2855_v30 }
0x1d2a   :  { %v5053_v32 = vpop.eup %5052 }
0x1d2c   :  { %v5055_v33 = vpop.eup %5054 }
0x1d2d   :  { %v2860_v55 = vpack.c.bf16 %v5055_v33, %v5053_v32 }
0x1d2f   :  { %4667 = vmatmul.mubr.msk.bf16.vlgmr.msra.gmra.mrb[68].mxu1 %vm279_vm3, %v2860_v55 }
0x1d30   :  { %4671 = vmatpush3.bf16.msra.mxu1 %v6121_v34  ;;  %4674 = vmatprep.mubr.msk.bf16.mxu1 %vm5169_vm0, %v5168_v1 }
0x1d31   :  { %4672 = vmatprep.subr.bf16.mxu1 %v5168_v1 }
0x1d34   :  { %4673 = vmatpush3.bf16.msra.mxu1 %v6130_v35 }
0x1d35   :  { %4686 = vmatprep.subr.bf16.mxu1 %v5168_v1 }
0x1e02   :  { %v2930_v42 = vpop.f32.mrb[68].mxu1 }
0x1e03   :  { %v2931_v44 = vadd.f32 %v6007_v39, %v2930_v42  ;;  %v4668_v47 = vpop.f32.mrb[69].mxu1 }
0x1e04   :  { %v2933_v51 = vpop.f32.mrb[70].mxu1 }
0x1e05   :  { %v2939_v46 = vmul.f32 %v2937_v45, %v2931_v44  ;;  %v2934_v49 = vadd.f32 %v6007_v39, %v2933_v51  ;;  %v4669_v52 = vpop.f32.mrb[71].mxu1  ;;  %v4914_v44 = vld [vmem:[%s6404_s8] sm:$0xff]  }
0x1e07   :  { %v2943_v24 = vadd.f32 %v2941_v48, %v2939_v46  ;;  %v2940_v3 = vmul.f32 %v2938_v50, %v2934_v49 }
0x1e09   :  { %v2955_v5 = vmul.f32 %v2948_v36, %v2943_v24  ;;  %v2944_v43 = vadd.f32 %v2942_v57, %v2940_v3  ;;  %v4915_v57 = vld [vmem:[%s6404_s8 + $0x8] sm:$0xff]  }
0x1e0b   :  { %v2971_v60 = vadd.f32 %v2969_v62, %v2955_v5  ;;  %v2956_v61 = vmul.f32 %v2953_v41, %v2944_v43  ;;  %v4081_v5 = vld [vmem:[%s6398_s2 + $0x60] sm:$0xff]  ;;  %v4082_v43 = vld [vmem:[%s6398_s2 + $0x68] sm:$0xff] }
0x1e0d   :  { %v4144_v0 = vpack.c.bf16 %v2971_v60, %v2971_v60  ;;  %v2972_v40 = vadd.f32 %v2970_v59, %v2956_v61  ;;  %v3396_v59 = vsub.f32 1.0, %v4081_v5 }
0x1e0f   :  { %2982 = vst.msk [vmem:[#allocation6 + $0x28] sm:$0xf] %vm786_vm4, %v4144_v0  ;;  %v4145_v63 = vpack.c.bf16 %v2972_v40, %v2972_v40  ;;  %v2973_v4 = vpack.c.bf16 %v2972_v40, %v2971_v60 }
0x1e11   :  { %2983 = vst.msk [vmem:[#allocation6 + $0x2c] sm:$0xf] %vm786_vm4, %v4145_v63  ;;  %4675 = vmatmul.mubr.msk.bf16.vlgmr.msra.gmra.mrb[72].mxu1 %vm57_vm1, %v2973_v4 }
0x1e12   :  { %4702 = vmatprep.mubr.msk.bf16.mxu1 %vm5169_vm0, %v5168_v1  ;;  %4687 = vmatpush3.bf16.msra.mxu1 %v4906_v6  ;;  %v4918_v6 = vld [vmem:[%s6407_s11 + $0x10] sm:$0xff]  }
0x1e13   :  { %4688 = vmatprep.subr.bf16.mxu1 %v5168_v1 }
0x1e16   :  { %4689 = vmatpush3.bf16.msra.mxu1 %v4907_v7  ;;  %v4919_v7 = vld [vmem:[%s6407_s11 + $0x18] sm:$0xff]  }
0x1e17   :  { %4690 = vmatprep.subr.bf16.mxu1 %v5168_v1 }
0x1e1a   :  { %4691 = vmatpush3.bf16.msra.mxu1 %v4908_v37  ;;  %v2991_v37 = vld [vmem:[#allocation3 + $0xc8] sm:$0xff] }
0x1e1b   :  { %4692 = vmatprep.subr.bf16.mxu1 %v5168_v1 }
0x1e1e   :  { %4693 = vmatpush3.bf16.msra.mxu1 %v4909_v38 }
0x1e1f   :  { %4694 = vmatprep.subr.bf16.mxu1 %v5168_v1 }
0x1ee4   :  { %v3031_v10 = vpop.f32.mrb[72].mxu1 }
0x1ee5   :  { %v3032_v11 = vadd.f32 %v5804_v2, %v3031_v10  ;;  %v4676_v12 = vpop.f32.mrb[73].mxu1 }
0x1ee6   :  { %v3034_v13 = vpop.f32.mrb[74].mxu1  ;;  %v2993_v12 = vld [vmem:[#allocation3 + $0xd8] sm:$0xff] }
0x1ee7   :  { %5056 = vtanh.f32 %v3032_v11  ;;  %v3035_v14 = vadd.f32 %v5804_v2, %v3034_v13  ;;  %v4677_v16 = vpop.f32.mrb[75].mxu1  ;;  %v4910_v2 = vld [vmem:[%s6405_s9 + $0x20] sm:$0xff]  }
0x1ee8   :  { %4695 = vmatpush3.bf16.msra.mxu1 %v4910_v2 }
0x1ee9   :  { %5058 = vtanh.f32 %v3035_v14  ;;  %4696 = vmatprep.subr.bf16.mxu1 %v5168_v1 }
0x1eec   :  { %4697 = vmatpush3.bf16.msra.mxu1 %v4911_v27 }
0x1eed   :  { %4698 = vmatprep.subr.bf16.mxu1 %v5168_v1 }
0x1ef0   :  { %4699 = vmatpush3.bf16.msra.mxu1 %v4912_v28 }
0x1ef1   :  { %v5057_v19 = vpop.eup %5056  ;;  %4700 = vmatprep.subr.bf16.mxu1 %v5168_v1 }
0x1ef2   :  { %v3041_v18 = vmul.f32 %v5057_v19, %v3040_v17 }
0x1ef3   :  { %v5059_v21 = vpop.eup %5058 }
0x1ef4   :  { %v3042_v54 = vmul.f32 %v5059_v21, %v3040_v17  ;;  %v6173_v56 = vadd.f32 %v3041_v18, %v2971_v60  ;;  %4701 = vmatpush3.bf16.msra.mxu1 %v4913_v20  ;;  %v3397_v60 = vsub.f32 1.0, %v4082_v43 }
0x1ef5   :  { %4734 = vmatprep.subr.bf16.mxu1 %v5168_v1 }
0x1ef6   :  { %v6175_v22 = vadd.f32 %v3042_v54, %v2972_v40 }
0x1ef8   :  { %v3045_v23 = vpack.c.bf16 %v6175_v22, %v6173_v56 }
0x1efa   :  { %4683 = vmatmul.mubr.msk.bf16.vlgmr.msra.gmra.mrb[80].mxu0 %vm57_vm1, %v3045_v23 }
0x1efb   :  { %4710 = vmatprep.mubr.msk.bf16.mxu0 %vm5169_vm0, %v5168_v1  ;;  %4707 = vmatpush3.bf16.msra.mxu0 %v4914_v44 }
0x1efc   :  { %4708 = vmatprep.subr.bf16.mxu0 %v5168_v1 }
0x1eff   :  { %4709 = vmatpush3.bf16.msra.mxu0 %v4915_v57  ;;  %v5103_v57 = vld [vmem:[%s6400_s4] ss:$0 sm:$0xff] }
0x1f00   :  { %4714 = vmatprep.subr.bf16.mxu0 %v5168_v1 }
0x1fcd   :  { %v3099_v26 = vpop.f32.mrb[80].mxu0 }
0x1fce   :  { %v3100_v29 = vadd.f32 %v3099_v26, %v2990_v25  ;;  %v4684_v30 = vpop.f32.mrb[81].mxu0 }
0x1fcf   :  { %v3102_v32 = vpop.f32.mrb[82].mxu0 }
0x1fd0   :  { %v3103_v33 = vadd.f32 %v3102_v32, %v2992_v31  ;;  %v4685_v55 = vpop.f32.mrb[83].mxu0  ;;  %5060 = vtanh.f32 %v3100_v29 }
0x1fd2   :  { %5062 = vtanh.f32 %v3103_v33 }
0x1fda   :  { %v5061_v36 = vpop.eup %5060 }
0x1fdc   :  { %v5063_v41 = vpop.eup %5062 }
0x1fdd   :  { %v3108_v42 = vpack.c.bf16 %v5063_v41, %v5061_v36 }
0x1fdf   :  { %4703 = vmatmul.mubr.bf16.vlgmr.msra.gmra.mrb[76].mxu1 %v3108_v42 }
0x1fe0   :  { %4738 = vmatprep.mubr.msk.bf16.mxu1 %vm5169_vm0, %v5168_v1 }
0x20b2   :  { %v3207_v45 = vpop.f32.mrb[76].mxu1 }
0x20b3   :  { %v3208_v47 = vadd.f32 %v5842_v15, %v3207_v45  ;;  %v4704_v51 = vpop.f32.mrb[77].mxu1 }
0x20b4   :  { %v3210_v46 = vpop.f32.mrb[78].mxu1 }
0x20b5   :  { %v4095_v48 = vmul.f32 -1.442695, %v3208_v47  ;;  %v3211_v49 = vadd.f32 %v5842_v15, %v3210_v46  ;;  %v4705_v50 = vpop.f32.mrb[79].mxu1 }
0x20b6   :  { %v4922_v50 = vld [vmem:[%s6405_s9] sm:$0xff]  }
0x20b7   :  { %5064 = vpow2.f32 %v4095_v48  ;;  %v4096_v52 = vmul.f32 -1.442695, %v3211_v49 }
0x20b9   :  { %5066 = vpow2.f32 %v4096_v52  ;;  %v4923_v52 = vld [vmem:[%s6405_s9 + $0x8] sm:$0xff]  }
0x20c1   :  { %v5065_v53 = vpop.eup %5064 }
0x20c2   :  { %v3220_v24 = vadd.f32 1.0, %v5065_v53  ;;  %v4924_v53 = vld [vmem:[%s6405_s9 + $0x10] sm:$0xff]  }
0x20c3   :  { %v5067_v3 = vpop.eup %5066 }
0x20c4   :  { %5068 = vrcp.f32 %v3220_v24  ;;  %v3221_v58 = vadd.f32 1.0, %v5067_v3  ;;  %v4925_v24 = vld [vmem:[%s6405_s9 + $0x18] sm:$0xff]  }
0x20c6   :  { %5070 = vrcp.f32 %v3221_v58 }
0x20ce   :  { %v5069_v62 = vpop.eup %5068 }
0x20cf   :  { %3228 = vrot.lane.b32.xlu1 %v5069_v62, %s5171_s25  ;;  %v3376_v27 = vsub.f32 1.0, %v5069_v62 }
0x20d0   :  { %v6211_v15 = vpop.eup %5070 }
0x20d1   :  { %3230 = vrot.lane.b32.xlu0 %v6211_v15, %s5171_s25  ;;  %v3377_v29 = vsub.f32 1.0, %v6211_v15  ;;  %v3381_v33 = vmul.f32 %v6211_v15, %v6175_v22 }
0x20d3   :  { %3386 = vperm.xlu1 %4793, %v4081_v5  }
0x20d5   :  { %3391 = vperm.xlu0 %4794, %v4082_v43  }
0x20d7   :  { %3400 = vperm.xlu1 %4793, %v3396_v59   ;;  %v3479_v59 = vstv %s4107_s26  ;;  %s5173_s26 = smov [#allocation6]  }
0x20d8   :  { %s3871_s4 = sshll.u32 %s5173_s26, 4  ;;  %s6361_s4 = int_to_ptr.vmem [resolvable:$true] %s3871_s4 }
0x20d9   :  { %3405 = vperm.xlu0 %4794, %v3397_v60  }
0x2141   :  { %v3229_v61 = vpop.permute.xlu1 %3228 }
0x2142   :  { %v3234_v40 = vmul.f32 %v3229_v61, %v6173_v56 }
0x2143   :  { %v3231_v0 = vpop.permute.xlu0 %3230 }
0x2144   :  { %v3235_v63 = vmul.f32 %v3231_v0, %v6175_v22 }
0x2146   :  { %v3236_v4 = vpack.c.bf16 %v3235_v63, %v3234_v40 }
0x2148   :  { %4711 = vmatmul.mubr.msk.bf16.vlgmr.msra.gmra.mrb[84].mxu0 %vm57_vm1, %v3236_v4 }
0x2149   :  { %4722 = vmatprep.mubr.msk.bf16.mxu0 %vm5169_vm0, %v5168_v1  ;;  %4715 = vmatpush3.bf16.msra.mxu0 %v4916_v8 }
0x214a   :  { %4716 = vmatprep.subr.bf16.mxu0 %v5168_v1 }
0x214d   :  { %4717 = vmatpush3.bf16.msra.mxu0 %v4917_v9  ;;  %v4926_v9 = vld [vmem:[%s6405_s9 + $0x20] sm:$0xff]  }
0x214e   :  { %4718 = vmatprep.subr.bf16.mxu0 %v5168_v1 }
0x2151   :  { %4719 = vmatpush3.bf16.msra.mxu0 %v4918_v6  ;;  %v4927_v6 = vld [vmem:[%s6405_s9 + $0x28] sm:$0xff]  }
0x2152   :  { %4720 = vmatprep.subr.bf16.mxu0 %v5168_v1  ;;  %v3387_v21 = vpop.permute.xlu1 %3386 }
0x2154   :  { %v3392_v54 = vpop.permute.xlu0 %3391 }
0x2155   :  { %4721 = vmatpush3.bf16.msra.mxu0 %v4919_v7  ;;  %v4928_v7 = vld [vmem:[%s6405_s9 + $0x30] sm:$0xff]  }
0x2156   :  { %4726 = vmatprep.subr.bf16.mxu0 %v5168_v1  ;;  %v3401_v31 = vpop.permute.xlu1 %3400 }
0x2157   :  { %v3408_v36 = vmul.f32 %v3401_v31, %v6173_v56 }
0x2158   :  { %v3406_v55 = vpop.permute.xlu0 %3405 }
0x2159   :  { %v3409_v44 = vmul.f32 %v3406_v55, %v6175_v22  ;;  %v4921_v22 = vld [vmem:[%s6403_s7 + $0x8] sm:$0xff]  }
0x221b   :  { %v3290_v38 = vpop.f32.mrb[84].mxu0 }
0x221c   :  { %v3291_v10 = vadd.f32 %v3290_v38, %v2991_v37  ;;  %v4712_v11 = vpop.f32.mrb[85].mxu0  ;;  %v4929_v37 = vld [vmem:[%s6405_s9 + $0x38] sm:$0xff]   ;;  %v3429_v38 = vld [vmem:[#allocation3 + $0xe0] sm:$0xff] }
0x221d   :  { %v3293_v13 = vpop.f32.mrb[86].mxu0 }
0x221e   :  { %v3294_v14 = vadd.f32 %v3293_v13, %v2993_v12  ;;  %v4713_v16 = vpop.f32.mrb[87].mxu0  ;;  %5072 = vtanh.f32 %v3291_v10  ;;  %v3431_v13 = vld [vmem:[#allocation3 + $0xf0] sm:$0xff] }
0x2220   :  { %5074 = vtanh.f32 %v3294_v14 }
0x2228   :  { %v5073_v17 = vpop.eup %5072 }
0x222a   :  { %v5075_v19 = vpop.eup %5074 }
0x222b   :  { %v3299_v18 = vpack.c.bf16 %v5075_v19, %v5073_v17 }
0x222d   :  { %4723 = vmatmul.mubr.msk.bf16.vlgmr.msra.gmra.mrb[88].mxu0 %vm279_vm3, %v3299_v18 }
0x222e   :  { %4727 = vmatpush3.bf16.msra.mxu0 %v6121_v34  ;;  %4730 = vmatprep.mubr.msk.bf16.mxu0 %vm5169_vm0, %v5168_v1  ;;  %v3380_v34 = vmul.f32 %v5069_v62, %v6173_v56  ;;  %v4920_v56 = vld [vmem:[%s6403_s7] sm:$0xff]  }
0x222f   :  { %4728 = vmatprep.subr.bf16.mxu0 %v5168_v1  ;;  %4735 = vmatpush3.bf16.msra.mxu1 %v4920_v56  ;;  %v4932_v56 = vld [vmem:[%s6407_s11] sm:$0xff]  }
0x2230   :  { %4736 = vmatprep.subr.bf16.mxu1 %v5168_v1 }
0x2232   :  { %4729 = vmatpush3.bf16.msra.mxu0 %v6130_v35 }
0x2233   :  { %4742 = vmatprep.subr.bf16.mxu0 %v5168_v1  ;;  %4737 = vmatpush3.bf16.msra.mxu1 %v4921_v22  ;;  %v4933_v22 = vld [vmem:[%s6407_s11 + $0x8] sm:$0xff]  }
0x2234   :  { %4762 = vmatprep.subr.bf16.mxu1 %v5168_v1 }
0x2300   :  { %v3369_v23 = vpop.f32.mrb[88].mxu0 }
0x2301   :  { %v3370_v2 = vadd.f32 %v6007_v39, %v3369_v23  ;;  %v4724_v28 = vpop.f32.mrb[89].mxu0 }
0x2302   :  { %v3372_v20 = vpop.f32.mrb[90].mxu0 }
0x2303   :  { %v3378_v25 = vmul.f32 %v3376_v27, %v3370_v2  ;;  %v3373_v26 = vadd.f32 %v6007_v39, %v3372_v20  ;;  %v4725_v30 = vpop.f32.mrb[91].mxu0  ;;  %v5104_v2 = vld [vmem:[%s6406_s10] ss:$0 sm:$0xff] }
0x2305   :  { %v3382_v35 = vadd.f32 %v3380_v34, %v3378_v25  ;;  %v3379_v32 = vmul.f32 %v3377_v29, %v3373_v26 }
0x2307   :  { %v3394_v41 = vmul.f32 %v3387_v21, %v3382_v35  ;;  %v3383_v42 = vadd.f32 %v3381_v33, %v3379_v32  ;;  %v4931_v32 = vld [vmem:[%s6404_s8 + $0x8] sm:$0xff]  }
0x2309   :  { %v3410_v45 = vadd.f32 %v3408_v36, %v3394_v41  ;;  %v3395_v47 = vmul.f32 %v3392_v54, %v3383_v42  ;;  %v4930_v54 = vld [vmem:[%s6404_s8] sm:$0xff]   ;;  %v4108_v41 = vld [vmem:[%s6398_s2 + $0x70] sm:$0xff]  ;;  %v4109_v42 = vld [vmem:[%s6398_s2 + $0x78] sm:$0xff] }
0x230b   :  { %v4146_v51 = vpack.c.bf16 %v3410_v45, %v3410_v45  ;;  %v3411_v46 = vadd.f32 %v3409_v44, %v3395_v47  ;;  %v3835_v44 = vsub.f32 1.0, %v4108_v41 }
0x230d   :  { %3421 = vst.msk [vmem:[#allocation6 + $0x30] sm:$0xf] %vm786_vm4, %v4146_v51  ;;  %v4147_v48 = vpack.c.bf16 %v3411_v46, %v3411_v46  ;;  %v3412_v49 = vpack.c.bf16 %v3411_v46, %v3410_v45 }
0x230f   :  { %3422 = vst.msk [vmem:[#allocation6 + $0x34] sm:$0xf] %vm786_vm4, %v4147_v48  ;;  %4731 = vmatmul.mubr.msk.bf16.vlgmr.msra.gmra.mrb[92].mxu0 %vm57_vm1, %v3412_v49 }
0x2310   :  { %4758 = vmatprep.mubr.msk.bf16.mxu0 %vm5169_vm0, %v5168_v1  ;;  %4743 = vmatpush3.bf16.msra.mxu0 %v4922_v50  ;;  %v4934_v50 = vld [vmem:[%s6407_s11 + $0x10] sm:$0xff]  }
0x2311   :  { %4744 = vmatprep.subr.bf16.mxu0 %v5168_v1 }
0x2314   :  { %4745 = vmatpush3.bf16.msra.mxu0 %v4923_v52  ;;  %v4935_v52 = vld [vmem:[%s6407_s11 + $0x18] sm:$0xff]   ;;  %s5172_s11 = smov [#allocation8]  }
0x2315   :  { %4746 = vmatprep.subr.bf16.mxu0 %v5168_v1  ;;  %s3883_s24 = sshll.u32 %s5172_s11, 4  ;;  %s3884_s24 = int_to_ptr.vmem [resolvable:$true] %s3883_s24 }
0x2316   :  { %s5117_s27 = scalar_lea.vmem %s3884_s24, 256  ;;  %p5122_p6 = scmp.lt.s32.totalorder %s3884_s24, %s3884_s24 }
0x2317   :  { %p5118_p5 = scmp.ne.s32.totalorder %s3884_s24, %s5117_s27  ;;  %p5123_p7 = scmp.lt.s32.totalorder %s5117_s27, %s5117_s27 }
0x2318   :  { %4747 = vmatpush3.bf16.msra.mxu0 %v4924_v53  ;;  %v3430_v53 = vld [vmem:[#allocation3 + $0xe8] sm:$0xff] }
0x2319   :  { %4748 = vmatprep.subr.bf16.mxu0 %v5168_v1  ;;  %p5124_p8 = por %p5123_p7, %p5122_p6 }
0x231b   :  { %p5125_p9 = pnand %p5124_p8, %p5118_p5 }
0x231c   :  { %4749 = vmatpush3.bf16.msra.mxu0 %v4925_v24 }
0x231d   :  { %4750 = vmatprep.subr.bf16.mxu0 %v5168_v1 }
0x2320   :  { %4751 = vmatpush3.bf16.msra.mxu0 %v4926_v9 }
0x2321   :  { %4752 = vmatprep.subr.bf16.mxu0 %v5168_v1 }
0x2324   :  { %4753 = vmatpush3.bf16.msra.mxu0 %v4927_v6 }
0x2325   :  { %4754 = vmatprep.subr.bf16.mxu0 %v5168_v1 }
0x2328   :  { %4755 = vmatpush3.bf16.msra.mxu0 %v4928_v7 }
0x2329   :  { %4756 = vmatprep.subr.bf16.mxu0 %v5168_v1 }
0x232c   :  { %4757 = vmatpush3.bf16.msra.mxu0 %v4929_v37 }
0x23e2   :  { %v3470_v3 = vpop.f32.mrb[92].mxu0 }
0x23e3   :  { %v3471_v58 = vadd.f32 %v5103_v57, %v3470_v3  ;;  %v4732_v62 = vpop.f32.mrb[93].mxu0 }
0x23e4   :  { %v3473_v15 = vpop.f32.mrb[94].mxu0 }
0x23e5   :  { %5076 = vtanh.f32 %v3471_v58  ;;  %v3474_v5 = vadd.f32 %v5103_v57, %v3473_v15  ;;  %v4733_v43 = vpop.f32.mrb[95].mxu0  ;;  %v3432_v58 = vld [vmem:[#allocation3 + $0xf8] sm:$0xff] }
0x23e7   :  { %5078 = vtanh.f32 %v3474_v5 }
0x23ef   :  { %v5077_v60 = vpop.eup %5076 }
0x23f0   :  { %v3480_v61 = vmul.f32 %v5077_v60, %v3479_v59 }
0x23f1   :  { %v5079_v0 = vpop.eup %5078 }
0x23f2   :  { %v3481_v40 = vmul.f32 %v5079_v0, %v3479_v59  ;;  %v6289_v63 = vadd.f32 %v3480_v61, %v3410_v45  ;;  %v3836_v45 = vsub.f32 1.0, %v4109_v42 }
0x23f4   :  { %v6291_v4 = vadd.f32 %v3481_v40, %v3411_v46 }
0x23f6   :  { %v3484_v8 = vpack.c.bf16 %v6291_v4, %v6289_v63 }
0x23f8   :  { %4739 = vmatmul.mubr.msk.bf16.vlgmr.msra.gmra.mrb[80].mxu1 %vm57_vm1, %v3484_v8 }
0x23f9   :  { %4766 = vmatprep.mubr.msk.bf16.mxu1 %vm5169_vm0, %v5168_v1  ;;  %4763 = vmatpush3.bf16.msra.mxu1 %v4930_v54 }
0x23fa   :  { %4764 = vmatprep.subr.bf16.mxu1 %v5168_v1 }
0x23fd   :  { %4765 = vmatpush3.bf16.msra.mxu1 %v4931_v32 }
0x23fe   :  { %4770 = vmatprep.subr.bf16.mxu1 %v5168_v1 }
0x24cb   :  { %v3538_v10 = vpop.f32.mrb[80].mxu1 }
0x24cc   :  { %v3539_v11 = vadd.f32 %v3538_v10, %v3429_v38  ;;  %v4740_v12 = vpop.f32.mrb[81].mxu1 }
0x24cd   :  { %v3541_v14 = vpop.f32.mrb[82].mxu1 }
0x24ce   :  { %v3542_v16 = vadd.f32 %v3541_v14, %v3431_v13  ;;  %v4741_v17 = vpop.f32.mrb[83].mxu1  ;;  %5080 = vtanh.f32 %v3539_v11 }
0x24d0   :  { %5082 = vtanh.f32 %v3542_v16 }
0x24d8   :  { %v5081_v19 = vpop.eup %5080 }
0x24da   :  { %v5083_v18 = vpop.eup %5082 }
0x24db   :  { %v3547_v21 = vpack.c.bf16 %v5083_v18, %v5081_v19 }
0x24dd   :  { %4759 = vmatmul.mubr.bf16.vlgmr.msra.gmra.mrb[96].mxu0 %v3547_v21 }
0x25b0   :  { %v3646_v23 = vpop.f32.mrb[96].mxu0 }
0x25b1   :  { %v3647_v27 = vadd.f32 %v5104_v2, %v3646_v23  ;;  %v4760_v28 = vpop.f32.mrb[97].mxu0 }
0x25b2   :  { %v3649_v20 = vpop.f32.mrb[98].mxu0 }
0x25b3   :  { %v4122_v25 = vmul.f32 -1.442695, %v3647_v27  ;;  %v3650_v34 = vadd.f32 %v5104_v2, %v3649_v20  ;;  %v4761_v26 = vpop.f32.mrb[99].mxu0 }
0x25b5   :  { %5084 = vpow2.f32 %v4122_v25  ;;  %v4123_v29 = vmul.f32 -1.442695, %v3650_v34 }
0x25b7   :  { %5086 = vpow2.f32 %v4123_v29 }
0x25bf   :  { %v5085_v30 = vpop.eup %5084 }
0x25c0   :  { %v3659_v31 = vadd.f32 1.0, %v5085_v30 }
0x25c1   :  { %v5087_v35 = vpop.eup %5086 }
0x25c2   :  { %5088 = vrcp.f32 %v3659_v31  ;;  %v3660_v33 = vadd.f32 1.0, %v5087_v35 }
0x25c4   :  { %5090 = vrcp.f32 %v3660_v33 }
0x25cc   :  { %v5089_v55 = vpop.eup %5088 }
0x25cd   :  { %3667 = vrot.lane.b32.xlu1 %v5089_v55, %s5171_s25  ;;  %v3815_v8 = vsub.f32 1.0, %v5089_v55  ;;  %v3819_v37 = vmul.f32 %v5089_v55, %v6289_v63 }
0x25ce   :  { %v5091_v36 = vpop.eup %5090 }
0x25cf   :  { %3669 = vrot.lane.b32.xlu0 %v5091_v36, %s5171_s25  ;;  %v3816_v10 = vsub.f32 1.0, %v5091_v36  ;;  %v3820_v16 = vmul.f32 %v5091_v36, %v6291_v4 }
0x25d1   :  { %3825 = vperm.xlu1 %4793, %v4108_v41  }
0x25d3   :  { %3830 = vperm.xlu0 %4794, %v4109_v42  }
0x25d5   :  { %3839 = vperm.xlu1 %4793, %v3835_v44  }
0x25d7   :  { %3844 = vperm.xlu0 %4794, %v3836_v45  }
0x263f   :  { %v3668_v47 = vpop.permute.xlu1 %3667 }
0x2640   :  { %v3673_v46 = vmul.f32 %v3668_v47, %v6289_v63 }
0x2641   :  { %v3670_v51 = vpop.permute.xlu0 %3669 }
0x2642   :  { %v3674_v48 = vmul.f32 %v3670_v51, %v6291_v4 }
0x2644   :  { %v3675_v49 = vpack.c.bf16 %v3674_v48, %v3673_v46 }
0x2646   :  { %4767 = vmatmul.mubr.msk.bf16.vlgmr.msra.gmra.mrb[84].mxu1 %vm57_vm1, %v3675_v49 }
0x2647   :  { %4778 = vmatprep.mubr.msk.bf16.mxu1 %vm5169_vm0, %v5168_v1  ;;  %4771 = vmatpush3.bf16.msra.mxu1 %v4932_v56 }
0x2648   :  { %4772 = vmatprep.subr.bf16.mxu1 %v5168_v1 }
0x264b   :  { %4773 = vmatpush3.bf16.msra.mxu1 %v4933_v22 }
0x264c   :  { %4774 = vmatprep.subr.bf16.mxu1 %v5168_v1 }
0x264f   :  { %4775 = vmatpush3.bf16.msra.mxu1 %v4934_v50 }
0x2650   :  { %4776 = vmatprep.subr.bf16.mxu1 %v5168_v1  ;;  %v3826_v61 = vpop.permute.xlu1 %3825 }
0x2652   :  { %v3831_v0 = vpop.permute.xlu0 %3830 }
0x2653   :  { %4777 = vmatpush3.bf16.msra.mxu1 %v4935_v52 }
0x2654   :  { %v3840_v12 = vpop.permute.xlu1 %3839 }
0x2655   :  { %v3847_v19 = vmul.f32 %v3840_v12, %v6289_v63 }
0x2656   :  { %v3845_v17 = vpop.permute.xlu0 %3844 }
0x2657   :  { %v3848_v54 = vmul.f32 %v3845_v17, %v6291_v4 }
0x2719   :  { %v3729_v24 = vpop.f32.mrb[84].mxu1 }
0x271a   :  { %v3730_v3 = vadd.f32 %v3729_v24, %v3430_v53  ;;  %v4768_v57 = vpop.f32.mrb[85].mxu1 }
0x271b   :  { %v3732_v62 = vpop.f32.mrb[86].mxu1 }
0x271c   :  { %v3733_v15 = vadd.f32 %v3732_v62, %v3432_v58  ;;  %v4769_v5 = vpop.f32.mrb[87].mxu1  ;;  %5092 = vtanh.f32 %v3730_v3 }
0x271e   :  { %5094 = vtanh.f32 %v3733_v15 }
0x2726   :  { %v5093_v43 = vpop.eup %5092 }
0x2728   :  { %v5095_v59 = vpop.eup %5094 }
0x2729   :  { %v3738_v60 = vpack.c.bf16 %v5095_v59, %v5093_v43 }
0x272b   :  { %4779 = vmatmul.mubr.msk.bf16.vlgmr.msra.gmra.mrb[88].mxu1 %vm279_vm3, %v3738_v60 }
0x27fe   :  { %v3808_v40 = vpop.f32.mrb[88].mxu1 }
0x27ff   :  { %v3809_v1 = vadd.f32 %v6007_v39, %v3808_v40  ;;  %v4780_v9 = vpop.f32.mrb[89].mxu1 }
0x2800   :  { %v3811_v6 = vpop.f32.mrb[90].mxu1 }
0x2801   :  { %v3817_v7 = vmul.f32 %v3815_v8, %v3809_v1  ;;  %v3812_v38 = vadd.f32 %v6007_v39, %v3811_v6  ;;  %v4781_v11 = vpop.f32.mrb[91].mxu1 }
0x2803   :  { %v3821_v13 = vadd.f32 %v3819_v37, %v3817_v7  ;;  %v3818_v14 = vmul.f32 %v3816_v10, %v3812_v38 }
0x2805   :  { %v3833_v18 = vmul.f32 %v3826_v61, %v3821_v13  ;;  %v3822_v21 = vadd.f32 %v3820_v16, %v3818_v14 }
0x2807   :  { %v3849_v23 = vadd.f32 %v3847_v19, %v3833_v18  ;;  %v3834_v2 = vmul.f32 %v3831_v0, %v3822_v21 }
0x2809   :  { %v4148_v39 = vpack.c.bf16 %v3849_v23, %v3849_v23  ;;  %3862 = vst.msk [vmem:[#allocation2] sm:$0xff] %vm57_vm1, %v3849_v23  ;;  %3864 = vst.msk [vmem:[#allocation8] sm:$0xff] %vm57_vm1, %v3849_v23  ;;  %v3850_v27 = vadd.f32 %v3848_v54, %v3834_v2 }
0x280b   :  { %3860 = vst.msk [vmem:[#allocation6 + $0x38] sm:$0xf] %vm786_vm4, %v4148_v39  ;;  %v4149_v63 = vpack.c.bf16 %v3850_v27, %v3850_v27 }
0x280c   :  { %3863 = vst.msk [vmem:[#allocation2 + $0x8] sm:$0xff] %vm57_vm1, %v3850_v27  ;;  %3865 = vst.msk [vmem:[#allocation8 + $0x8] sm:$0xff] %vm57_vm1, %v3850_v27 }
0x280d   :  { %5128 = shalt.err (!%p5125_p9)
}
0x280e   :  { %s5129_s1 = scalar_lea.hbm %s6410_s14, 256 }
0x280f   :  { %p5130_p10 = scmp.ne.s32.totalorder %s6410_s14, %s5129_s1  ;;  %p5133_p11 = scmp.lt.u32.totalorder %s5129_s1, %s6410_s14 }
0x2811   :  { %p5135_p12 = pnand %p5133_p11, %p5130_p10 }
0x2813   :  { %5138 = shalt.err (!%p5135_p12)
}
0x2814   :  { %s5174_s17 = smov 128   ;;  %s5175_s9 = smov 8   ;;  %3861 = vst.msk [vmem:[#allocation6 + $0x3c] sm:$0xf] %vm786_vm4, %v4149_v63 }
0x2815   :  { %3889 = dma.vmem_to_hbm [thread:$0]  %s3884_s24, 256, %s6410_s14, [#allocation9], %s5174_s17, %s5174_s17, %s5175_s9  }
0x2816   :  { %s5139_s12 = scalar_lea.vmem %s6361_s4, 1024  ;;  %p5144_p0 = scmp.lt.s32.totalorder %s6361_s4, %s6361_s4 }
0x2817   :  { %p5140_p13 = scmp.ne.s32.totalorder %s6361_s4, %s5139_s12  ;;  %p5145_p1 = scmp.lt.s32.totalorder %s5139_s12, %s5139_s12 }
0x2819   :  { %p5146_p2 = por %p5145_p1, %p5144_p0 }
0x281b   :  { %p5147_p3 = pnand %p5146_p2, %p5140_p13 }
0x281d   :  { %5150 = shalt.err (!%p5147_p3)
}
0x281e   :  { %s5151_s19 = scalar_lea.hbm %s6409_s13, 1024 }
0x281f   :  { %p5152_p4 = scmp.ne.s32.totalorder %s6409_s13, %s5151_s19  ;;  %p5155_p5 = scmp.lt.u32.totalorder %s5151_s19, %s6409_s13 }
0x2821   :  { %p5157_p6 = pnand %p5155_p5, %p5152_p4 }
0x2823   :  { %5160 = shalt.err (!%p5157_p6)
}
0x2824   :  { %s5176_s25 = smov 64   ;;  %s5177_s20 = smov 4  }
0x2825   :  { %3877 = dma.vmem_to_hbm [thread:$0]  %s6361_s4, 1024, %s6409_s13, [#allocation7], %s5176_s25, %s5176_s25, %s5177_s20  }
0x2826   :  { %5163 = dma.done.wait [#allocation7], 1024  }
0x2827   :  { %5164 = vsyncadd [#allocation7], 4294966272 }
0x2828   :  { %5165 = dma.done.wait [#allocation9], 256  }
0x2829   :  { %5166 = vsyncadd [#allocation9], 4294967040 }
0x282a   :  { %3896 = vsyncpa [#allocation7], 1 }
0x282b   :  { %3897 = vsyncpa [#allocation9], 1 }

</bundles_post_ra>
